<compile_context>
chip_gen: v7x
topology: tpu7x:2x2x1
jax: 0.10.0
libtpu: 0.0.40
codegen_flags: <defaults>
</compile_context>

<pallas_src>
import functools

import jax
import jax.numpy as jnp
from jax.experimental import pallas as pl
from jax.experimental.pallas import tpu as pltpu


# ----------------------------- Pallas kernels --------------------------------

def _conv_mm_t_kernel(x_ref, w_ref, b_ref, o_ref, *, apply_lrn,
                      lrn_size, lrn_alpha, lrn_beta, lrn_k):
    """One M-tile of a conv layer lowered to im2col, computed transposed so the
    big M dimension is lane-dense:

        out^T = [LRN](relu(W^T @ patches^T + b))        # (Cout, tm)

    x_ref: (K, tm) bf16 patches^T; w_ref: (Cout, K) bf16; b_ref: (Cout, 1) f32.
    MXU operands are bf16 with f32 accumulation; bias/ReLU/LRN run in f32."""
    acc = jnp.dot(w_ref[...], x_ref[...], preferred_element_type=jnp.float32)
    acc = jnp.maximum(acc + b_ref[...], 0.0)                 # bias + ReLU (VPU)
    if apply_lrn:
        # Fused LocalResponseNorm across channels (sublane dim), PyTorch
        # semantics: den = k + alpha/size * sum_{c-size//2 .. c+(size-1)//2} x^2.
        # The windowed channel sum is one tiny banded (C,C) f32 matmul on the
        # (otherwise idle) MXU -- avoids slice/concat copies on the VPU.
        C = acc.shape[0]
        pad_lo = lrn_size // 2            # channels below (c-1, ...)
        pad_hi = (lrn_size - 1) // 2      # channels above (c+1, ...)
        x2 = acc * acc
        out_c = jax.lax.broadcasted_iota(jnp.int32, (C, C), 0)
        src_c = jax.lax.broadcasted_iota(jnp.int32, (C, C), 1)
        band = jnp.where((src_c >= out_c - pad_lo) & (src_c <= out_c + pad_hi),
                         1.0, 0.0)                           # f32 (C, C)
        s = jnp.dot(band, x2, preferred_element_type=jnp.float32)
        den = lrn_k + (lrn_alpha / lrn_size) * s
        acc = acc * jnp.exp(-lrn_beta * jnp.log(den))   # x * den**-beta (EUP)
    o_ref[...] = acc.astype(o_ref.dtype)


_PATCH_BLOCK_BUDGET_BYTES = 8 << 20   # cap per (double-buffered) patch block


def conv_mm_t_pallas(patches_t, w_t, b, *, lrn, grid_m,
                     lrn_size=2, lrn_alpha=1e-4, lrn_beta=0.75, lrn_k=1.0,
                     out_dtype=jnp.bfloat16):
    """out^T = [LRN](relu(w_t @ patches_t + b)), tiled over the lane (M) dim."""
    K, M = patches_t.shape
    C = w_t.shape[0]
    tm = pl.cdiv(M, grid_m)
    tm = ((tm + 127) // 128) * 128            # lane tiles must be 128-multiples
    # VMEM budget: keep each patch block small enough that double-buffering it
    # stays inside v7x's 64 MiB VMEM even for real ROI batch sizes.
    max_tm = max(128, (_PATCH_BLOCK_BUDGET_BYTES
                       // (K * patches_t.dtype.itemsize)) // 128 * 128)
    if tm > max_tm:
        tm = max_tm
        grid_m = pl.cdiv(M, tm)
    Mp = tm * grid_m
    xp = jnp.pad(patches_t, ((0, 0), (0, Mp - M)))
    out = pl.pallas_call(
        functools.partial(_conv_mm_t_kernel, apply_lrn=lrn, lrn_size=lrn_size,
                          lrn_alpha=lrn_alpha, lrn_beta=lrn_beta, lrn_k=lrn_k),
        out_shape=jax.ShapeDtypeStruct((C, Mp), out_dtype),
        grid=(grid_m,),
        in_specs=[
            pl.BlockSpec((K, tm), lambda i: (0, i)),   # M-tile of patches^T
            pl.BlockSpec((C, K), lambda i: (0, 0)),    # full weight^T, resident
            pl.BlockSpec((C, 1), lambda i: (0, 0)),    # bias column, resident
        ],
        out_specs=pl.BlockSpec((C, tm), lambda i: (0, i)),
        compiler_params=pltpu.CompilerParams(
            dimension_semantics=("parallel",)),  # v7x: one tile per TensorCore
    )(xp, w_t, b.reshape(C, 1))
    return out[:, :M]


def _conv3_fc_tail_kernel(x_ref, w3_ref, b3_ref, w4_ref, b4_ref, w5_ref,
                          b5_ref, wb_ref, bb_ref, o_ref):
    """Fused conv3 + fc4 + fc5 + branch(k): four chained dots in one kernel so
    no intermediate ever leaves VMEM.  conv3 is expressed as a single matmul
    against a block-diagonal kron(I_9, W3) weight, producing the NHWC-flattened
    (N, 288) fc4 input with no in-kernel reshape.  Dropouts are identity."""
    h = jnp.dot(x_ref[...], w3_ref[...], preferred_element_type=jnp.float32)
    h = jnp.maximum(h + b3_ref[...], 0.0)                       # conv3 + ReLU
    h = jnp.dot(h.astype(w4_ref.dtype), w4_ref[...],
                preferred_element_type=jnp.float32)
    h = jnp.maximum(h + b4_ref[...], 0.0)                       # fc4 + ReLU
    h = jnp.dot(h.astype(w5_ref.dtype), w5_ref[...],
                preferred_element_type=jnp.float32)
    h = jnp.maximum(h + b5_ref[...], 0.0)                       # fc5 + ReLU
    s = jnp.dot(h.astype(wb_ref.dtype), wb_ref[...],
                preferred_element_type=jnp.float32)
    o_ref[...] = (s + bb_ref[...]).astype(o_ref.dtype)          # branch, no act


def conv3_fc_tail_pallas(x, w3big, b3big, w4, b4, w5, b5, wb, bb):
    M = x.shape[0]
    Mp = ((M + 7) // 8) * 8                 # pad batch rows to a sublane
    xp = jnp.pad(x, ((0, Mp - M), (0, 0)))
    out = pl.pallas_call(                   # single step, everything in VMEM
        _conv3_fc_tail_kernel,
        out_shape=jax.ShapeDtypeStruct((Mp, wb.shape[1]), jnp.float32),
    )(xp, w3big, b3big.reshape(1, -1), w4, b4.reshape(1, -1),
      w5, b5.reshape(1, -1), wb, bb.reshape(1, -1))
    return out[:M]


# ------------------------------- JAX glue -------------------------------------

def im2col_t(x_cf, k, s):
    """x_cf: (C, N, H, W) -> transposed patch matrix (k*k*C, N*OH*OW).

    Row order is (kh, kw, cin) -- matching the conv weight layout -- and the
    column order is (n, oh, ow).  Transposed so the conv kernel's output is
    lane-dense along the big M dimension."""
    C, N, H, W = x_cf.shape
    OH = (H - k) // s + 1
    OW = (W - k) // s + 1
    cols = []
    for di in range(k):
        for dj in range(k):
            cols.append(x_cf[:, :, di:di + (OH - 1) * s + 1:s,
                                   dj:dj + (OW - 1) * s + 1:s])
    p = jnp.stack(cols, axis=0)                      # (k*k, C, N, OH, OW)
    return p.reshape(k * k * C, N * OH * OW), (N, OH, OW)


def maxpool_cf(x, k=3, s=2):
    """nn.MaxPool2d(3, stride=2), VALID padding, channel-first (C, N, H, W).
    Cheap XLA glue (9 strided slices + max) that fuses with neighbours."""
    C, N, H, W = x.shape
    OH = (H - k) // s + 1
    OW = (W - k) // s + 1
    out = None
    for di in range(k):
        for dj in range(k):
            v = x[:, :, di:di + (OH - 1) * s + 1:s, dj:dj + (OW - 1) * s + 1:s]
            out = v if out is None else jnp.maximum(out, v)
    return out


def conv3_input_rows(y_cf, k=3):
    """y_cf: (C, N, H, W) -> (N, OH*OW*k*k*C) "mega-patch" rows for the fused
    conv3+fc kernel.  Column order is (oh, ow, kh, kw, cin), matching the
    block-diagonal kron(I_positions, W3) weight."""
    C, N, H, W = y_cf.shape
    OH, OW = H - k + 1, W - k + 1
    cols = [y_cf[:, :, di:di + OH, dj:dj + OW]
            for di in range(k) for dj in range(k)]   # each (C, N, OH, OW)
    p = jnp.stack(cols, axis=0)                      # (k*k, C, N, OH, OW)
    p = jnp.transpose(p, (2, 3, 4, 0, 1))            # (N, OH, OW, k*k, C)
    return p.reshape(N, OH * OW * k * k * C)


@functools.lru_cache(maxsize=None)
def _conv1_grid_m():
    """conv1's 2-way M-split only pays off with 2 TensorCores/chip (v7x);
    on single-TC v5e/v6e the grid is a serial loop and the split is overhead."""
    try:
        kind = jax.devices()[0].device_kind.lower()
    except Exception:
        return 1
    return 2 if "v7" in kind else 1


# ------------------------------ Parameters ------------------------------------

# Scaled-down channel config (original MDNet: 96/256/512/512).
C1, C2, C3, FC, NUM_BRANCHES = 8, 16, 32, 64, 2
CONV_CFG = [('conv1', 3, C1, 7), ('conv2', C1, C2, 5), ('conv3', C2, C3, 3)]
CONV3_POSITIONS = 3 * 3          # conv3 output map is 3x3 for 107x107 input
FC4_IN = CONV3_POSITIONS * C3    # 288


def _conv_w_to_2d(w_oihw):
    """PyTorch (Cout, Cin, kh, kw) -> im2col layout ((kh*kw*Cin), Cout)."""
    co, ci, kh, kw = w_oihw.shape
    return jnp.transpose(w_oihw, (2, 3, 1, 0)).reshape(kh * kw * ci, co)


def init_params(key):
    params = {}
    keys = iter(jax.random.split(key, 32))
    w2d = {}
    for name, cin, cout, ksz in CONV_CFG:
        w = 0.01 * jax.random.normal(next(keys), (cout, cin, ksz, ksz),
                                     jnp.float32)       # PyTorch OIHW layout
        w2d[name] = _conv_w_to_2d(w)
        params[name + '.b'] = 0.1 * jnp.ones((cout,), jnp.float32)
    # conv1/conv2 weights stored transposed (Cout, kh*kw*Cin) for the
    # lane-dense out^T = W^T @ patches^T kernel.
    params['conv1.wT'] = w2d['conv1'].T.astype(jnp.bfloat16)
    params['conv2.wT'] = w2d['conv2'].T.astype(jnp.bfloat16)
    # conv3 is fused into the FC-tail kernel as a block-diagonal matmul:
    # (N, 9*144) @ kron(I_9, W3) -> (N, 288) == NHWC-flattened conv3 output.
    params['conv3.wbig'] = jnp.kron(
        jnp.eye(CONV3_POSITIONS, dtype=jnp.float32),
        w2d['conv3']).astype(jnp.bfloat16)               # (1296, 288)
    params['conv3.bbig'] = jnp.tile(params['conv3.b'], CONV3_POSITIONS)
    # fc4 weight rows are stored in NHWC-flatten (h, w, c) order so conv3's
    # flattened output feeds it with no transpose; loading real PyTorch weights
    # would require the corresponding row permutation of the (in, out) matrix.
    for name, din, dout in [('fc4', FC4_IN, FC), ('fc5', FC, FC)]:
        w = 0.01 * jax.random.normal(next(keys), (din, dout), jnp.float32)
        params[name + '.w'] = w.astype(jnp.bfloat16)     # (in, out) for x @ w
        params[name + '.b'] = 0.1 * jnp.ones((dout,), jnp.float32)
    for bidx in range(NUM_BRANCHES):
        w = 0.01 * jax.random.normal(next(keys), (FC, 2), jnp.float32)
        params['branch%d.w' % bidx] = w.astype(jnp.bfloat16)
        params['branch%d.b' % bidx] = jnp.zeros((2,), jnp.float32)
    return params


# ------------------------------- Forward --------------------------------------

def mdnet_forward(params, x_nchw, k=0):
    """MDNet.forward(x, k) with in_layer='conv1', out_layer='' (default path)."""
    # Keep the channel-first layout PyTorch already provides: all conv work is
    # done transposed/channel-first, so no NCHW->NHWC transpose is needed.
    x = jnp.transpose(x_nchw, (1, 0, 2, 3)).astype(jnp.bfloat16)  # (C, N, H, W)

    # conv1: Conv(7,s2)+ReLU+LRN fused in one Pallas kernel, then MaxPool(3,s2).
    p, (n, oh, ow) = im2col_t(x, 7, 2)
    y = conv_mm_t_pallas(p, params['conv1.wT'], params['conv1.b'],
                         lrn=True, grid_m=_conv1_grid_m())
    y = maxpool_cf(y.reshape(-1, n, oh, ow))

    # conv2: Conv(5,s2)+ReLU+LRN fused, then MaxPool(3,s2).  Single tile:
    # the whole working set (~100 KB) fits one VMEM block on every generation.
    p, (n, oh, ow) = im2col_t(y, 5, 2)
    y = conv_mm_t_pallas(p, params['conv2.wT'], params['conv2.b'],
                         lrn=True, grid_m=1)
    y = maxpool_cf(y.reshape(-1, n, oh, ow))

    # conv3 + fc4 + fc5 + branch[k], fused into a single Pallas kernel; the
    # conv3 output and the (N, 288) flatten never touch HBM.
    # TODO(synk): dropout layers are treated as identity (inference mode).
    xb = conv3_input_rows(y, 3)
    return conv3_fc_tail_pallas(xb, params['conv3.wbig'], params['conv3.bbig'],
                                params['fc4.w'], params['fc4.b'],
                                params['fc5.w'], params['fc5.b'],
                                params['branch%d.w' % k],
                                params['branch%d.b' % k])


# --------------------------------- Main ----------------------------------------

if __name__ == "__main__":
    key = jax.random.PRNGKey(0)
    pkey, xkey = jax.random.split(key)
    params = init_params(pkey)

    # Input matching MDNet's canonical 107x107 crops (NCHW, like PyTorch).
    x = jax.random.normal(xkey, (2, 3, 107, 107), jnp.float32)

    fwd = jax.jit(mdnet_forward, static_argnums=(2,))
    scores = fwd(params, x, 0)
    scores = jax.block_until_ready(scores)
    assert scores.shape == (2, 2), scores.shape
    assert bool(jnp.all(jnp.isfinite(scores)))
    print("KERNEL_OK")
</pallas_src>

<mosaic_0001>
module attributes {stable_mosaic.version = 11 : i64} {
  func.func @_conv_mm_t_kernel(%arg0: i32, %arg1: memref<147x5248xbf16, #tpu.memory_space<vmem>>, %arg2: memref<8x147xbf16, #tpu.memory_space<vmem>>, %arg3: memref<8x1xf32, #tpu.memory_space<vmem>>, %arg4: memref<8x5248xbf16, #tpu.memory_space<vmem>>) attributes {dimension_semantics = [#tpu.dimension_semantics<parallel>], iteration_bounds = array<i64: 1>, scalar_prefetch = 0 : i64, scratch_operands = 0 : i64, tpu.core_type = #tpu.core_type<tc>, window_params = [{transform_indices = @transform_0, window_bounds = array<i64: 147, 5248>}, {pipeline_mode = #tpu.pipeline_mode<synchronous>, transform_indices = @transform_1, window_bounds = array<i64: 8, 147>}, {pipeline_mode = #tpu.pipeline_mode<synchronous>, transform_indices = @transform_2, window_bounds = array<i64: 8, 1>}, {transform_indices = @transform_3, window_bounds = array<i64: 8, 5248>}]} {
    %c0 = arith.constant 0 : index
    %c0_0 = arith.constant 0 : index
    %0 = vector.load %arg2[%c0, %c0_0] : memref<8x147xbf16, #tpu.memory_space<vmem>>, vector<8x147xbf16>
    %c0_1 = arith.constant 0 : index
    %c0_2 = arith.constant 0 : index
    %1 = vector.load %arg1[%c0_1, %c0_2] : memref<147x5248xbf16, #tpu.memory_space<vmem>>, vector<147x5248xbf16>
    %cst = arith.constant dense<0.000000e+00> : vector<8x5248xf32>
    %2 = tpu.matmul %0, %1, %cst {dimension_numbers = #tpu.dot_dimension_numbers<[1], [0], [0], [1], [0, 0, 1, 1], [], []>} : vector<8x147xbf16>, vector<147x5248xbf16>, vector<8x5248xf32> -> vector<8x5248xf32>
    %c0_3 = arith.constant 0 : index
    %c0_4 = arith.constant 0 : index
    %3 = vector.load %arg3[%c0_3, %c0_4] : memref<8x1xf32, #tpu.memory_space<vmem>>, vector<8x1xf32>
    %4 = vector.broadcast %3 : vector<8x1xf32> to vector<8x5248xf32>
    %5 = arith.addf %2, %4 : vector<8x5248xf32>
    %cst_5 = arith.constant 0.000000e+00 : f32
    %6 = vector.broadcast %cst_5 : f32 to vector<8x5248xf32>
    %7 = arith.maximumf %5, %6 : vector<8x5248xf32>
    %8 = arith.mulf %7, %7 : vector<8x5248xf32>
    %9 = tpu.iota {dimensions = array<i32: 0>} : vector<8x8xi32>
    %10 = tpu.iota {dimensions = array<i32: 1>} : vector<8x8xi32>
    %c1_i32 = arith.constant 1 : i32
    %11 = vector.broadcast %c1_i32 : i32 to vector<8x8xi32>
    %12 = arith.subi %9, %11 : vector<8x8xi32>
    %13 = arith.cmpi sge, %10, %12 : vector<8x8xi32>
    %c0_i32 = arith.constant 0 : i32
    %14 = vector.broadcast %c0_i32 : i32 to vector<8x8xi32>
    %15 = arith.addi %9, %14 : vector<8x8xi32>
    %16 = arith.cmpi sle, %10, %15 : vector<8x8xi32>
    %17 = arith.andi %13, %16 : vector<8x8xi1>
    %cst_6 = arith.constant 1.000000e+00 : f32
    %cst_7 = arith.constant 0.000000e+00 : f32
    %18 = vector.broadcast %cst_6 : f32 to vector<8x8xf32>
    %19 = vector.broadcast %cst_7 : f32 to vector<8x8xf32>
    %20 = arith.select %17, %18, %19 : vector<8x8xi1>, vector<8x8xf32>
    %cst_8 = arith.constant dense<0.000000e+00> : vector<8x5248xf32>
    %21 = tpu.matmul %20, %8, %cst_8 {dimension_numbers = #tpu.dot_dimension_numbers<[1], [0], [0], [1], [0, 0, 1, 1], [], []>} : vector<8x8xf32>, vector<8x5248xf32>, vector<8x5248xf32> -> vector<8x5248xf32>
    %cst_9 = arith.constant 5.000000e-05 : f32
    %22 = vector.broadcast %cst_9 : f32 to vector<8x5248xf32>
    %23 = arith.mulf %22, %21 : vector<8x5248xf32>
    %cst_10 = arith.constant 1.000000e+00 : f32
    %24 = vector.broadcast %cst_10 : f32 to vector<8x5248xf32>
    %25 = arith.addf %24, %23 : vector<8x5248xf32>
    %26 = math.log %25 : vector<8x5248xf32>
    %cst_11 = arith.constant -7.500000e-01 : f32
    %27 = vector.broadcast %cst_11 : f32 to vector<8x5248xf32>
    %28 = arith.mulf %27, %26 : vector<8x5248xf32>
    %29 = math.exp %28 : vector<8x5248xf32>
    %30 = arith.mulf %7, %29 : vector<8x5248xf32>
    %31 = arith.truncf %30 : vector<8x5248xf32> to vector<8x5248xbf16>
    %c0_12 = arith.constant 0 : index
    %c0_13 = arith.constant 0 : index
    %32 = vector.load %arg4[%c0_12, %c0_13] : memref<8x5248xbf16, #tpu.memory_space<vmem>>, vector<8x5248xbf16>
    tpu.vector_store %arg4[%c0_12, %c0_13], %31 {strides = array<i32>} : memref<8x5248xbf16, #tpu.memory_space<vmem>>, vector<8x5248xbf16>,
    return
  }
  func.func @transform_0(%arg0: i32) -> (i32, i32) {
    %c0_i32 = arith.constant 0 : i32
    %c0_i32_0 = arith.constant 0 : i32
    return %c0_i32, %arg0 : i32, i32
  }
  func.func @transform_1(%arg0: i32) -> (i32, i32) {
    %c0_i32 = arith.constant 0 : i32
    %c0_i32_0 = arith.constant 0 : i32
    %c0_i32_1 = arith.constant 0 : i32
    return %c0_i32, %c0_i32_0 : i32, i32
  }
  func.func @transform_2(%arg0: i32) -> (i32, i32) {
    %c0_i32 = arith.constant 0 : i32
    %c0_i32_0 = arith.constant 0 : i32
    %c0_i32_1 = arith.constant 0 : i32
    return %c0_i32, %c0_i32_0 : i32, i32
  }
  func.func @transform_3(%arg0: i32) -> (i32, i32) {
    %c0_i32 = arith.constant 0 : i32
    %c0_i32_0 = arith.constant 0 : i32
    return %c0_i32, %arg0 : i32, i32
  }
}

module attributes {stable_mosaic.version = 11 : i64} {
  func.func @_conv_mm_t_kernel(%arg0: i32, %arg1: memref<200x256xbf16, #tpu.memory_space<vmem>>, %arg2: memref<16x200xbf16, #tpu.memory_space<vmem>>, %arg3: memref<16x1xf32, #tpu.memory_space<vmem>>, %arg4: memref<16x256xbf16, #tpu.memory_space<vmem>>) attributes {dimension_semantics = [#tpu.dimension_semantics<parallel>], iteration_bounds = array<i64: 1>, scalar_prefetch = 0 : i64, scratch_operands = 0 : i64, tpu.core_type = #tpu.core_type<tc>, window_params = [{transform_indices = @transform_0, window_bounds = array<i64: 200, 256>}, {pipeline_mode = #tpu.pipeline_mode<synchronous>, transform_indices = @transform_1, window_bounds = array<i64: 16, 200>}, {pipeline_mode = #tpu.pipeline_mode<synchronous>, transform_indices = @transform_2, window_bounds = array<i64: 16, 1>}, {transform_indices = @transform_3, window_bounds = array<i64: 16, 256>}]} {
    %c0 = arith.constant 0 : index
    %c0_0 = arith.constant 0 : index
    %0 = vector.load %arg2[%c0, %c0_0] : memref<16x200xbf16, #tpu.memory_space<vmem>>, vector<16x200xbf16>
    %c0_1 = arith.constant 0 : index
    %c0_2 = arith.constant 0 : index
    %1 = vector.load %arg1[%c0_1, %c0_2] : memref<200x256xbf16, #tpu.memory_space<vmem>>, vector<200x256xbf16>
    %cst = arith.constant dense<0.000000e+00> : vector<16x256xf32>
    %2 = tpu.matmul %0, %1, %cst {dimension_numbers = #tpu.dot_dimension_numbers<[1], [0], [0], [1], [0, 0, 1, 1], [], []>} : vector<16x200xbf16>, vector<200x256xbf16>, vector<16x256xf32> -> vector<16x256xf32>
    %c0_3 = arith.constant 0 : index
    %c0_4 = arith.constant 0 : index
    %3 = vector.load %arg3[%c0_3, %c0_4] : memref<16x1xf32, #tpu.memory_space<vmem>>, vector<16x1xf32>
    %4 = vector.broadcast %3 : vector<16x1xf32> to vector<16x256xf32>
    %5 = arith.addf %2, %4 : vector<16x256xf32>
    %cst_5 = arith.constant 0.000000e+00 : f32
    %6 = vector.broadcast %cst_5 : f32 to vector<16x256xf32>
    %7 = arith.maximumf %5, %6 : vector<16x256xf32>
    %8 = arith.mulf %7, %7 : vector<16x256xf32>
    %9 = tpu.iota {dimensions = array<i32: 0>} : vector<16x16xi32>
    %10 = tpu.iota {dimensions = array<i32: 1>} : vector<16x16xi32>
    %c1_i32 = arith.constant 1 : i32
    %11 = vector.broadcast %c1_i32 : i32 to vector<16x16xi32>
    %12 = arith.subi %9, %11 : vector<16x16xi32>
    %13 = arith.cmpi sge, %10, %12 : vector<16x16xi32>
    %c0_i32 = arith.constant 0 : i32
    %14 = vector.broadcast %c0_i32 : i32 to vector<16x16xi32>
    %15 = arith.addi %9, %14 : vector<16x16xi32>
    %16 = arith.cmpi sle, %10, %15 : vector<16x16xi32>
    %17 = arith.andi %13, %16 : vector<16x16xi1>
    %cst_6 = arith.constant 1.000000e+00 : f32
    %cst_7 = arith.constant 0.000000e+00 : f32
    %18 = vector.broadcast %cst_6 : f32 to vector<16x16xf32>
    %19 = vector.broadcast %cst_7 : f32 to vector<16x16xf32>
    %20 = arith.select %17, %18, %19 : vector<16x16xi1>, vector<16x16xf32>
    %cst_8 = arith.constant dense<0.000000e+00> : vector<16x256xf32>
    %21 = tpu.matmul %20, %8, %cst_8 {dimension_numbers = #tpu.dot_dimension_numbers<[1], [0], [0], [1], [0, 0, 1, 1], [], []>} : vector<16x16xf32>, vector<16x256xf32>, vector<16x256xf32> -> vector<16x256xf32>
    %cst_9 = arith.constant 5.000000e-05 : f32
    %22 = vector.broadcast %cst_9 : f32 to vector<16x256xf32>
    %23 = arith.mulf %22, %21 : vector<16x256xf32>
    %cst_10 = arith.constant 1.000000e+00 : f32
    %24 = vector.broadcast %cst_10 : f32 to vector<16x256xf32>
    %25 = arith.addf %24, %23 : vector<16x256xf32>
    %26 = math.log %25 : vector<16x256xf32>
    %cst_11 = arith.constant -7.500000e-01 : f32
    %27 = vector.broadcast %cst_11 : f32 to vector<16x256xf32>
    %28 = arith.mulf %27, %26 : vector<16x256xf32>
    %29 = math.exp %28 : vector<16x256xf32>
    %30 = arith.mulf %7, %29 : vector<16x256xf32>
    %31 = arith.truncf %30 : vector<16x256xf32> to vector<16x256xbf16>
    %c0_12 = arith.constant 0 : index
    %c0_13 = arith.constant 0 : index
    %32 = vector.load %arg4[%c0_12, %c0_13] : memref<16x256xbf16, #tpu.memory_space<vmem>>, vector<16x256xbf16>
    tpu.vector_store %arg4[%c0_12, %c0_13], %31 {strides = array<i32>} : memref<16x256xbf16, #tpu.memory_space<vmem>>, vector<16x256xbf16>,
    return
  }
  func.func @transform_0(%arg0: i32) -> (i32, i32) {
    %c0_i32 = arith.constant 0 : i32
    %c0_i32_0 = arith.constant 0 : i32
    return %c0_i32, %arg0 : i32, i32
  }
  func.func @transform_1(%arg0: i32) -> (i32, i32) {
    %c0_i32 = arith.constant 0 : i32
    %c0_i32_0 = arith.constant 0 : i32
    %c0_i32_1 = arith.constant 0 : i32
    return %c0_i32, %c0_i32_0 : i32, i32
  }
  func.func @transform_2(%arg0: i32) -> (i32, i32) {
    %c0_i32 = arith.constant 0 : i32
    %c0_i32_0 = arith.constant 0 : i32
    %c0_i32_1 = arith.constant 0 : i32
    return %c0_i32, %c0_i32_0 : i32, i32
  }
  func.func @transform_3(%arg0: i32) -> (i32, i32) {
    %c0_i32 = arith.constant 0 : i32
    %c0_i32_0 = arith.constant 0 : i32
    return %c0_i32, %arg0 : i32, i32
  }
}

module attributes {stable_mosaic.version = 11 : i64} {
  func.func @_conv3_fc_tail_kernel(%arg0: memref<8x1296xbf16, #tpu.memory_space<vmem>>, %arg1: memref<1296x288xbf16, #tpu.memory_space<vmem>>, %arg2: memref<1x288xf32, #tpu.memory_space<vmem>>, %arg3: memref<288x64xbf16, #tpu.memory_space<vmem>>, %arg4: memref<1x64xf32, #tpu.memory_space<vmem>>, %arg5: memref<64x64xbf16, #tpu.memory_space<vmem>>, %arg6: memref<1x64xf32, #tpu.memory_space<vmem>>, %arg7: memref<64x2xbf16, #tpu.memory_space<vmem>>, %arg8: memref<1x2xf32, #tpu.memory_space<vmem>>, %arg9: memref<8x2xf32, #tpu.memory_space<vmem>>) attributes {dimension_semantics = [], scalar_prefetch = 0 : i64, scratch_operands = 0 : i64, tpu.core_type = #tpu.core_type<tc>} {
    %c0 = arith.constant 0 : index
    %c0_0 = arith.constant 0 : index
    %0 = vector.load %arg0[%c0, %c0_0] : memref<8x1296xbf16, #tpu.memory_space<vmem>>, vector<8x1296xbf16>
    %c0_1 = arith.constant 0 : index
    %c0_2 = arith.constant 0 : index
    %1 = vector.load %arg1[%c0_1, %c0_2] : memref<1296x288xbf16, #tpu.memory_space<vmem>>, vector<1296x288xbf16>
    %cst = arith.constant dense<0.000000e+00> : vector<8x288xf32>
    %2 = tpu.matmul %0, %1, %cst {dimension_numbers = #tpu.dot_dimension_numbers<[1], [0], [0], [1], [0, 0, 1, 1], [], []>} : vector<8x1296xbf16>, vector<1296x288xbf16>, vector<8x288xf32> -> vector<8x288xf32>
    %c0_3 = arith.constant 0 : index
    %c0_4 = arith.constant 0 : index
    %3 = vector.load %arg2[%c0_3, %c0_4] : memref<1x288xf32, #tpu.memory_space<vmem>>, vector<1x288xf32>
    %4 = vector.broadcast %3 : vector<1x288xf32> to vector<8x288xf32>
    %5 = arith.addf %2, %4 : vector<8x288xf32>
    %cst_5 = arith.constant 0.000000e+00 : f32
    %6 = vector.broadcast %cst_5 : f32 to vector<8x288xf32>
    %7 = arith.maximumf %5, %6 : vector<8x288xf32>
    %8 = arith.truncf %7 : vector<8x288xf32> to vector<8x288xbf16>
    %c0_6 = arith.constant 0 : index
    %c0_7 = arith.constant 0 : index
    %9 = vector.load %arg3[%c0_6, %c0_7] : memref<288x64xbf16, #tpu.memory_space<vmem>>, vector<288x64xbf16>
    %cst_8 = arith.constant dense<0.000000e+00> : vector<8x64xf32>
    %10 = tpu.matmul %8, %9, %cst_8 {dimension_numbers = #tpu.dot_dimension_numbers<[1], [0], [0], [1], [0, 0, 1, 1], [], []>} : vector<8x288xbf16>, vector<288x64xbf16>, vector<8x64xf32> -> vector<8x64xf32>
    %c0_9 = arith.constant 0 : index
    %c0_10 = arith.constant 0 : index
    %11 = vector.load %arg4[%c0_9, %c0_10] : memref<1x64xf32, #tpu.memory_space<vmem>>, vector<1x64xf32>
    %12 = vector.broadcast %11 : vector<1x64xf32> to vector<8x64xf32>
    %13 = arith.addf %10, %12 : vector<8x64xf32>
    %cst_11 = arith.constant 0.000000e+00 : f32
    %14 = vector.broadcast %cst_11 : f32 to vector<8x64xf32>
    %15 = arith.maximumf %13, %14 : vector<8x64xf32>
    %16 = arith.truncf %15 : vector<8x64xf32> to vector<8x64xbf16>
    %c0_12 = arith.constant 0 : index
    %c0_13 = arith.constant 0 : index
    %17 = vector.load %arg5[%c0_12, %c0_13] : memref<64x64xbf16, #tpu.memory_space<vmem>>, vector<64x64xbf16>
    %cst_14 = arith.constant dense<0.000000e+00> : vector<8x64xf32>
    %18 = tpu.matmul %16, %17, %cst_14 {dimension_numbers = #tpu.dot_dimension_numbers<[1], [0], [0], [1], [0, 0, 1, 1], [], []>} : vector<8x64xbf16>, vector<64x64xbf16>, vector<8x64xf32> -> vector<8x64xf32>
    %c0_15 = arith.constant 0 : index
    %c0_16 = arith.constant 0 : index
    %19 = vector.load %arg6[%c0_15, %c0_16] : memref<1x64xf32, #tpu.memory_space<vmem>>, vector<1x64xf32>
    %20 = vector.broadcast %19 : vector<1x64xf32> to vector<8x64xf32>
    %21 = arith.addf %18, %20 : vector<8x64xf32>
    %cst_17 = arith.constant 0.000000e+00 : f32
    %22 = vector.broadcast %cst_17 : f32 to vector<8x64xf32>
    %23 = arith.maximumf %21, %22 : vector<8x64xf32>
    %24 = arith.truncf %23 : vector<8x64xf32> to vector<8x64xbf16>
    %c0_18 = arith.constant 0 : index
    %c0_19 = arith.constant 0 : index
    %25 = vector.load %arg7[%c0_18, %c0_19] : memref<64x2xbf16, #tpu.memory_space<vmem>>, vector<64x2xbf16>
    %cst_20 = arith.constant dense<0.000000e+00> : vector<8x2xf32>
    %26 = tpu.matmul %24, %25, %cst_20 {dimension_numbers = #tpu.dot_dimension_numbers<[1], [0], [0], [1], [0, 0, 1, 1], [], []>} : vector<8x64xbf16>, vector<64x2xbf16>, vector<8x2xf32> -> vector<8x2xf32>
    %c0_21 = arith.constant 0 : index
    %c0_22 = arith.constant 0 : index
    %27 = vector.load %arg8[%c0_21, %c0_22] : memref<1x2xf32, #tpu.memory_space<vmem>>, vector<1x2xf32>
    %28 = vector.broadcast %27 : vector<1x2xf32> to vector<8x2xf32>
    %29 = arith.addf %26, %28 : vector<8x2xf32>
    %c0_23 = arith.constant 0 : index
    %c0_24 = arith.constant 0 : index
    %30 = vector.load %arg9[%c0_23, %c0_24] : memref<8x2xf32, #tpu.memory_space<vmem>>, vector<8x2xf32>
    tpu.vector_store %arg9[%c0_23, %c0_24], %29 {strides = array<i32>} : memref<8x2xf32, #tpu.memory_space<vmem>>, vector<8x2xf32>,
    return
  }
}

</mosaic_0001>

<bundles_post_ra>
// kernel: mdnet_forward.3
= control target key start
LH: loop header
LB: loop body
LE: loop exit
PB: predicated region body
PF: predicated region fallthrough
CT: control target
= control target key end

     0   :  { %v6743_v2 = vmov 0   ;;  %vm2388_vm0 = vcmask 1040384   ;;  %vm2389_vm1 = vcmask 1041408   ;;  %v6744_v36 = vmov 65535   ;;  %s8493_s0 = inlined_call_operand.vmem [shape: bf16[147,5248], index: 0, kind: input, shape index: {}]   ;;  %s8494_s1 = inlined_call_operand.vmem [shape: bf16[8,147], index: 1, kind: input, shape index: {}]   ;;  %s8495_s2 = inlined_call_operand.vmem [shape: f32[8,1], index: 2, kind: input, shape index: {}]   ;;  %s8496_s3 = inlined_call_operand.vmem [shape: bf16[8,5248], index: 3, kind: output, shape index: {}]  }
   0x1   :  { %v5987_v0 = vld [vmem:[%s8493_s0 + $0x4] ss:$164 sps:$4 sm:$0xff]   ;;  %v5989_v1 = vld [vmem:[%s8493_s0 + $0xc] ss:$164 sps:$4 sm:$0xff]   ;;  %5986 = vset.pattern.permute.xlu0 %v6743_v2  ;;  %v5995_v6 = vld [vmem:[%s8493_s0 + $0x154] ss:$164 sps:$4 sm:$0xff]  }
   0x2   :  { %2515 = vmatprep.subr.bf16.mxu0 %v5987_v0  ;;  %v5991_v3 = vld [vmem:[%s8493_s0] ss:$164 sps:$4 sm:$0xff]   ;;  %v5992_v4 = vld [vmem:[%s8493_s0 + $0x8] ss:$164 sps:$4 sm:$0xff]   ;;  %2556 = vmatprep.subr.bf16.mxu1 %v5989_v1  ;;  %v5998_v8 = vld [vmem:[%s8493_s0 + $0x150] ss:$164 sps:$4 sm:$0xff]  }
   0x3   :  { %v5993_v5 = vld [vmem:[%s8493_s0 + $0x14c] ss:$164 sps:$4 sm:$0xff]   ;;  %2516 = vmatpush1.bf16.msra.mxu0 %v5991_v3  ;;  %2557 = vmatpush1.bf16.msra.mxu1 %v5992_v4  ;;  %v5999_v9 = vld [vmem:[%s8493_s0 + $0x294] ss:$164 sps:$4 sm:$0xff]   ;;  %v6001_v10 = vld [vmem:[%s8493_s0 + $0x29c] ss:$164 sps:$4 sm:$0xff]  }
   0x4   :  { %v5997_v7 = vld [vmem:[%s8493_s0 + $0x148] ss:$164 sps:$4 sm:$0xff]   ;;  %2517 = vmatprep.subr.bf16.mxu0 %v5993_v5  ;;  %2558 = vmatprep.subr.bf16.mxu1 %v5995_v6  ;;  %v6003_v11 = vld [vmem:[%s8493_s0 + $0x290] ss:$164 sps:$4 sm:$0xff]   ;;  %v6004_v12 = vld [vmem:[%s8493_s0 + $0x298] ss:$164 sps:$4 sm:$0xff]  }
   0x5   :  { %v6005_v13 = vld [vmem:[%s8493_s0 + $0x3dc] ss:$164 sps:$4 sm:$0xff]   ;;  %v6007_v14 = vld [vmem:[%s8493_s0 + $0x3e4] ss:$164 sps:$4 sm:$0xff]   ;;  %v6013_v18 = vld [vmem:[%s8493_s0 + $0x52c] ss:$164 sps:$4 sm:$0xff]  }
   0x6   :  { %v6009_v15 = vld [vmem:[%s8493_s0 + $0x3d8] ss:$164 sps:$4 sm:$0xff]   ;;  %v6010_v16 = vld [vmem:[%s8493_s0 + $0x3e0] ss:$164 sps:$4 sm:$0xff]   ;;  %v6016_v20 = vld [vmem:[%s8493_s0 + $0x528] ss:$164 sps:$4 sm:$0xff]  }
   0x7   :  { %2518 = vmatpush1.bf16.msra.mxu0 %v5997_v7  ;;  %2559 = vmatpush1.bf16.msra.mxu1 %v5998_v8  ;;  %v6011_v17 = vld [vmem:[%s8493_s0 + $0x524] ss:$164 sps:$4 sm:$0xff]   ;;  %v6017_v21 = vld [vmem:[%s8493_s0 + $0x66c] ss:$164 sps:$4 sm:$0xff]   ;;  %v6019_v22 = vld [vmem:[%s8493_s0 + $0x674] ss:$164 sps:$4 sm:$0xff]  }
   0x8   :  { %2519 = vmatprep.subr.bf16.mxu0 %v5999_v9  ;;  %2560 = vmatprep.subr.bf16.mxu1 %v6001_v10  ;;  %v6015_v19 = vld [vmem:[%s8493_s0 + $0x520] ss:$164 sps:$4 sm:$0xff]   ;;  %v6021_v23 = vld [vmem:[%s8493_s0 + $0x668] ss:$164 sps:$4 sm:$0xff]   ;;  %v6022_v24 = vld [vmem:[%s8493_s0 + $0x670] ss:$164 sps:$4 sm:$0xff]  }
   0x9   :  { %v6023_v25 = vld [vmem:[%s8493_s0 + $0x7b4] ss:$164 sps:$4 sm:$0xff]   ;;  %v6025_v26 = vld [vmem:[%s8493_s0 + $0x7bc] ss:$164 sps:$4 sm:$0xff]   ;;  %v6031_v30 = vld [vmem:[%s8493_s0 + $0x904] ss:$164 sps:$4 sm:$0xff]  }
   0xa   :  { %v6027_v27 = vld [vmem:[%s8493_s0 + $0x7b0] ss:$164 sps:$4 sm:$0xff]   ;;  %v6028_v28 = vld [vmem:[%s8493_s0 + $0x7b8] ss:$164 sps:$4 sm:$0xff]   ;;  %v15_v31 = vld [vmem:[%s8494_s1] sm:$0xff]  ;;  %v2390_v37 = vsel %vm2388_vm0, 4294967295, %v6744_v36 }
   0xb   :  { %2520 = vmatpush1.bf16.msra.mxu0 %v6003_v11  ;;  %2561 = vmatpush1.bf16.msra.mxu1 %v6004_v12  ;;  %v6029_v29 = vld [vmem:[%s8493_s0 + $0x8fc] ss:$164 sps:$4 sm:$0xff]   ;;  %v394_v32 = vld [vmem:[%s8493_s0 + $0xb88] sm:$0x33]  ;;  %v395_v33 = vld [vmem:[%s8493_s0 + $0xb90] sm:$0x33]  ;;  %v6867_v34 = vcombine.high %v15_v31, %v15_v31  ;;  %v6903_v54 = vcombine.low %v15_v31, %v15_v31 }
   0xc   :  { %2521 = vmatprep.subr.bf16.mxu0 %v6005_v13  ;;  %2562 = vmatprep.subr.bf16.mxu1 %v6007_v14  ;;  %v6033_v35 = vld [vmem:[%s8493_s0 + $0x8f8] ss:$164 sps:$4 sm:$0xff]   ;;  %vm2384_vm2 = vcmask 154624   ;;  %v6034_v38 = vld [vmem:[%s8493_s0 + $0x900] ss:$164 sps:$4 sm:$0xff]   ;;  %v5850_v41 = vcombine.high %v394_v32, %v394_v32  ;;  %v5852_v42 = vcombine.high %v395_v33, %v395_v33  ;;  %v6881_v43 = vsel %vm2389_vm1, %v2390_v37, 0 }
   0xd   :  { %v6035_v39 = vld [vmem:[%s8493_s0 + $0xa44] ss:$164 sps:$4 sm:$0xff]   ;;  %v6037_v40 = vld [vmem:[%s8493_s0 + $0xa4c] ss:$164 sps:$4 sm:$0xff]   ;;  %5890 = vmatprep.mubr.msk.bf16.mxu0 %vm2384_vm2, %v6867_v34  ;;  %5891 = vmatprep.mubr.msk.bf16.mxu1 %vm2384_vm2, %v6867_v34  ;;  %v5849_v46 = vcombine.low %v394_v32, %v394_v32  ;;  %v5851_v47 = vcombine.low %v395_v33, %v395_v33  ;;  %v6049_v52 = vld [vmem:[%s8493_s0 + $0x14] ss:$164 sps:$4 sm:$0xff]  }
   0xe   :  { %v6039_v44 = vld [vmem:[%s8493_s0 + $0xa40] ss:$164 sps:$4 sm:$0xff]   ;;  %v6040_v45 = vld [vmem:[%s8493_s0 + $0xa48] ss:$164 sps:$4 sm:$0xff]   ;;  %v2396_v48 = vand.u32 %v5850_v41, %v6881_v43  ;;  %v2402_v49 = vand.u32 %v5852_v42, %v6881_v43  ;;  %v6047_v55 = vld [vmem:[%s8493_s0 + $0x10] ss:$164 sps:$4 sm:$0xff]  }
   0xf   :  { %2522 = vmatpush1.bf16.msra.mxu0 %v6009_v15  ;;  %2563 = vmatpush1.bf16.msra.mxu1 %v6010_v16  ;;  %v2393_v50 = vand.u32 %v5849_v46, %v6881_v43  ;;  %v2399_v51 = vand.u32 %v5851_v47, %v6881_v43  ;;  %v6052_v53 = vld [vmem:[%s8493_s0 + $0x1c] ss:$164 sps:$4 sm:$0xff]   ;;  %v6058_v58 = vld [vmem:[%s8493_s0 + $0x164] ss:$164 sps:$4 sm:$0xff]   ;;  %v6064_v62 = vld [vmem:[%s8493_s0 + $0x2ac] ss:$164 sps:$4 sm:$0xff]  }
  0x10   :  { %2523 = vmatprep.subr.bf16.mxu0 %v6011_v17  ;;  %2564 = vmatprep.subr.bf16.mxu1 %v6013_v18  ;;  %v6050_v56 = vld [vmem:[%s8493_s0 + $0x18] ss:$164 sps:$4 sm:$0xff]   ;;  %v6056_v60 = vld [vmem:[%s8493_s0 + $0x160] ss:$164 sps:$4 sm:$0xff]   ;;  %v6062_v0 = vld [vmem:[%s8493_s0 + $0x2a8] ss:$164 sps:$4 sm:$0xff]  }
  0x11   :  { %v6055_v57 = vld [vmem:[%s8493_s0 + $0x15c] ss:$164 sps:$4 sm:$0xff]   ;;  %v6061_v61 = vld [vmem:[%s8493_s0 + $0x2a4] ss:$164 sps:$4 sm:$0xff]   ;;  %v6067_v1 = vld [vmem:[%s8493_s0 + $0x3ec] ss:$164 sps:$4 sm:$0xff]  }
  0x12   :  { %v6053_v59 = vld [vmem:[%s8493_s0 + $0x158] ss:$164 sps:$4 sm:$0xff]   ;;  %v6059_v63 = vld [vmem:[%s8493_s0 + $0x2a0] ss:$164 sps:$4 sm:$0xff]   ;;  %v6065_v4 = vld [vmem:[%s8493_s0 + $0x3e8] ss:$164 sps:$4 sm:$0xff]  }
  0x13   :  { %2524 = vmatpush1.bf16.msra.mxu0 %v6015_v19  ;;  %2565 = vmatpush1.bf16.msra.mxu1 %v6016_v20  ;;  %v6070_v3 = vld [vmem:[%s8493_s0 + $0x3f4] ss:$164 sps:$4 sm:$0xff]   ;;  %v6076_v7 = vld [vmem:[%s8493_s0 + $0x53c] ss:$164 sps:$4 sm:$0xff]   ;;  %v6082_v11 = vld [vmem:[%s8493_s0 + $0x684] ss:$164 sps:$4 sm:$0xff]  }
  0x14   :  { %2525 = vmatprep.subr.bf16.mxu0 %v6017_v21  ;;  %2566 = vmatprep.subr.bf16.mxu1 %v6019_v22  ;;  %v6068_v5 = vld [vmem:[%s8493_s0 + $0x3f0] ss:$164 sps:$4 sm:$0xff]   ;;  %v6074_v9 = vld [vmem:[%s8493_s0 + $0x538] ss:$164 sps:$4 sm:$0xff]   ;;  %v6080_v13 = vld [vmem:[%s8493_s0 + $0x680] ss:$164 sps:$4 sm:$0xff]  }
  0x15   :  { %v6073_v6 = vld [vmem:[%s8493_s0 + $0x534] ss:$164 sps:$4 sm:$0xff]   ;;  %v6079_v10 = vld [vmem:[%s8493_s0 + $0x67c] ss:$164 sps:$4 sm:$0xff]   ;;  %v6085_v14 = vld [vmem:[%s8493_s0 + $0x7c4] ss:$164 sps:$4 sm:$0xff]  }
  0x16   :  { %v6071_v8 = vld [vmem:[%s8493_s0 + $0x530] ss:$164 sps:$4 sm:$0xff]   ;;  %v6077_v12 = vld [vmem:[%s8493_s0 + $0x678] ss:$164 sps:$4 sm:$0xff]   ;;  %v6083_v16 = vld [vmem:[%s8493_s0 + $0x7c0] ss:$164 sps:$4 sm:$0xff]  }
  0x17   :  { %2526 = vmatpush1.bf16.msra.mxu0 %v6021_v23  ;;  %2567 = vmatpush1.bf16.msra.mxu1 %v6022_v24  ;;  %v6088_v15 = vld [vmem:[%s8493_s0 + $0x7cc] ss:$164 sps:$4 sm:$0xff]   ;;  %v6094_v19 = vld [vmem:[%s8493_s0 + $0x914] ss:$164 sps:$4 sm:$0xff]   ;;  %v397_v21 = vld [vmem:[%s8493_s0 + $0xba0] sm:$0x33] }
  0x18   :  { %2527 = vmatprep.subr.bf16.mxu0 %v6023_v25  ;;  %2568 = vmatprep.subr.bf16.mxu1 %v6025_v26  ;;  %v6086_v17 = vld [vmem:[%s8493_s0 + $0x7c8] ss:$164 sps:$4 sm:$0xff]   ;;  %v396_v20 = vld [vmem:[%s8493_s0 + $0xb98] sm:$0x33]  ;;  %v6092_v23 = vld [vmem:[%s8493_s0 + $0x910] ss:$164 sps:$4 sm:$0xff]   ;;  %v5855_v31 = vcombine.low %v397_v21, %v397_v21 }
  0x19   :  { %v6091_v18 = vld [vmem:[%s8493_s0 + $0x90c] ss:$164 sps:$4 sm:$0xff]   ;;  %v6097_v24 = vld [vmem:[%s8493_s0 + $0xa54] ss:$164 sps:$4 sm:$0xff]   ;;  %v6100_v25 = vld [vmem:[%s8493_s0 + $0xa5c] ss:$164 sps:$4 sm:$0xff]   ;;  %v5854_v26 = vcombine.high %v396_v20, %v396_v20 }
  0x1a   :  { %v6089_v22 = vld [vmem:[%s8493_s0 + $0x908] ss:$164 sps:$4 sm:$0xff]   ;;  %v2411_v36 = vand.u32 %v5855_v31, %v6881_v43  ;;  %v415_v41 = vld [vmem:[%s8495_s2] sm:$0xff]  ;;  %v6114_v46 = vld [vmem:[%s8493_s0 + $0x170] ss:$164 sps:$4 sm:$0xff]   ;;  %vm3466_vm6 = vcmask 64512  }
  0x1b   :  { %2528 = vmatpush1.bf16.msra.mxu0 %v6027_v27  ;;  %2569 = vmatpush1.bf16.msra.mxu1 %v6028_v28  ;;  %v5856_v27 = vcombine.high %v397_v21, %v397_v21  ;;  %v6095_v28 = vld [vmem:[%s8493_s0 + $0xa50] ss:$164 sps:$4 sm:$0xff]   ;;  %v2408_v32 = vand.u32 %v5854_v26, %v6881_v43  ;;  %v6107_v37 = vld [vmem:[%s8493_s0 + $0x24] ss:$164 sps:$4 sm:$0xff]   ;;  %v6166_v26 = vld [vmem:[%s8493_s0 + $0x38] ss:$164 sps:$4 sm:$0xff]  }
  0x1c   :  { %2529 = vmatprep.subr.bf16.mxu0 %v6029_v29  ;;  %2570 = vmatprep.subr.bf16.mxu1 %v6031_v30  ;;  %v6098_v29 = vld [vmem:[%s8493_s0 + $0xa58] ss:$164 sps:$4 sm:$0xff]   ;;  %v5853_v30 = vcombine.low %v396_v20, %v396_v20  ;;  %v6113_v42 = vld [vmem:[%s8493_s0 + $0x16c] ss:$164 sps:$4 sm:$0xff]   ;;  %v6177_v31 = vld [vmem:[%s8493_s0 + $0x2c4] ss:$164 sps:$4 sm:$0xff]  }
  0x1d   :  { %v2414_v33 = vand.u32 %v5856_v27, %v6881_v43  ;;  %418 = vperm.xlu0 %5986, %v415_v41   ;;  %v6119_v47 = vld [vmem:[%s8493_s0 + $0x2b4] ss:$164 sps:$4 sm:$0xff]   ;;  %v6171_v27 = vld [vmem:[%s8493_s0 + $0x17c] ss:$164 sps:$4 sm:$0xff]   ;;  %vm6746_vm7 = vmmov 0  }
  0x1e   :  { %v6192_v41 = vld [vmem:[%s8493_s0 + $0x55c] ss:$164 sps:$4 sm:$0xff]  }
  0x1f   :  { %2530 = vmatpush1.bf16.msra.mxu0 %v6033_v35  ;;  %2571 = vmatpush1.bf16.msra.mxu1 %v6034_v38  ;;  %v2405_v35 = vand.u32 %v5853_v30, %v6881_v43  ;;  %v6110_v38 = vld [vmem:[%s8493_s0 + $0x2c] ss:$164 sps:$4 sm:$0xff]   ;;  %v6172_v30 = vld [vmem:[%s8493_s0 + $0x180] ss:$164 sps:$4 sm:$0xff]  }
  0x20   :  { %2531 = vmatprep.subr.bf16.mxu0 %v6035_v39  ;;  %2572 = vmatprep.subr.bf16.mxu1 %v6037_v40  ;;  %v6105_v39 = vld [vmem:[%s8493_s0 + $0x20] ss:$164 sps:$4 sm:$0xff]   ;;  %v6108_v40 = vld [vmem:[%s8493_s0 + $0x28] ss:$164 sps:$4 sm:$0xff]  }
  0x23   :  { %2532 = vmatpush1.bf16.msra.mxu0 %v6039_v44  ;;  %2573 = vmatpush1.bf16.msra.mxu1 %v6040_v45  ;;  %v6116_v44 = vld [vmem:[%s8493_s0 + $0x174] ss:$164 sps:$4 sm:$0xff]   ;;  %v6111_v45 = vld [vmem:[%s8493_s0 + $0x168] ss:$164 sps:$4 sm:$0xff]  }
  0x24   :  { %2533 = vmatprep.subr.bf16.mxu0 %v2396_v48  ;;  %2574 = vmatprep.subr.bf16.mxu1 %v2402_v49  ;;  %v6122_v48 = vld [vmem:[%s8493_s0 + $0x2bc] ss:$164 sps:$4 sm:$0xff]   ;;  %v6117_v49 = vld [vmem:[%s8493_s0 + $0x2b0] ss:$164 sps:$4 sm:$0xff]  }
  0x27   :  { %2534 = vmatpush1.bf16.msra.mxu0 %v2393_v50  ;;  %2575 = vmatpush1.bf16.msra.mxu1 %v2399_v51  ;;  %v6120_v50 = vld [vmem:[%s8493_s0 + $0x2b8] ss:$164 sps:$4 sm:$0xff]  }
  0x28   :  { %2597 = vmatprep.subr.bf16.mxu0 %v6049_v52  ;;  %2638 = vmatprep.subr.bf16.mxu1 %v6052_v53  ;;  %v6125_v51 = vld [vmem:[%s8493_s0 + $0x3fc] ss:$164 sps:$4 sm:$0xff]   ;;  %v6128_v52 = vld [vmem:[%s8493_s0 + $0x404] ss:$164 sps:$4 sm:$0xff]  }
  0x29   :  { %v6123_v53 = vld [vmem:[%s8493_s0 + $0x3f8] ss:$164 sps:$4 sm:$0xff]  }
  0x2a   :  { %2548 = vmatmul.mubr.bf16.vlgmr.msra.gmra.mrb[0].mxu0 %v6903_v54  ;;  %2589 = vmatmul.mubr.bf16.vlgmr.msra.gmra.mrb[0].mxu1 %v6903_v54 }
  0x2b   :  { %2598 = vmatpush1.bf16.msra.mxu0 %v6047_v55  ;;  %2639 = vmatpush1.bf16.msra.mxu1 %v6050_v56  ;;  %v6126_v55 = vld [vmem:[%s8493_s0 + $0x400] ss:$164 sps:$4 sm:$0xff]  }
  0x2c   :  { %2599 = vmatprep.subr.bf16.mxu0 %v6055_v57  ;;  %2640 = vmatprep.subr.bf16.mxu1 %v6058_v58  ;;  %v6131_v56 = vld [vmem:[%s8493_s0 + $0x544] ss:$164 sps:$4 sm:$0xff]   ;;  %v6134_v57 = vld [vmem:[%s8493_s0 + $0x54c] ss:$164 sps:$4 sm:$0xff]  }
  0x2d   :  { %5892 = vmatprep.mubr.msk.bf16.mxu0 %vm2384_vm2, %v6867_v34  ;;  %5893 = vmatprep.mubr.msk.bf16.mxu1 %vm2384_vm2, %v6867_v34  ;;  %v6129_v58 = vld [vmem:[%s8493_s0 + $0x540] ss:$164 sps:$4 sm:$0xff]  }
  0x2f   :  { %2600 = vmatpush1.bf16.msra.mxu0 %v6053_v59  ;;  %2641 = vmatpush1.bf16.msra.mxu1 %v6056_v60  ;;  %v6132_v59 = vld [vmem:[%s8493_s0 + $0x548] ss:$164 sps:$4 sm:$0xff]  }
  0x30   :  { %2601 = vmatprep.subr.bf16.mxu0 %v6061_v61  ;;  %2642 = vmatprep.subr.bf16.mxu1 %v6064_v62  ;;  %v6137_v60 = vld [vmem:[%s8493_s0 + $0x68c] ss:$164 sps:$4 sm:$0xff]   ;;  %v6140_v61 = vld [vmem:[%s8493_s0 + $0x694] ss:$164 sps:$4 sm:$0xff]  }
  0x31   :  { %v6135_v62 = vld [vmem:[%s8493_s0 + $0x688] ss:$164 sps:$4 sm:$0xff]  }
  0x33   :  { %2602 = vmatpush1.bf16.msra.mxu0 %v6059_v63  ;;  %2643 = vmatpush1.bf16.msra.mxu1 %v6062_v0  ;;  %v6138_v63 = vld [vmem:[%s8493_s0 + $0x690] ss:$164 sps:$4 sm:$0xff]  }
  0x34   :  { %2603 = vmatprep.subr.bf16.mxu0 %v6067_v1  ;;  %2644 = vmatprep.subr.bf16.mxu1 %v6070_v3  ;;  %v6143_v0 = vld [vmem:[%s8493_s0 + $0x7d4] ss:$164 sps:$4 sm:$0xff]   ;;  %v6146_v1 = vld [vmem:[%s8493_s0 + $0x7dc] ss:$164 sps:$4 sm:$0xff]  }
  0x35   :  { %v6141_v3 = vld [vmem:[%s8493_s0 + $0x7d0] ss:$164 sps:$4 sm:$0xff]  }
  0x37   :  { %2604 = vmatpush1.bf16.msra.mxu0 %v6065_v4  ;;  %2645 = vmatpush1.bf16.msra.mxu1 %v6068_v5  ;;  %v6144_v4 = vld [vmem:[%s8493_s0 + $0x7d8] ss:$164 sps:$4 sm:$0xff]  }
  0x38   :  { %2605 = vmatprep.subr.bf16.mxu0 %v6073_v6  ;;  %2646 = vmatprep.subr.bf16.mxu1 %v6076_v7  ;;  %v6149_v5 = vld [vmem:[%s8493_s0 + $0x91c] ss:$164 sps:$4 sm:$0xff]   ;;  %v6152_v6 = vld [vmem:[%s8493_s0 + $0x924] ss:$164 sps:$4 sm:$0xff]  }
  0x39   :  { %v398_v7 = vld [vmem:[%s8493_s0 + $0xba8] sm:$0x33] }
  0x3b   :  { %2606 = vmatpush1.bf16.msra.mxu0 %v6071_v8  ;;  %2647 = vmatpush1.bf16.msra.mxu1 %v6074_v9  ;;  %v399_v8 = vld [vmem:[%s8493_s0 + $0xbb0] sm:$0x33]  ;;  %v6147_v9 = vld [vmem:[%s8493_s0 + $0x918] ss:$164 sps:$4 sm:$0xff]  }
  0x3c   :  { %2607 = vmatprep.subr.bf16.mxu0 %v6079_v10  ;;  %2648 = vmatprep.subr.bf16.mxu1 %v6082_v11  ;;  %v6150_v10 = vld [vmem:[%s8493_s0 + $0x920] ss:$164 sps:$4 sm:$0xff]  }
  0x3d   :  { %v6155_v11 = vld [vmem:[%s8493_s0 + $0xa64] ss:$164 sps:$4 sm:$0xff]  }
  0x3f   :  { %2608 = vmatpush1.bf16.msra.mxu0 %v6077_v12  ;;  %2649 = vmatpush1.bf16.msra.mxu1 %v6080_v13  ;;  %v6158_v12 = vld [vmem:[%s8493_s0 + $0xa6c] ss:$164 sps:$4 sm:$0xff]   ;;  %v5858_v13 = vcombine.high %v398_v7, %v398_v7 }
  0x40   :  { %2609 = vmatprep.subr.bf16.mxu0 %v6085_v14  ;;  %2650 = vmatprep.subr.bf16.mxu1 %v6088_v15  ;;  %v5860_v14 = vcombine.high %v399_v8, %v399_v8  ;;  %v6153_v15 = vld [vmem:[%s8493_s0 + $0xa60] ss:$164 sps:$4 sm:$0xff]  }
  0x42   :  { %v2426_v20 = vand.u32 %v5860_v14, %v6881_v43  ;;  %v6232_v14 = vld [vmem:[%s8493_s0 + $0x194] ss:$164 sps:$4 sm:$0xff]  }
  0x43   :  { %2610 = vmatpush1.bf16.msra.mxu0 %v6083_v16  ;;  %2651 = vmatpush1.bf16.msra.mxu1 %v6086_v17  ;;  %v6156_v16 = vld [vmem:[%s8493_s0 + $0xa68] ss:$164 sps:$4 sm:$0xff]   ;;  %v5857_v17 = vcombine.low %v398_v7, %v398_v7 }
  0x44   :  { %2611 = vmatprep.subr.bf16.mxu0 %v6091_v18  ;;  %2652 = vmatprep.subr.bf16.mxu1 %v6094_v19  ;;  %v5859_v18 = vcombine.low %v399_v8, %v399_v8  ;;  %v2420_v19 = vand.u32 %v5858_v13, %v6881_v43  ;;  %v6229_v13 = vld [vmem:[%s8493_s0 + $0x18c] ss:$164 sps:$4 sm:$0xff]  }
  0x45   :  { %v2417_v21 = vand.u32 %v5857_v17, %v6881_v43  ;;  %v6235_v17 = vld [vmem:[%s8493_s0 + $0x2d4] ss:$164 sps:$4 sm:$0xff]  }
  0x47   :  { %2612 = vmatpush1.bf16.msra.mxu0 %v6089_v22  ;;  %2653 = vmatpush1.bf16.msra.mxu1 %v6092_v23  ;;  %v2423_v22 = vand.u32 %v5859_v18, %v6881_v43  ;;  %v6165_v23 = vld [vmem:[%s8493_s0 + $0x34] ss:$164 sps:$4 sm:$0xff]   ;;  %v6238_v18 = vld [vmem:[%s8493_s0 + $0x2dc] ss:$164 sps:$4 sm:$0xff]  }
  0x48   :  { %2613 = vmatprep.subr.bf16.mxu0 %v6097_v24  ;;  %2654 = vmatprep.subr.bf16.mxu1 %v6100_v25  ;;  %v6168_v24 = vld [vmem:[%s8493_s0 + $0x3c] ss:$164 sps:$4 sm:$0xff]   ;;  %v6163_v25 = vld [vmem:[%s8493_s0 + $0x30] ss:$164 sps:$4 sm:$0xff]  }
  0x4b   :  { %2614 = vmatpush1.bf16.msra.mxu0 %v6095_v28  ;;  %2655 = vmatpush1.bf16.msra.mxu1 %v6098_v29  ;;  %v6174_v28 = vld [vmem:[%s8493_s0 + $0x184] ss:$164 sps:$4 sm:$0xff]   ;;  %v6169_v29 = vld [vmem:[%s8493_s0 + $0x178] ss:$164 sps:$4 sm:$0xff]  }
  0x4c   :  { %2615 = vmatprep.subr.bf16.mxu0 %v2408_v32  ;;  %2656 = vmatprep.subr.bf16.mxu1 %v2414_v33  ;;  %v6180_v32 = vld [vmem:[%s8493_s0 + $0x2cc] ss:$164 sps:$4 sm:$0xff]   ;;  %v6175_v33 = vld [vmem:[%s8493_s0 + $0x2c0] ss:$164 sps:$4 sm:$0xff]  }
  0x4f   :  { %2616 = vmatpush1.bf16.msra.mxu0 %v2405_v35  ;;  %2657 = vmatpush1.bf16.msra.mxu1 %v2411_v36  ;;  %v6178_v35 = vld [vmem:[%s8493_s0 + $0x2c8] ss:$164 sps:$4 sm:$0xff]  }
  0x50   :  { %2679 = vmatprep.subr.bf16.mxu0 %v6107_v37  ;;  %2720 = vmatprep.subr.bf16.mxu1 %v6110_v38  ;;  %v6183_v36 = vld [vmem:[%s8493_s0 + $0x40c] ss:$164 sps:$4 sm:$0xff]   ;;  %v6186_v37 = vld [vmem:[%s8493_s0 + $0x414] ss:$164 sps:$4 sm:$0xff]  }
  0x51   :  { %v6181_v38 = vld [vmem:[%s8493_s0 + $0x408] ss:$164 sps:$4 sm:$0xff]  }
  0x52   :  { %2630 = vmatmul.mubr.bf16.vlgmr.msra.gmra.mrb[4].mxu0 %v6903_v54  ;;  %2671 = vmatmul.mubr.bf16.vlgmr.msra.gmra.mrb[4].mxu1 %v6903_v54 }
  0x53   :  { %2680 = vmatpush1.bf16.msra.mxu0 %v6105_v39  ;;  %2721 = vmatpush1.bf16.msra.mxu1 %v6108_v40  ;;  %v6184_v39 = vld [vmem:[%s8493_s0 + $0x410] ss:$164 sps:$4 sm:$0xff]  }
  0x54   :  { %2681 = vmatprep.subr.bf16.mxu0 %v6113_v42  ;;  %2722 = vmatprep.subr.bf16.mxu1 %v6116_v44  ;;  %v6189_v40 = vld [vmem:[%s8493_s0 + $0x554] ss:$164 sps:$4 sm:$0xff]  }
  0x55   :  { %5894 = vmatprep.mubr.msk.bf16.mxu0 %vm2384_vm2, %v6867_v34  ;;  %5895 = vmatprep.mubr.msk.bf16.mxu1 %vm2384_vm2, %v6867_v34  ;;  %v6187_v42 = vld [vmem:[%s8493_s0 + $0x550] ss:$164 sps:$4 sm:$0xff]   ;;  %v6190_v44 = vld [vmem:[%s8493_s0 + $0x558] ss:$164 sps:$4 sm:$0xff]  }
  0x57   :  { %2682 = vmatpush1.bf16.msra.mxu0 %v6111_v45  ;;  %2723 = vmatpush1.bf16.msra.mxu1 %v6114_v46  ;;  %v6195_v45 = vld [vmem:[%s8493_s0 + $0x69c] ss:$164 sps:$4 sm:$0xff]   ;;  %v6198_v46 = vld [vmem:[%s8493_s0 + $0x6a4] ss:$164 sps:$4 sm:$0xff]  }
  0x58   :  { %2683 = vmatprep.subr.bf16.mxu0 %v6119_v47  ;;  %2724 = vmatprep.subr.bf16.mxu1 %v6122_v48  ;;  %v6193_v47 = vld [vmem:[%s8493_s0 + $0x698] ss:$164 sps:$4 sm:$0xff]   ;;  %v6196_v48 = vld [vmem:[%s8493_s0 + $0x6a0] ss:$164 sps:$4 sm:$0xff]  }
  0x5b   :  { %2684 = vmatpush1.bf16.msra.mxu0 %v6117_v49  ;;  %2725 = vmatpush1.bf16.msra.mxu1 %v6120_v50  ;;  %v6201_v49 = vld [vmem:[%s8493_s0 + $0x7e4] ss:$164 sps:$4 sm:$0xff]   ;;  %v6204_v50 = vld [vmem:[%s8493_s0 + $0x7ec] ss:$164 sps:$4 sm:$0xff]  }
  0x5c   :  { %2685 = vmatprep.subr.bf16.mxu0 %v6125_v51  ;;  %2726 = vmatprep.subr.bf16.mxu1 %v6128_v52  ;;  %v6199_v51 = vld [vmem:[%s8493_s0 + $0x7e0] ss:$164 sps:$4 sm:$0xff]   ;;  %v6202_v52 = vld [vmem:[%s8493_s0 + $0x7e8] ss:$164 sps:$4 sm:$0xff]  }
  0x5f   :  { %2686 = vmatpush1.bf16.msra.mxu0 %v6123_v53  ;;  %2727 = vmatpush1.bf16.msra.mxu1 %v6126_v55  ;;  %v6207_v53 = vld [vmem:[%s8493_s0 + $0x92c] ss:$164 sps:$4 sm:$0xff]   ;;  %v6210_v55 = vld [vmem:[%s8493_s0 + $0x934] ss:$164 sps:$4 sm:$0xff]  }
  0x60   :  { %2687 = vmatprep.subr.bf16.mxu0 %v6131_v56  ;;  %2728 = vmatprep.subr.bf16.mxu1 %v6134_v57  ;;  %v400_v56 = vld [vmem:[%s8493_s0 + $0xbb8] sm:$0x33]  ;;  %v401_v57 = vld [vmem:[%s8493_s0 + $0xbc0] sm:$0x33] }
  0x63   :  { %2688 = vmatpush1.bf16.msra.mxu0 %v6129_v58  ;;  %2729 = vmatpush1.bf16.msra.mxu1 %v6132_v59  ;;  %v6205_v58 = vld [vmem:[%s8493_s0 + $0x928] ss:$164 sps:$4 sm:$0xff]   ;;  %v6208_v59 = vld [vmem:[%s8493_s0 + $0x930] ss:$164 sps:$4 sm:$0xff]  }
  0x64   :  { %2689 = vmatprep.subr.bf16.mxu0 %v6137_v60  ;;  %2730 = vmatprep.subr.bf16.mxu1 %v6140_v61  ;;  %v6213_v60 = vld [vmem:[%s8493_s0 + $0xa74] ss:$164 sps:$4 sm:$0xff]   ;;  %v6216_v61 = vld [vmem:[%s8493_s0 + $0xa7c] ss:$164 sps:$4 sm:$0xff]  }
  0x67   :  { %2690 = vmatpush1.bf16.msra.mxu0 %v6135_v62  ;;  %2731 = vmatpush1.bf16.msra.mxu1 %v6138_v63  ;;  %v5862_v62 = vcombine.high %v400_v56, %v400_v56  ;;  %v5864_v63 = vcombine.high %v401_v57, %v401_v57 }
  0x68   :  { %2691 = vmatprep.subr.bf16.mxu0 %v6143_v0  ;;  %2732 = vmatprep.subr.bf16.mxu1 %v6146_v1  ;;  %v6211_v0 = vld [vmem:[%s8493_s0 + $0xa70] ss:$164 sps:$4 sm:$0xff]   ;;  %v6214_v1 = vld [vmem:[%s8493_s0 + $0xa78] ss:$164 sps:$4 sm:$0xff]  }
  0x6b   :  { %2692 = vmatpush1.bf16.msra.mxu0 %v6141_v3  ;;  %2733 = vmatpush1.bf16.msra.mxu1 %v6144_v4  ;;  %v5861_v3 = vcombine.low %v400_v56, %v400_v56  ;;  %v5863_v4 = vcombine.low %v401_v57, %v401_v57 }
  0x6c   :  { %2693 = vmatprep.subr.bf16.mxu0 %v6149_v5  ;;  %2734 = vmatprep.subr.bf16.mxu1 %v6152_v6  ;;  %v2432_v5 = vand.u32 %v5862_v62, %v6881_v43  ;;  %v2438_v6 = vand.u32 %v5864_v63, %v6881_v43  ;;  %v6287_v62 = vld [vmem:[%s8493_s0 + $0x19c] ss:$164 sps:$4 sm:$0xff]   ;;  %v6290_v63 = vld [vmem:[%s8493_s0 + $0x1a4] ss:$164 sps:$4 sm:$0xff]  }
  0x6d   :  { %v2429_v7 = vand.u32 %v5861_v3, %v6881_v43  ;;  %v2435_v8 = vand.u32 %v5863_v4, %v6881_v43  ;;  %v6293_v3 = vld [vmem:[%s8493_s0 + $0x2e4] ss:$164 sps:$4 sm:$0xff]   ;;  %v6296_v4 = vld [vmem:[%s8493_s0 + $0x2ec] ss:$164 sps:$4 sm:$0xff]  }
  0x6f   :  { %2694 = vmatpush1.bf16.msra.mxu0 %v6147_v9  ;;  %2735 = vmatpush1.bf16.msra.mxu1 %v6150_v10  ;;  %v6223_v9 = vld [vmem:[%s8493_s0 + $0x44] ss:$164 sps:$4 sm:$0xff]   ;;  %v6226_v10 = vld [vmem:[%s8493_s0 + $0x4c] ss:$164 sps:$4 sm:$0xff]  }
  0x70   :  { %2695 = vmatprep.subr.bf16.mxu0 %v6155_v11  ;;  %2736 = vmatprep.subr.bf16.mxu1 %v6158_v12  ;;  %v6221_v11 = vld [vmem:[%s8493_s0 + $0x40] ss:$164 sps:$4 sm:$0xff]   ;;  %v6224_v12 = vld [vmem:[%s8493_s0 + $0x48] ss:$164 sps:$4 sm:$0xff]  }
  0x73   :  { %2696 = vmatpush1.bf16.msra.mxu0 %v6153_v15  ;;  %2737 = vmatpush1.bf16.msra.mxu1 %v6156_v16  ;;  %v6227_v15 = vld [vmem:[%s8493_s0 + $0x188] ss:$164 sps:$4 sm:$0xff]   ;;  %v6230_v16 = vld [vmem:[%s8493_s0 + $0x190] ss:$164 sps:$4 sm:$0xff]  }
  0x74   :  { %2697 = vmatprep.subr.bf16.mxu0 %v2420_v19  ;;  %2738 = vmatprep.subr.bf16.mxu1 %v2426_v20  ;;  %v6233_v19 = vld [vmem:[%s8493_s0 + $0x2d0] ss:$164 sps:$4 sm:$0xff]   ;;  %v6236_v20 = vld [vmem:[%s8493_s0 + $0x2d8] ss:$164 sps:$4 sm:$0xff]  }
  0x77   :  { %2698 = vmatpush1.bf16.msra.mxu0 %v2417_v21  ;;  %2739 = vmatpush1.bf16.msra.mxu1 %v2423_v22  ;;  %v6241_v21 = vld [vmem:[%s8493_s0 + $0x41c] ss:$164 sps:$4 sm:$0xff]   ;;  %v6244_v22 = vld [vmem:[%s8493_s0 + $0x424] ss:$164 sps:$4 sm:$0xff]  }
  0x78   :  { %2761 = vmatprep.subr.bf16.mxu0 %v6165_v23  ;;  %2802 = vmatprep.subr.bf16.mxu1 %v6168_v24  ;;  %v6239_v23 = vld [vmem:[%s8493_s0 + $0x418] ss:$164 sps:$4 sm:$0xff]   ;;  %v6242_v24 = vld [vmem:[%s8493_s0 + $0x420] ss:$164 sps:$4 sm:$0xff]  }
  0x7a   :  { %2712 = vmatmul.mubr.bf16.vlgmr.msra.gmra.mrb[8].mxu0 %v6903_v54  ;;  %2753 = vmatmul.mubr.bf16.vlgmr.msra.gmra.mrb[8].mxu1 %v6903_v54 }
  0x7b   :  { %2762 = vmatpush1.bf16.msra.mxu0 %v6163_v25  ;;  %2803 = vmatpush1.bf16.msra.mxu1 %v6166_v26  ;;  %v6247_v25 = vld [vmem:[%s8493_s0 + $0x564] ss:$164 sps:$4 sm:$0xff]   ;;  %v6250_v26 = vld [vmem:[%s8493_s0 + $0x56c] ss:$164 sps:$4 sm:$0xff]  }
  0x7c   :  { %2763 = vmatprep.subr.bf16.mxu0 %v6171_v27  ;;  %2804 = vmatprep.subr.bf16.mxu1 %v6174_v28  ;;  %v6245_v27 = vld [vmem:[%s8493_s0 + $0x560] ss:$164 sps:$4 sm:$0xff]   ;;  %v6248_v28 = vld [vmem:[%s8493_s0 + $0x568] ss:$164 sps:$4 sm:$0xff]  }
  0x7d   :  { %5896 = vmatprep.mubr.msk.bf16.mxu0 %vm2384_vm2, %v6867_v34  ;;  %5897 = vmatprep.mubr.msk.bf16.mxu1 %vm2384_vm2, %v6867_v34 }
  0x7f   :  { %2764 = vmatpush1.bf16.msra.mxu0 %v6169_v29  ;;  %2805 = vmatpush1.bf16.msra.mxu1 %v6172_v30  ;;  %v6253_v29 = vld [vmem:[%s8493_s0 + $0x6ac] ss:$164 sps:$4 sm:$0xff]   ;;  %v6256_v30 = vld [vmem:[%s8493_s0 + $0x6b4] ss:$164 sps:$4 sm:$0xff]  }
  0x80   :  { %2765 = vmatprep.subr.bf16.mxu0 %v6177_v31  ;;  %2806 = vmatprep.subr.bf16.mxu1 %v6180_v32  ;;  %v6251_v31 = vld [vmem:[%s8493_s0 + $0x6a8] ss:$164 sps:$4 sm:$0xff]   ;;  %v6254_v32 = vld [vmem:[%s8493_s0 + $0x6b0] ss:$164 sps:$4 sm:$0xff]  }
  0x83   :  { %2766 = vmatpush1.bf16.msra.mxu0 %v6175_v33  ;;  %2807 = vmatpush1.bf16.msra.mxu1 %v6178_v35  ;;  %v6259_v33 = vld [vmem:[%s8493_s0 + $0x7f4] ss:$164 sps:$4 sm:$0xff]   ;;  %v6262_v35 = vld [vmem:[%s8493_s0 + $0x7fc] ss:$164 sps:$4 sm:$0xff]  }
  0x84   :  { %2767 = vmatprep.subr.bf16.mxu0 %v6183_v36  ;;  %2808 = vmatprep.subr.bf16.mxu1 %v6186_v37  ;;  %v6257_v36 = vld [vmem:[%s8493_s0 + $0x7f0] ss:$164 sps:$4 sm:$0xff]   ;;  %v6260_v37 = vld [vmem:[%s8493_s0 + $0x7f8] ss:$164 sps:$4 sm:$0xff]  }
  0x87   :  { %2768 = vmatpush1.bf16.msra.mxu0 %v6181_v38  ;;  %2809 = vmatpush1.bf16.msra.mxu1 %v6184_v39  ;;  %v6265_v38 = vld [vmem:[%s8493_s0 + $0x93c] ss:$164 sps:$4 sm:$0xff]   ;;  %v6268_v39 = vld [vmem:[%s8493_s0 + $0x944] ss:$164 sps:$4 sm:$0xff]  }
  0x88   :  { %2769 = vmatprep.subr.bf16.mxu0 %v6189_v40  ;;  %2810 = vmatprep.subr.bf16.mxu1 %v6192_v41  ;;  %v402_v40 = vld [vmem:[%s8493_s0 + $0xbc8] sm:$0x33]  ;;  %v403_v41 = vld [vmem:[%s8493_s0 + $0xbd0] sm:$0x33] }
  0x8b   :  { %2770 = vmatpush1.bf16.msra.mxu0 %v6187_v42  ;;  %2811 = vmatpush1.bf16.msra.mxu1 %v6190_v44  ;;  %v6263_v42 = vld [vmem:[%s8493_s0 + $0x938] ss:$164 sps:$4 sm:$0xff]   ;;  %v6266_v44 = vld [vmem:[%s8493_s0 + $0x940] ss:$164 sps:$4 sm:$0xff]  }
  0x8c   :  { %2771 = vmatprep.subr.bf16.mxu0 %v6195_v45  ;;  %2812 = vmatprep.subr.bf16.mxu1 %v6198_v46  ;;  %v6271_v45 = vld [vmem:[%s8493_s0 + $0xa84] ss:$164 sps:$4 sm:$0xff]   ;;  %v6274_v46 = vld [vmem:[%s8493_s0 + $0xa8c] ss:$164 sps:$4 sm:$0xff]  }
  0x8f   :  { %2772 = vmatpush1.bf16.msra.mxu0 %v6193_v47  ;;  %2813 = vmatpush1.bf16.msra.mxu1 %v6196_v48  ;;  %v5866_v47 = vcombine.high %v402_v40, %v402_v40  ;;  %v5868_v48 = vcombine.high %v403_v41, %v403_v41 }
  0x90   :  { %2773 = vmatprep.subr.bf16.mxu0 %v6201_v49  ;;  %2814 = vmatprep.subr.bf16.mxu1 %v6204_v50  ;;  %v6269_v49 = vld [vmem:[%s8493_s0 + $0xa80] ss:$164 sps:$4 sm:$0xff]   ;;  %v6272_v50 = vld [vmem:[%s8493_s0 + $0xa88] ss:$164 sps:$4 sm:$0xff]  }
  0x93   :  { %2774 = vmatpush1.bf16.msra.mxu0 %v6199_v51  ;;  %2815 = vmatpush1.bf16.msra.mxu1 %v6202_v52  ;;  %v5865_v51 = vcombine.low %v402_v40, %v402_v40  ;;  %v5867_v52 = vcombine.low %v403_v41, %v403_v41 }
  0x94   :  { %2775 = vmatprep.subr.bf16.mxu0 %v6207_v53  ;;  %2816 = vmatprep.subr.bf16.mxu1 %v6210_v55  ;;  %v2444_v53 = vand.u32 %v5866_v47, %v6881_v43  ;;  %v2450_v55 = vand.u32 %v5868_v48, %v6881_v43  ;;  %v6345_v47 = vld [vmem:[%s8493_s0 + $0x1ac] ss:$164 sps:$4 sm:$0xff]   ;;  %v6348_v48 = vld [vmem:[%s8493_s0 + $0x1b4] ss:$164 sps:$4 sm:$0xff]  }
  0x95   :  { %v2441_v56 = vand.u32 %v5865_v51, %v6881_v43  ;;  %v2447_v57 = vand.u32 %v5867_v52, %v6881_v43  ;;  %v6351_v51 = vld [vmem:[%s8493_s0 + $0x2f4] ss:$164 sps:$4 sm:$0xff]   ;;  %v6354_v52 = vld [vmem:[%s8493_s0 + $0x2fc] ss:$164 sps:$4 sm:$0xff]  }
  0x97   :  { %2776 = vmatpush1.bf16.msra.mxu0 %v6205_v58  ;;  %2817 = vmatpush1.bf16.msra.mxu1 %v6208_v59  ;;  %v6281_v58 = vld [vmem:[%s8493_s0 + $0x54] ss:$164 sps:$4 sm:$0xff]   ;;  %v6284_v59 = vld [vmem:[%s8493_s0 + $0x5c] ss:$164 sps:$4 sm:$0xff]  }
  0x98   :  { %2777 = vmatprep.subr.bf16.mxu0 %v6213_v60  ;;  %2818 = vmatprep.subr.bf16.mxu1 %v6216_v61  ;;  %v6279_v60 = vld [vmem:[%s8493_s0 + $0x50] ss:$164 sps:$4 sm:$0xff]   ;;  %v6282_v61 = vld [vmem:[%s8493_s0 + $0x58] ss:$164 sps:$4 sm:$0xff]  }
  0x9b   :  { %2778 = vmatpush1.bf16.msra.mxu0 %v6211_v0  ;;  %2819 = vmatpush1.bf16.msra.mxu1 %v6214_v1  ;;  %v6285_v0 = vld [vmem:[%s8493_s0 + $0x198] ss:$164 sps:$4 sm:$0xff]   ;;  %v6288_v1 = vld [vmem:[%s8493_s0 + $0x1a0] ss:$164 sps:$4 sm:$0xff]  }
  0x9c   :  { %2779 = vmatprep.subr.bf16.mxu0 %v2432_v5  ;;  %2820 = vmatprep.subr.bf16.mxu1 %v2438_v6  ;;  %v6291_v5 = vld [vmem:[%s8493_s0 + $0x2e0] ss:$164 sps:$4 sm:$0xff]   ;;  %v6294_v6 = vld [vmem:[%s8493_s0 + $0x2e8] ss:$164 sps:$4 sm:$0xff]  }
  0x9f   :  { %2780 = vmatpush1.bf16.msra.mxu0 %v2429_v7  ;;  %2821 = vmatpush1.bf16.msra.mxu1 %v2435_v8  ;;  %v6299_v7 = vld [vmem:[%s8493_s0 + $0x42c] ss:$164 sps:$4 sm:$0xff]   ;;  %v6302_v8 = vld [vmem:[%s8493_s0 + $0x434] ss:$164 sps:$4 sm:$0xff]  }
  0xa0   :  { %2843 = vmatprep.subr.bf16.mxu0 %v6223_v9  ;;  %2884 = vmatprep.subr.bf16.mxu1 %v6226_v10  ;;  %v6297_v9 = vld [vmem:[%s8493_s0 + $0x428] ss:$164 sps:$4 sm:$0xff]   ;;  %v6300_v10 = vld [vmem:[%s8493_s0 + $0x430] ss:$164 sps:$4 sm:$0xff]  }
  0xa2   :  { %2794 = vmatmul.mubr.bf16.vlgmr.msra.gmra.mrb[12].mxu0 %v6903_v54  ;;  %2835 = vmatmul.mubr.bf16.vlgmr.msra.gmra.mrb[12].mxu1 %v6903_v54 }
  0xa3   :  { %2844 = vmatpush1.bf16.msra.mxu0 %v6221_v11  ;;  %2885 = vmatpush1.bf16.msra.mxu1 %v6224_v12  ;;  %v6305_v11 = vld [vmem:[%s8493_s0 + $0x574] ss:$164 sps:$4 sm:$0xff]   ;;  %v6308_v12 = vld [vmem:[%s8493_s0 + $0x57c] ss:$164 sps:$4 sm:$0xff]  }
  0xa4   :  { %2845 = vmatprep.subr.bf16.mxu0 %v6229_v13  ;;  %2886 = vmatprep.subr.bf16.mxu1 %v6232_v14  ;;  %v6303_v13 = vld [vmem:[%s8493_s0 + $0x570] ss:$164 sps:$4 sm:$0xff]   ;;  %v6306_v14 = vld [vmem:[%s8493_s0 + $0x578] ss:$164 sps:$4 sm:$0xff]  }
  0xa5   :  { %5898 = vmatprep.mubr.msk.bf16.mxu0 %vm2384_vm2, %v6867_v34  ;;  %5899 = vmatprep.mubr.msk.bf16.mxu1 %vm2384_vm2, %v6867_v34 }
  0xa7   :  { %2846 = vmatpush1.bf16.msra.mxu0 %v6227_v15  ;;  %2887 = vmatpush1.bf16.msra.mxu1 %v6230_v16  ;;  %v6311_v15 = vld [vmem:[%s8493_s0 + $0x6bc] ss:$164 sps:$4 sm:$0xff]   ;;  %v6314_v16 = vld [vmem:[%s8493_s0 + $0x6c4] ss:$164 sps:$4 sm:$0xff]  }
  0xa8   :  { %2847 = vmatprep.subr.bf16.mxu0 %v6235_v17  ;;  %2888 = vmatprep.subr.bf16.mxu1 %v6238_v18  ;;  %v6309_v17 = vld [vmem:[%s8493_s0 + $0x6b8] ss:$164 sps:$4 sm:$0xff]   ;;  %v6312_v18 = vld [vmem:[%s8493_s0 + $0x6c0] ss:$164 sps:$4 sm:$0xff]  }
  0xab   :  { %2848 = vmatpush1.bf16.msra.mxu0 %v6233_v19  ;;  %2889 = vmatpush1.bf16.msra.mxu1 %v6236_v20  ;;  %v6317_v19 = vld [vmem:[%s8493_s0 + $0x804] ss:$164 sps:$4 sm:$0xff]   ;;  %v6320_v20 = vld [vmem:[%s8493_s0 + $0x80c] ss:$164 sps:$4 sm:$0xff]  }
  0xac   :  { %2849 = vmatprep.subr.bf16.mxu0 %v6241_v21  ;;  %2890 = vmatprep.subr.bf16.mxu1 %v6244_v22  ;;  %v6315_v21 = vld [vmem:[%s8493_s0 + $0x800] ss:$164 sps:$4 sm:$0xff]   ;;  %v6318_v22 = vld [vmem:[%s8493_s0 + $0x808] ss:$164 sps:$4 sm:$0xff]  }
  0xaf   :  { %2850 = vmatpush1.bf16.msra.mxu0 %v6239_v23  ;;  %2891 = vmatpush1.bf16.msra.mxu1 %v6242_v24  ;;  %v6323_v23 = vld [vmem:[%s8493_s0 + $0x94c] ss:$164 sps:$4 sm:$0xff]   ;;  %v6326_v24 = vld [vmem:[%s8493_s0 + $0x954] ss:$164 sps:$4 sm:$0xff]  }
  0xb0   :  { %2851 = vmatprep.subr.bf16.mxu0 %v6247_v25  ;;  %2892 = vmatprep.subr.bf16.mxu1 %v6250_v26  ;;  %v6321_v25 = vld [vmem:[%s8493_s0 + $0x948] ss:$164 sps:$4 sm:$0xff]   ;;  %v6324_v26 = vld [vmem:[%s8493_s0 + $0x950] ss:$164 sps:$4 sm:$0xff]  }
  0xb3   :  { %2852 = vmatpush1.bf16.msra.mxu0 %v6245_v27  ;;  %2893 = vmatpush1.bf16.msra.mxu1 %v6248_v28  ;;  %v404_v27 = vld [vmem:[%s8493_s0 + $0xbd8] sm:$0x33]  ;;  %v405_v28 = vld [vmem:[%s8493_s0 + $0xbe0] sm:$0x33] }
  0xb4   :  { %2853 = vmatprep.subr.bf16.mxu0 %v6253_v29  ;;  %2894 = vmatprep.subr.bf16.mxu1 %v6256_v30  ;;  %v6329_v29 = vld [vmem:[%s8493_s0 + $0xa94] ss:$164 sps:$4 sm:$0xff]   ;;  %v6332_v30 = vld [vmem:[%s8493_s0 + $0xa9c] ss:$164 sps:$4 sm:$0xff]  }
  0xb7   :  { %2854 = vmatpush1.bf16.msra.mxu0 %v6251_v31  ;;  %2895 = vmatpush1.bf16.msra.mxu1 %v6254_v32  ;;  %v5870_v31 = vcombine.high %v404_v27, %v404_v27  ;;  %v5872_v32 = vcombine.high %v405_v28, %v405_v28 }
  0xb8   :  { %2855 = vmatprep.subr.bf16.mxu0 %v6259_v33  ;;  %2896 = vmatprep.subr.bf16.mxu1 %v6262_v35  ;;  %v6327_v33 = vld [vmem:[%s8493_s0 + $0xa90] ss:$164 sps:$4 sm:$0xff]   ;;  %v6330_v35 = vld [vmem:[%s8493_s0 + $0xa98] ss:$164 sps:$4 sm:$0xff]  }
  0xbb   :  { %2856 = vmatpush1.bf16.msra.mxu0 %v6257_v36  ;;  %2897 = vmatpush1.bf16.msra.mxu1 %v6260_v37  ;;  %v5869_v36 = vcombine.low %v404_v27, %v404_v27  ;;  %v5871_v37 = vcombine.low %v405_v28, %v405_v28  ;;  %v6385_v27 = vld [vmem:[%s8493_s0 + $0xaa0] ss:$164 sps:$4 sm:$0xff]   ;;  %v6388_v28 = vld [vmem:[%s8493_s0 + $0xaa8] ss:$164 sps:$4 sm:$0xff]  }
  0xbc   :  { %2857 = vmatprep.subr.bf16.mxu0 %v6265_v38  ;;  %2898 = vmatprep.subr.bf16.mxu1 %v6268_v39  ;;  %v2456_v38 = vand.u32 %v5870_v31, %v6881_v43  ;;  %v2462_v39 = vand.u32 %v5872_v32, %v6881_v43 }
  0xbd   :  { %v2453_v40 = vand.u32 %v5869_v36, %v6881_v43  ;;  %v2459_v41 = vand.u32 %v5871_v37, %v6881_v43  ;;  %v6397_v36 = vld [vmem:[%s8493_s0 + $0x74] ss:$164 sps:$4 sm:$0xff]   ;;  %v6400_v37 = vld [vmem:[%s8493_s0 + $0x7c] ss:$164 sps:$4 sm:$0xff]  }
  0xbf   :  { %2858 = vmatpush1.bf16.msra.mxu0 %v6263_v42  ;;  %2899 = vmatpush1.bf16.msra.mxu1 %v6266_v44  ;;  %v6339_v42 = vld [vmem:[%s8493_s0 + $0x64] ss:$164 sps:$4 sm:$0xff]   ;;  %v6342_v44 = vld [vmem:[%s8493_s0 + $0x6c] ss:$164 sps:$4 sm:$0xff]  }
  0xc0   :  { %2859 = vmatprep.subr.bf16.mxu0 %v6271_v45  ;;  %2900 = vmatprep.subr.bf16.mxu1 %v6274_v46  ;;  %v6337_v45 = vld [vmem:[%s8493_s0 + $0x60] ss:$164 sps:$4 sm:$0xff]   ;;  %v6340_v46 = vld [vmem:[%s8493_s0 + $0x68] ss:$164 sps:$4 sm:$0xff]  }
  0xc3   :  { %2860 = vmatpush1.bf16.msra.mxu0 %v6269_v49  ;;  %2901 = vmatpush1.bf16.msra.mxu1 %v6272_v50  ;;  %v6343_v49 = vld [vmem:[%s8493_s0 + $0x1a8] ss:$164 sps:$4 sm:$0xff]   ;;  %v6346_v50 = vld [vmem:[%s8493_s0 + $0x1b0] ss:$164 sps:$4 sm:$0xff]  }
  0xc4   :  { %2861 = vmatprep.subr.bf16.mxu0 %v2444_v53  ;;  %2902 = vmatprep.subr.bf16.mxu1 %v2450_v55  ;;  %v6349_v53 = vld [vmem:[%s8493_s0 + $0x2f0] ss:$164 sps:$4 sm:$0xff]   ;;  %v6352_v55 = vld [vmem:[%s8493_s0 + $0x2f8] ss:$164 sps:$4 sm:$0xff]  }
  0xc7   :  { %2862 = vmatpush1.bf16.msra.mxu0 %v2441_v56  ;;  %2903 = vmatpush1.bf16.msra.mxu1 %v2447_v57  ;;  %v6357_v56 = vld [vmem:[%s8493_s0 + $0x43c] ss:$164 sps:$4 sm:$0xff]   ;;  %v6360_v57 = vld [vmem:[%s8493_s0 + $0x444] ss:$164 sps:$4 sm:$0xff]  }
  0xc8   :  { %2925 = vmatprep.subr.bf16.mxu0 %v6281_v58  ;;  %2966 = vmatprep.subr.bf16.mxu1 %v6284_v59  ;;  %v6355_v58 = vld [vmem:[%s8493_s0 + $0x438] ss:$164 sps:$4 sm:$0xff]   ;;  %v6358_v59 = vld [vmem:[%s8493_s0 + $0x440] ss:$164 sps:$4 sm:$0xff]  }
  0xca   :  { %2876 = vmatmul.mubr.bf16.vlgmr.msra.gmra.mrb[16].mxu0 %v6903_v54  ;;  %2917 = vmatmul.mubr.bf16.vlgmr.msra.gmra.mrb[16].mxu1 %v6903_v54 }
  0xcb   :  { %2926 = vmatpush1.bf16.msra.mxu0 %v6279_v60  ;;  %2967 = vmatpush1.bf16.msra.mxu1 %v6282_v61  ;;  %v6363_v60 = vld [vmem:[%s8493_s0 + $0x584] ss:$164 sps:$4 sm:$0xff]   ;;  %v6366_v61 = vld [vmem:[%s8493_s0 + $0x58c] ss:$164 sps:$4 sm:$0xff]  }
  0xcc   :  { %2927 = vmatprep.subr.bf16.mxu0 %v6287_v62  ;;  %2968 = vmatprep.subr.bf16.mxu1 %v6290_v63 }
  0xcd   :  { %5900 = vmatprep.mubr.msk.bf16.mxu0 %vm2384_vm2, %v6867_v34  ;;  %5901 = vmatprep.mubr.msk.bf16.mxu1 %vm2384_vm2, %v6867_v34 }
  0xcf   :  { %2928 = vmatpush1.bf16.msra.mxu0 %v6285_v0  ;;  %2969 = vmatpush1.bf16.msra.mxu1 %v6288_v1 }
  0xd0   :  { %2929 = vmatprep.subr.bf16.mxu0 %v6293_v3  ;;  %2970 = vmatprep.subr.bf16.mxu1 %v6296_v4  ;;  %v6361_v4 = vld [vmem:[%s8493_s0 + $0x580] ss:$164 sps:$4 sm:$0xff]  }
  0xd3   :  { %2930 = vmatpush1.bf16.msra.mxu0 %v6291_v5  ;;  %2971 = vmatpush1.bf16.msra.mxu1 %v6294_v6  ;;  %v6364_v5 = vld [vmem:[%s8493_s0 + $0x588] ss:$164 sps:$4 sm:$0xff]  }
  0xd4   :  { %2931 = vmatprep.subr.bf16.mxu0 %v6299_v7  ;;  %2972 = vmatprep.subr.bf16.mxu1 %v6302_v8  ;;  %v6369_v8 = vld [vmem:[%s8493_s0 + $0x6cc] ss:$164 sps:$4 sm:$0xff]  }
  0xd7   :  { %2932 = vmatpush1.bf16.msra.mxu0 %v6297_v9  ;;  %2973 = vmatpush1.bf16.msra.mxu1 %v6300_v10  ;;  %v6372_v9 = vld [vmem:[%s8493_s0 + $0x6d4] ss:$164 sps:$4 sm:$0xff]  }
  0xd8   :  { %2933 = vmatprep.subr.bf16.mxu0 %v6305_v11  ;;  %2974 = vmatprep.subr.bf16.mxu1 %v6308_v12  ;;  %v6367_v11 = vld [vmem:[%s8493_s0 + $0x6c8] ss:$164 sps:$4 sm:$0xff]   ;;  %v6370_v12 = vld [vmem:[%s8493_s0 + $0x6d0] ss:$164 sps:$4 sm:$0xff]  }
  0xdb   :  { %2934 = vmatpush1.bf16.msra.mxu0 %v6303_v13  ;;  %2975 = vmatpush1.bf16.msra.mxu1 %v6306_v14  ;;  %v6375_v13 = vld [vmem:[%s8493_s0 + $0x814] ss:$164 sps:$4 sm:$0xff]   ;;  %v6378_v14 = vld [vmem:[%s8493_s0 + $0x81c] ss:$164 sps:$4 sm:$0xff]  }
  0xdc   :  { %2935 = vmatprep.subr.bf16.mxu0 %v6311_v15  ;;  %2976 = vmatprep.subr.bf16.mxu1 %v6314_v16  ;;  %v6373_v15 = vld [vmem:[%s8493_s0 + $0x810] ss:$164 sps:$4 sm:$0xff]   ;;  %v6376_v16 = vld [vmem:[%s8493_s0 + $0x818] ss:$164 sps:$4 sm:$0xff]  }
  0xdf   :  { %2936 = vmatpush1.bf16.msra.mxu0 %v6309_v17  ;;  %2977 = vmatpush1.bf16.msra.mxu1 %v6312_v18  ;;  %v6381_v17 = vld [vmem:[%s8493_s0 + $0x95c] ss:$164 sps:$4 sm:$0xff]   ;;  %v6384_v18 = vld [vmem:[%s8493_s0 + $0x964] ss:$164 sps:$4 sm:$0xff]  }
  0xe0   :  { %2937 = vmatprep.subr.bf16.mxu0 %v6317_v19  ;;  %2978 = vmatprep.subr.bf16.mxu1 %v6320_v20  ;;  %v406_v19 = vld [vmem:[%s8493_s0 + $0xbe8] sm:$0x33]  ;;  %v407_v20 = vld [vmem:[%s8493_s0 + $0xbf0] sm:$0x33] }
  0xe3   :  { %2938 = vmatpush1.bf16.msra.mxu0 %v6315_v21  ;;  %2979 = vmatpush1.bf16.msra.mxu1 %v6318_v22  ;;  %v6379_v21 = vld [vmem:[%s8493_s0 + $0x958] ss:$164 sps:$4 sm:$0xff]   ;;  %v6382_v22 = vld [vmem:[%s8493_s0 + $0x960] ss:$164 sps:$4 sm:$0xff]  }
  0xe4   :  { %2939 = vmatprep.subr.bf16.mxu0 %v6323_v23  ;;  %2980 = vmatprep.subr.bf16.mxu1 %v6326_v24  ;;  %v6387_v23 = vld [vmem:[%s8493_s0 + $0xaa4] ss:$164 sps:$4 sm:$0xff]   ;;  %v6390_v24 = vld [vmem:[%s8493_s0 + $0xaac] ss:$164 sps:$4 sm:$0xff]  }
  0xe7   :  { %2940 = vmatpush1.bf16.msra.mxu0 %v6321_v25  ;;  %2981 = vmatpush1.bf16.msra.mxu1 %v6324_v26  ;;  %v5874_v25 = vcombine.high %v406_v19, %v406_v19  ;;  %v5876_v26 = vcombine.high %v407_v20, %v407_v20 }
  0xe8   :  { %2941 = vmatprep.subr.bf16.mxu0 %v6329_v29  ;;  %2982 = vmatprep.subr.bf16.mxu1 %v6332_v30  ;;  %v5873_v29 = vcombine.low %v406_v19, %v406_v19  ;;  %v5875_v30 = vcombine.low %v407_v20, %v407_v20  ;;  %v6437_v19 = vld [vmem:[%s8493_s0 + $0x968] ss:$164 sps:$4 sm:$0xff]   ;;  %v6440_v20 = vld [vmem:[%s8493_s0 + $0x970] ss:$164 sps:$4 sm:$0xff]  }
  0xe9   :  { %v2468_v31 = vand.u32 %v5874_v25, %v6881_v43  ;;  %v2474_v32 = vand.u32 %v5876_v26, %v6881_v43  ;;  %v6443_v25 = vld [vmem:[%s8493_s0 + $0xab0] ss:$164 sps:$4 sm:$0xff]   ;;  %v6446_v26 = vld [vmem:[%s8493_s0 + $0xab8] ss:$164 sps:$4 sm:$0xff]  }
  0xeb   :  { %2942 = vmatpush1.bf16.msra.mxu0 %v6327_v33  ;;  %2983 = vmatpush1.bf16.msra.mxu1 %v6330_v35  ;;  %v2465_v33 = vand.u32 %v5873_v29, %v6881_v43  ;;  %v2471_v35 = vand.u32 %v5875_v30, %v6881_v43 }
  0xec   :  { %2943 = vmatprep.subr.bf16.mxu0 %v2456_v38  ;;  %2984 = vmatprep.subr.bf16.mxu1 %v2462_v39  ;;  %v6395_v38 = vld [vmem:[%s8493_s0 + $0x70] ss:$164 sps:$4 sm:$0xff]   ;;  %v6398_v39 = vld [vmem:[%s8493_s0 + $0x78] ss:$164 sps:$4 sm:$0xff]  }
  0xef   :  { %2944 = vmatpush1.bf16.msra.mxu0 %v2453_v40  ;;  %2985 = vmatpush1.bf16.msra.mxu1 %v2459_v41  ;;  %v6403_v40 = vld [vmem:[%s8493_s0 + $0x1bc] ss:$164 sps:$4 sm:$0xff]   ;;  %v6406_v41 = vld [vmem:[%s8493_s0 + $0x1c4] ss:$164 sps:$4 sm:$0xff]  }
  0xf0   :  { %3007 = vmatprep.subr.bf16.mxu0 %v6339_v42  ;;  %3048 = vmatprep.subr.bf16.mxu1 %v6342_v44  ;;  %v6401_v42 = vld [vmem:[%s8493_s0 + $0x1b8] ss:$164 sps:$4 sm:$0xff]   ;;  %v6404_v44 = vld [vmem:[%s8493_s0 + $0x1c0] ss:$164 sps:$4 sm:$0xff]  }
  0xf2   :  { %2958 = vmatmul.mubr.bf16.vlgmr.msra.gmra.mrb[20].mxu0 %v6903_v54  ;;  %2999 = vmatmul.mubr.bf16.vlgmr.msra.gmra.mrb[20].mxu1 %v6903_v54 }
  0xf3   :  { %3008 = vmatpush1.bf16.msra.mxu0 %v6337_v45  ;;  %3049 = vmatpush1.bf16.msra.mxu1 %v6340_v46  ;;  %v6409_v45 = vld [vmem:[%s8493_s0 + $0x304] ss:$164 sps:$4 sm:$0xff]   ;;  %v6412_v46 = vld [vmem:[%s8493_s0 + $0x30c] ss:$164 sps:$4 sm:$0xff]  }
  0xf4   :  { %3009 = vmatprep.subr.bf16.mxu0 %v6345_v47  ;;  %3050 = vmatprep.subr.bf16.mxu1 %v6348_v48  ;;  %v6407_v47 = vld [vmem:[%s8493_s0 + $0x300] ss:$164 sps:$4 sm:$0xff]   ;;  %v6410_v48 = vld [vmem:[%s8493_s0 + $0x308] ss:$164 sps:$4 sm:$0xff]  }
  0xf5   :  { %5902 = vmatprep.mubr.msk.bf16.mxu0 %vm2384_vm2, %v6867_v34  ;;  %5903 = vmatprep.mubr.msk.bf16.mxu1 %vm2384_vm2, %v6867_v34 }
  0xf7   :  { %3010 = vmatpush1.bf16.msra.mxu0 %v6343_v49  ;;  %3051 = vmatpush1.bf16.msra.mxu1 %v6346_v50  ;;  %v6415_v49 = vld [vmem:[%s8493_s0 + $0x44c] ss:$164 sps:$4 sm:$0xff]   ;;  %v6418_v50 = vld [vmem:[%s8493_s0 + $0x454] ss:$164 sps:$4 sm:$0xff]  }
  0xf8   :  { %3011 = vmatprep.subr.bf16.mxu0 %v6351_v51  ;;  %3052 = vmatprep.subr.bf16.mxu1 %v6354_v52  ;;  %v6413_v51 = vld [vmem:[%s8493_s0 + $0x448] ss:$164 sps:$4 sm:$0xff]   ;;  %v6416_v52 = vld [vmem:[%s8493_s0 + $0x450] ss:$164 sps:$4 sm:$0xff]  }
  0xfb   :  { %3012 = vmatpush1.bf16.msra.mxu0 %v6349_v53  ;;  %3053 = vmatpush1.bf16.msra.mxu1 %v6352_v55  ;;  %v6421_v53 = vld [vmem:[%s8493_s0 + $0x594] ss:$164 sps:$4 sm:$0xff]   ;;  %v6424_v55 = vld [vmem:[%s8493_s0 + $0x59c] ss:$164 sps:$4 sm:$0xff]  }
  0xfc   :  { %3013 = vmatprep.subr.bf16.mxu0 %v6357_v56  ;;  %3054 = vmatprep.subr.bf16.mxu1 %v6360_v57 }
  0xfd   :  { %v7582_v62 = vpop.f32.mrb[0].mxu0  ;;  %v7584_v63 = vpop.f32.mrb[0].mxu1 }
  0xfe   :  { %v7586_v0 = vpop.f32.mrb[1].mxu0  ;;  %v7588_v1 = vpop.f32.mrb[1].mxu1 }
  0xff   :  { %v2553_v3 = vpop.f32.mrb[2].mxu0  ;;  %3014 = vmatpush1.bf16.msra.mxu0 %v6355_v58  ;;  %3055 = vmatpush1.bf16.msra.mxu1 %v6358_v59  ;;  %v2594_v6 = vpop.f32.mrb[2].mxu1 }
 0x100   :  { %v2554_v7 = vpop.f32.mrb[3].mxu0  ;;  %3015 = vmatprep.subr.bf16.mxu0 %v6363_v60  ;;  %3056 = vmatprep.subr.bf16.mxu1 %v6366_v61  ;;  %v2595_v10 = vpop.f32.mrb[3].mxu1  ;;  %v6419_v61 = vld [vmem:[%s8493_s0 + $0x590] ss:$164 sps:$4 sm:$0xff]   ;;  %v6422_v3 = vld [vmem:[%s8493_s0 + $0x598] ss:$164 sps:$4 sm:$0xff]  }
 0x101   :  { %v6427_v6 = vld [vmem:[%s8493_s0 + $0x6dc] ss:$164 sps:$4 sm:$0xff]   ;;  %v6430_v7 = vld [vmem:[%s8493_s0 + $0x6e4] ss:$164 sps:$4 sm:$0xff]  }
 0x102   :  { %v6428_v10 = vld [vmem:[%s8493_s0 + $0x6e0] ss:$164 sps:$4 sm:$0xff]  }
 0x103   :  { %3016 = vmatpush1.bf16.msra.mxu0 %v6361_v4  ;;  %3057 = vmatpush1.bf16.msra.mxu1 %v6364_v5 }
 0x104   :  { %3017 = vmatprep.subr.bf16.mxu0 %v6369_v8  ;;  %3058 = vmatprep.subr.bf16.mxu1 %v6372_v9  ;;  %v6425_v9 = vld [vmem:[%s8493_s0 + $0x6d8] ss:$164 sps:$4 sm:$0xff]  }
 0x107   :  { %3018 = vmatpush1.bf16.msra.mxu0 %v6367_v11  ;;  %3059 = vmatpush1.bf16.msra.mxu1 %v6370_v12  ;;  %v6433_v11 = vld [vmem:[%s8493_s0 + $0x824] ss:$164 sps:$4 sm:$0xff]   ;;  %v6436_v12 = vld [vmem:[%s8493_s0 + $0x82c] ss:$164 sps:$4 sm:$0xff]  }
 0x108   :  { %3019 = vmatprep.subr.bf16.mxu0 %v6375_v13  ;;  %3060 = vmatprep.subr.bf16.mxu1 %v6378_v14  ;;  %v6431_v13 = vld [vmem:[%s8493_s0 + $0x820] ss:$164 sps:$4 sm:$0xff]   ;;  %v6434_v14 = vld [vmem:[%s8493_s0 + $0x828] ss:$164 sps:$4 sm:$0xff]  }
 0x10b   :  { %3020 = vmatpush1.bf16.msra.mxu0 %v6373_v15  ;;  %3061 = vmatpush1.bf16.msra.mxu1 %v6376_v16  ;;  %v6439_v15 = vld [vmem:[%s8493_s0 + $0x96c] ss:$164 sps:$4 sm:$0xff]   ;;  %v6442_v16 = vld [vmem:[%s8493_s0 + $0x974] ss:$164 sps:$4 sm:$0xff]  }
 0x10c   :  { %3021 = vmatprep.subr.bf16.mxu0 %v6381_v17  ;;  %3062 = vmatprep.subr.bf16.mxu1 %v6384_v18  ;;  %v408_v17 = vld [vmem:[%s8493_s0 + $0xbf8] sm:$0x33]  ;;  %v409_v18 = vld [vmem:[%s8493_s0 + $0xc00] sm:$0x33] }
 0x10f   :  { %3022 = vmatpush1.bf16.msra.mxu0 %v6379_v21  ;;  %3063 = vmatpush1.bf16.msra.mxu1 %v6382_v22  ;;  %v6445_v21 = vld [vmem:[%s8493_s0 + $0xab4] ss:$164 sps:$4 sm:$0xff]   ;;  %v6448_v22 = vld [vmem:[%s8493_s0 + $0xabc] ss:$164 sps:$4 sm:$0xff]  }
 0x110   :  { %3023 = vmatprep.subr.bf16.mxu0 %v6387_v23  ;;  %3064 = vmatprep.subr.bf16.mxu1 %v6390_v24  ;;  %v5878_v23 = vcombine.high %v408_v17, %v408_v17  ;;  %v5880_v24 = vcombine.high %v409_v18, %v409_v18 }
 0x112   :  { %v2480_v29 = vand.u32 %v5878_v23, %v6881_v43  ;;  %v2486_v30 = vand.u32 %v5880_v24, %v6881_v43  ;;  %v6503_v23 = vld [vmem:[%s8493_s0 + $0xac4] ss:$164 sps:$4 sm:$0xff]   ;;  %v6506_v24 = vld [vmem:[%s8493_s0 + $0xacc] ss:$164 sps:$4 sm:$0xff]  }
 0x113   :  { %3024 = vmatpush1.bf16.msra.mxu0 %v6385_v27  ;;  %3065 = vmatpush1.bf16.msra.mxu1 %v6388_v28  ;;  %v5877_v27 = vcombine.low %v408_v17, %v408_v17  ;;  %v5879_v28 = vcombine.low %v409_v18, %v409_v18  ;;  %v6497_v17 = vld [vmem:[%s8493_s0 + $0x97c] ss:$164 sps:$4 sm:$0xff]   ;;  %v6500_v18 = vld [vmem:[%s8493_s0 + $0x984] ss:$164 sps:$4 sm:$0xff]  }
 0x114   :  { %3025 = vmatprep.subr.bf16.mxu0 %v2468_v31  ;;  %3066 = vmatprep.subr.bf16.mxu1 %v2474_v32 }
 0x115   :  { %v2477_v31 = vand.u32 %v5877_v27, %v6881_v43  ;;  %v2483_v32 = vand.u32 %v5879_v28, %v6881_v43  ;;  %v6501_v27 = vld [vmem:[%s8493_s0 + $0xac0] ss:$164 sps:$4 sm:$0xff]   ;;  %v6504_v28 = vld [vmem:[%s8493_s0 + $0xac8] ss:$164 sps:$4 sm:$0xff]  }
 0x117   :  { %3026 = vmatpush1.bf16.msra.mxu0 %v2465_v33  ;;  %3067 = vmatpush1.bf16.msra.mxu1 %v2471_v35  ;;  %v6455_v33 = vld [vmem:[%s8493_s0 + $0x84] ss:$164 sps:$4 sm:$0xff]   ;;  %v6458_v35 = vld [vmem:[%s8493_s0 + $0x8c] ss:$164 sps:$4 sm:$0xff]  }
 0x118   :  { %3089 = vmatprep.subr.bf16.mxu0 %v6397_v36  ;;  %3130 = vmatprep.subr.bf16.mxu1 %v6400_v37  ;;  %v6453_v36 = vld [vmem:[%s8493_s0 + $0x80] ss:$164 sps:$4 sm:$0xff]   ;;  %v6456_v37 = vld [vmem:[%s8493_s0 + $0x88] ss:$164 sps:$4 sm:$0xff]  }
 0x11a   :  { %3040 = vmatmul.mubr.bf16.vlgmr.msra.gmra.mrb[24].mxu0 %v6903_v54  ;;  %3081 = vmatmul.mubr.bf16.vlgmr.msra.gmra.mrb[24].mxu1 %v6903_v54 }
 0x11b   :  { %3090 = vmatpush1.bf16.msra.mxu0 %v6395_v38  ;;  %3131 = vmatpush1.bf16.msra.mxu1 %v6398_v39  ;;  %v6461_v38 = vld [vmem:[%s8493_s0 + $0x1cc] ss:$164 sps:$4 sm:$0xff]   ;;  %v6464_v39 = vld [vmem:[%s8493_s0 + $0x1d4] ss:$164 sps:$4 sm:$0xff]  }
 0x11c   :  { %3091 = vmatprep.subr.bf16.mxu0 %v6403_v40  ;;  %3132 = vmatprep.subr.bf16.mxu1 %v6406_v41  ;;  %v6459_v40 = vld [vmem:[%s8493_s0 + $0x1c8] ss:$164 sps:$4 sm:$0xff]   ;;  %v6462_v41 = vld [vmem:[%s8493_s0 + $0x1d0] ss:$164 sps:$4 sm:$0xff]  }
 0x11d   :  { %5904 = vmatprep.mubr.msk.bf16.mxu0 %vm2384_vm2, %v6867_v34  ;;  %5905 = vmatprep.mubr.msk.bf16.mxu1 %vm2384_vm2, %v6867_v34 }
 0x11f   :  { %3092 = vmatpush1.bf16.msra.mxu0 %v6401_v42  ;;  %3133 = vmatpush1.bf16.msra.mxu1 %v6404_v44  ;;  %v6467_v42 = vld [vmem:[%s8493_s0 + $0x314] ss:$164 sps:$4 sm:$0xff]   ;;  %v6470_v44 = vld [vmem:[%s8493_s0 + $0x31c] ss:$164 sps:$4 sm:$0xff]  }
 0x120   :  { %3093 = vmatprep.subr.bf16.mxu0 %v6409_v45  ;;  %3134 = vmatprep.subr.bf16.mxu1 %v6412_v46  ;;  %v6465_v45 = vld [vmem:[%s8493_s0 + $0x310] ss:$164 sps:$4 sm:$0xff]   ;;  %v6468_v46 = vld [vmem:[%s8493_s0 + $0x318] ss:$164 sps:$4 sm:$0xff]  }
 0x123   :  { %3094 = vmatpush1.bf16.msra.mxu0 %v6407_v47  ;;  %3135 = vmatpush1.bf16.msra.mxu1 %v6410_v48  ;;  %v6473_v47 = vld [vmem:[%s8493_s0 + $0x45c] ss:$164 sps:$4 sm:$0xff]   ;;  %v6476_v48 = vld [vmem:[%s8493_s0 + $0x464] ss:$164 sps:$4 sm:$0xff]  }
 0x124   :  { %3095 = vmatprep.subr.bf16.mxu0 %v6415_v49  ;;  %3136 = vmatprep.subr.bf16.mxu1 %v6418_v50  ;;  %v6471_v49 = vld [vmem:[%s8493_s0 + $0x458] ss:$164 sps:$4 sm:$0xff]   ;;  %v6474_v50 = vld [vmem:[%s8493_s0 + $0x460] ss:$164 sps:$4 sm:$0xff]  }
 0x125   :  { %v7714_v56 = vpop.f32.mrb[4].mxu0  ;;  %v7716_v57 = vpop.f32.mrb[4].mxu1 }
 0x126   :  { %v7718_v58 = vpop.f32.mrb[5].mxu0  ;;  %v7720_v59 = vpop.f32.mrb[5].mxu1 }
 0x127   :  { %v2635_v60 = vpop.f32.mrb[6].mxu0  ;;  %3096 = vmatpush1.bf16.msra.mxu0 %v6413_v51  ;;  %3137 = vmatpush1.bf16.msra.mxu1 %v6416_v52  ;;  %v2676_v4 = vpop.f32.mrb[6].mxu1  ;;  %v6479_v51 = vld [vmem:[%s8493_s0 + $0x5a4] ss:$164 sps:$4 sm:$0xff]   ;;  %v6482_v52 = vld [vmem:[%s8493_s0 + $0x5ac] ss:$164 sps:$4 sm:$0xff]  }
 0x128   :  { %v2636_v5 = vpop.f32.mrb[7].mxu0  ;;  %3097 = vmatprep.subr.bf16.mxu0 %v6421_v53  ;;  %3138 = vmatprep.subr.bf16.mxu1 %v6424_v55  ;;  %v2677_v8 = vpop.f32.mrb[7].mxu1  ;;  %v6477_v4 = vld [vmem:[%s8493_s0 + $0x5a0] ss:$164 sps:$4 sm:$0xff]  }
 0x129   :  { %v6480_v5 = vld [vmem:[%s8493_s0 + $0x5a8] ss:$164 sps:$4 sm:$0xff]  }
 0x12a   :  { %v6485_v8 = vld [vmem:[%s8493_s0 + $0x6ec] ss:$164 sps:$4 sm:$0xff]  }
 0x12b   :  { %3098 = vmatpush1.bf16.msra.mxu0 %v6419_v61  ;;  %3139 = vmatpush1.bf16.msra.mxu1 %v6422_v3 }
 0x12c   :  { %3099 = vmatprep.subr.bf16.mxu0 %v6427_v6  ;;  %3140 = vmatprep.subr.bf16.mxu1 %v6430_v7 }
 0x12f   :  { %3100 = vmatpush1.bf16.msra.mxu0 %v6425_v9  ;;  %3141 = vmatpush1.bf16.msra.mxu1 %v6428_v10  ;;  %v6488_v9 = vld [vmem:[%s8493_s0 + $0x6f4] ss:$164 sps:$4 sm:$0xff]  }
 0x130   :  { %3101 = vmatprep.subr.bf16.mxu0 %v6433_v11  ;;  %3142 = vmatprep.subr.bf16.mxu1 %v6436_v12  ;;  %v6483_v11 = vld [vmem:[%s8493_s0 + $0x6e8] ss:$164 sps:$4 sm:$0xff]   ;;  %v6486_v12 = vld [vmem:[%s8493_s0 + $0x6f0] ss:$164 sps:$4 sm:$0xff]  }
 0x133   :  { %3102 = vmatpush1.bf16.msra.mxu0 %v6431_v13  ;;  %3143 = vmatpush1.bf16.msra.mxu1 %v6434_v14  ;;  %v6491_v13 = vld [vmem:[%s8493_s0 + $0x834] ss:$164 sps:$4 sm:$0xff]   ;;  %v6494_v14 = vld [vmem:[%s8493_s0 + $0x83c] ss:$164 sps:$4 sm:$0xff]  }
 0x134   :  { %3103 = vmatprep.subr.bf16.mxu0 %v6439_v15  ;;  %3144 = vmatprep.subr.bf16.mxu1 %v6442_v16  ;;  %v6489_v15 = vld [vmem:[%s8493_s0 + $0x830] ss:$164 sps:$4 sm:$0xff]   ;;  %v6492_v16 = vld [vmem:[%s8493_s0 + $0x838] ss:$164 sps:$4 sm:$0xff]  }
 0x137   :  { %3104 = vmatpush1.bf16.msra.mxu0 %v6437_v19  ;;  %3145 = vmatpush1.bf16.msra.mxu1 %v6440_v20  ;;  %v410_v19 = vld [vmem:[%s8493_s0 + $0xc08] sm:$0x33]  ;;  %v411_v20 = vld [vmem:[%s8493_s0 + $0xc10] sm:$0x33] }
 0x138   :  { %3105 = vmatprep.subr.bf16.mxu0 %v6445_v21  ;;  %3146 = vmatprep.subr.bf16.mxu1 %v6448_v22  ;;  %v6495_v21 = vld [vmem:[%s8493_s0 + $0x978] ss:$164 sps:$4 sm:$0xff]   ;;  %v6498_v22 = vld [vmem:[%s8493_s0 + $0x980] ss:$164 sps:$4 sm:$0xff]  }
 0x13b   :  { %3106 = vmatpush1.bf16.msra.mxu0 %v6443_v25  ;;  %3147 = vmatpush1.bf16.msra.mxu1 %v6446_v26  ;;  %v5882_v25 = vcombine.high %v410_v19, %v410_v19  ;;  %v5884_v26 = vcombine.high %v411_v20, %v411_v20 }
 0x13c   :  { %3107 = vmatprep.subr.bf16.mxu0 %v2480_v29  ;;  %3148 = vmatprep.subr.bf16.mxu1 %v2486_v30  ;;  %v5881_v29 = vcombine.low %v410_v19, %v410_v19  ;;  %v5883_v30 = vcombine.low %v411_v20, %v411_v20  ;;  %v6549_v19 = vld [vmem:[%s8493_s0 + $0x844] ss:$164 sps:$4 sm:$0xff]   ;;  %v6552_v20 = vld [vmem:[%s8493_s0 + $0x84c] ss:$164 sps:$4 sm:$0xff]  }
 0x13f   :  { %3108 = vmatpush1.bf16.msra.mxu0 %v2477_v31  ;;  %3149 = vmatpush1.bf16.msra.mxu1 %v2483_v32  ;;  %v2492_v31 = vand.u32 %v5882_v25, %v6881_v43  ;;  %v2498_v32 = vand.u32 %v5884_v26, %v6881_v43  ;;  %v412_v25 = vld [vmem:[%s8493_s0 + $0xc18] sm:$0x33]  ;;  %v413_v26 = vld [vmem:[%s8493_s0 + $0xc20] sm:$0x33] }
 0x140   :  { %3171 = vmatprep.subr.bf16.mxu0 %v6455_v33  ;;  %3212 = vmatprep.subr.bf16.mxu1 %v6458_v35  ;;  %v2489_v33 = vand.u32 %v5881_v29, %v6881_v43  ;;  %v2495_v35 = vand.u32 %v5883_v30, %v6881_v43  ;;  %v6556_v29 = vld [vmem:[%s8493_s0 + $0x990] ss:$164 sps:$4 sm:$0xff]  }
 0x141   :  { %v6561_v30 = vld [vmem:[%s8493_s0 + $0xad4] ss:$164 sps:$4 sm:$0xff]  }
 0x142   :  { %3122 = vmatmul.mubr.bf16.vlgmr.msra.gmra.mrb[28].mxu0 %v6903_v54  ;;  %3163 = vmatmul.mubr.bf16.vlgmr.msra.gmra.mrb[28].mxu1 %v6903_v54 }
 0x143   :  { %3172 = vmatpush1.bf16.msra.mxu0 %v6453_v36  ;;  %3213 = vmatpush1.bf16.msra.mxu1 %v6456_v37  ;;  %v6513_v36 = vld [vmem:[%s8493_s0 + $0x94] ss:$164 sps:$4 sm:$0xff]   ;;  %v6516_v37 = vld [vmem:[%s8493_s0 + $0x9c] ss:$164 sps:$4 sm:$0xff]  }
 0x144   :  { %3173 = vmatprep.subr.bf16.mxu0 %v6461_v38  ;;  %3214 = vmatprep.subr.bf16.mxu1 %v6464_v39  ;;  %v6511_v38 = vld [vmem:[%s8493_s0 + $0x90] ss:$164 sps:$4 sm:$0xff]   ;;  %v6514_v39 = vld [vmem:[%s8493_s0 + $0x98] ss:$164 sps:$4 sm:$0xff]  }
 0x145   :  { %5906 = vmatprep.mubr.msk.bf16.mxu0 %vm2384_vm2, %v6867_v34  ;;  %5907 = vmatprep.mubr.msk.bf16.mxu1 %vm2384_vm2, %v6867_v34 }
 0x147   :  { %3174 = vmatpush1.bf16.msra.mxu0 %v6459_v40  ;;  %3215 = vmatpush1.bf16.msra.mxu1 %v6462_v41  ;;  %v6519_v40 = vld [vmem:[%s8493_s0 + $0x1dc] ss:$164 sps:$4 sm:$0xff]   ;;  %v6522_v41 = vld [vmem:[%s8493_s0 + $0x1e4] ss:$164 sps:$4 sm:$0xff]  }
 0x148   :  { %3175 = vmatprep.subr.bf16.mxu0 %v6467_v42  ;;  %3216 = vmatprep.subr.bf16.mxu1 %v6470_v44  ;;  %v6517_v42 = vld [vmem:[%s8493_s0 + $0x1d8] ss:$164 sps:$4 sm:$0xff]   ;;  %v6520_v44 = vld [vmem:[%s8493_s0 + $0x1e0] ss:$164 sps:$4 sm:$0xff]  }
 0x14b   :  { %3176 = vmatpush1.bf16.msra.mxu0 %v6465_v45  ;;  %3217 = vmatpush1.bf16.msra.mxu1 %v6468_v46  ;;  %v6525_v45 = vld [vmem:[%s8493_s0 + $0x324] ss:$164 sps:$4 sm:$0xff]   ;;  %v6528_v46 = vld [vmem:[%s8493_s0 + $0x32c] ss:$164 sps:$4 sm:$0xff]  }
 0x14c   :  { %3177 = vmatprep.subr.bf16.mxu0 %v6473_v47  ;;  %3218 = vmatprep.subr.bf16.mxu1 %v6476_v48  ;;  %v6523_v47 = vld [vmem:[%s8493_s0 + $0x320] ss:$164 sps:$4 sm:$0xff]   ;;  %v6526_v48 = vld [vmem:[%s8493_s0 + $0x328] ss:$164 sps:$4 sm:$0xff]  }
 0x14d   :  { %v7846_v53 = vpop.f32.mrb[8].mxu0  ;;  %v7848_v55 = vpop.f32.mrb[8].mxu1 }
 0x14e   :  { %v7850_v60 = vpop.f32.mrb[9].mxu0  ;;  %v7852_v61 = vpop.f32.mrb[9].mxu1 }
 0x14f   :  { %v2717_v3 = vpop.f32.mrb[10].mxu0  ;;  %3178 = vmatpush1.bf16.msra.mxu0 %v6471_v49  ;;  %3219 = vmatpush1.bf16.msra.mxu1 %v6474_v50  ;;  %v2758_v6 = vpop.f32.mrb[10].mxu1  ;;  %v6531_v49 = vld [vmem:[%s8493_s0 + $0x46c] ss:$164 sps:$4 sm:$0xff]   ;;  %v6534_v50 = vld [vmem:[%s8493_s0 + $0x474] ss:$164 sps:$4 sm:$0xff]  }
 0x150   :  { %v2718_v7 = vpop.f32.mrb[11].mxu0  ;;  %3179 = vmatprep.subr.bf16.mxu0 %v6479_v51  ;;  %3220 = vmatprep.subr.bf16.mxu1 %v6482_v52  ;;  %v2759_v10 = vpop.f32.mrb[11].mxu1  ;;  %v6529_v51 = vld [vmem:[%s8493_s0 + $0x468] ss:$164 sps:$4 sm:$0xff]   ;;  %v6532_v52 = vld [vmem:[%s8493_s0 + $0x470] ss:$164 sps:$4 sm:$0xff]  }
 0x151   :  { %v6537_v3 = vld [vmem:[%s8493_s0 + $0x5b4] ss:$164 sps:$4 sm:$0xff]  }
 0x152   :  { %v6535_v10 = vld [vmem:[%s8493_s0 + $0x5b0] ss:$164 sps:$4 sm:$0xff]  }
 0x153   :  { %3180 = vmatpush1.bf16.msra.mxu0 %v6477_v4  ;;  %3221 = vmatpush1.bf16.msra.mxu1 %v6480_v5  ;;  %v6540_v4 = vld [vmem:[%s8493_s0 + $0x5bc] ss:$164 sps:$4 sm:$0xff]  }
 0x154   :  { %3181 = vmatprep.subr.bf16.mxu0 %v6485_v8  ;;  %3222 = vmatprep.subr.bf16.mxu1 %v6488_v9 }
 0x157   :  { %3182 = vmatpush1.bf16.msra.mxu0 %v6483_v11  ;;  %3223 = vmatpush1.bf16.msra.mxu1 %v6486_v12  ;;  %v6538_v11 = vld [vmem:[%s8493_s0 + $0x5b8] ss:$164 sps:$4 sm:$0xff]  }
 0x158   :  { %3183 = vmatprep.subr.bf16.mxu0 %v6491_v13  ;;  %3224 = vmatprep.subr.bf16.mxu1 %v6494_v14  ;;  %v6543_v14 = vld [vmem:[%s8493_s0 + $0x6fc] ss:$164 sps:$4 sm:$0xff]  }
 0x15b   :  { %3184 = vmatpush1.bf16.msra.mxu0 %v6489_v15  ;;  %3225 = vmatpush1.bf16.msra.mxu1 %v6492_v16  ;;  %v6546_v15 = vld [vmem:[%s8493_s0 + $0x704] ss:$164 sps:$4 sm:$0xff]  }
 0x15c   :  { %3185 = vmatprep.subr.bf16.mxu0 %v6497_v17  ;;  %3226 = vmatprep.subr.bf16.mxu1 %v6500_v18  ;;  %v6541_v17 = vld [vmem:[%s8493_s0 + $0x6f8] ss:$164 sps:$4 sm:$0xff]   ;;  %v6544_v18 = vld [vmem:[%s8493_s0 + $0x700] ss:$164 sps:$4 sm:$0xff]  }
 0x15f   :  { %3186 = vmatpush1.bf16.msra.mxu0 %v6495_v21  ;;  %3227 = vmatpush1.bf16.msra.mxu1 %v6498_v22  ;;  %v6547_v21 = vld [vmem:[%s8493_s0 + $0x840] ss:$164 sps:$4 sm:$0xff]   ;;  %v6550_v22 = vld [vmem:[%s8493_s0 + $0x848] ss:$164 sps:$4 sm:$0xff]  }
 0x160   :  { %3187 = vmatprep.subr.bf16.mxu0 %v6503_v23  ;;  %3228 = vmatprep.subr.bf16.mxu1 %v6506_v24  ;;  %v6555_v23 = vld [vmem:[%s8493_s0 + $0x98c] ss:$164 sps:$4 sm:$0xff]   ;;  %v6558_v24 = vld [vmem:[%s8493_s0 + $0x994] ss:$164 sps:$4 sm:$0xff]  }
 0x163   :  { %3188 = vmatpush1.bf16.msra.mxu0 %v6501_v27  ;;  %3229 = vmatpush1.bf16.msra.mxu1 %v6504_v28  ;;  %v8028_v27 = vpop.permute.xlu0 %418  ;;  %v6553_v28 = vld [vmem:[%s8493_s0 + $0x988] ss:$164 sps:$4 sm:$0xff]  }
 0x164   :  { %3189 = vmatprep.subr.bf16.mxu0 %v2492_v31  ;;  %3230 = vmatprep.subr.bf16.mxu1 %v2498_v32  ;;  %v6564_v31 = vld [vmem:[%s8493_s0 + $0xadc] ss:$164 sps:$4 sm:$0xff]   ;;  %v5886_v32 = vcombine.high %v412_v25, %v412_v25 }
 0x167   :  { %3190 = vmatpush1.bf16.msra.mxu0 %v2489_v33  ;;  %3231 = vmatpush1.bf16.msra.mxu1 %v2495_v35  ;;  %v5888_v33 = vcombine.high %v413_v26, %v413_v26  ;;  %v3457_v35 = vlaneseq }
 0x168   :  { %3253 = vmatprep.subr.bf16.mxu0 %v6513_v36  ;;  %3294 = vmatprep.subr.bf16.mxu1 %v6516_v37  ;;  %v2552_v36 = vadd.f32 %v7586_v0, %v8028_v27  ;;  %v6559_v37 = vld [vmem:[%s8493_s0 + $0xad0] ss:$164 sps:$4 sm:$0xff]   ;;  %v2550_v0 = vadd.f32 %v7582_v62, %v8028_v27 }
 0x16a   :  { %3204 = vmatmul.mubr.bf16.vlgmr.msra.gmra.mrb[32].mxu0 %v6903_v54  ;;  %3245 = vmatmul.mubr.bf16.vlgmr.msra.gmra.mrb[32].mxu1 %v6903_v54 }
 0x16b   :  { %3254 = vmatpush1.bf16.msra.mxu0 %v6511_v38  ;;  %3295 = vmatpush1.bf16.msra.mxu1 %v6514_v39  ;;  %v6562_v38 = vld [vmem:[%s8493_s0 + $0xad8] ss:$164 sps:$4 sm:$0xff]   ;;  %v5885_v39 = vcombine.low %v412_v25, %v412_v25 }
 0x16c   :  { %3255 = vmatprep.subr.bf16.mxu0 %v6519_v40  ;;  %3296 = vmatprep.subr.bf16.mxu1 %v6522_v41  ;;  %v5887_v40 = vcombine.low %v413_v26, %v413_v26  ;;  %v2504_v41 = vand.u32 %v5886_v32, %v6881_v43  ;;  %v2757_v26 = vadd.f32 %v7852_v61, %v8028_v27 }
 0x16d   :  { %5908 = vmatprep.mubr.msk.bf16.mxu0 %vm2384_vm2, %v6867_v34  ;;  %5909 = vmatprep.mubr.msk.bf16.mxu1 %vm2384_vm2, %v6867_v34 }
 0x16f   :  { %3256 = vmatpush1.bf16.msra.mxu0 %v6517_v42  ;;  %3297 = vmatpush1.bf16.msra.mxu1 %v6520_v44  ;;  %v2510_v42 = vand.u32 %v5888_v33, %v6881_v43  ;;  %v3458_v44 = vshrl.u32 %v3457_v35, 7 }
 0x170   :  { %3257 = vmatprep.subr.bf16.mxu0 %v6525_v45  ;;  %3298 = vmatprep.subr.bf16.mxu1 %v6528_v46  ;;  %v8054_v45 = vmax.f32 %v2552_v36, 0.0  ;;  %v2593_v46 = vadd.f32 %v7588_v1, %v8028_v27  ;;  %v6569_v1 = vld [vmem:[%s8493_s0 + $0xa0] ss:$164 sps:$4 sm:$0xff]   ;;  %v2755_v36 = vadd.f32 %v7848_v55, %v8028_v27 }
 0x172   :  { %v3417_v62 = vmul.f32 %v8054_v45, %v8054_v45 }
 0x173   :  { %3258 = vmatpush1.bf16.msra.mxu0 %v6523_v47  ;;  %3299 = vmatpush1.bf16.msra.mxu1 %v6526_v48  ;;  %v2501_v47 = vand.u32 %v5885_v39, %v6881_v43  ;;  %v2507_v48 = vand.u32 %v5887_v40, %v6881_v43  ;;  %v6574_v40 = vld [vmem:[%s8493_s0 + $0x708] ss:$164 sps:$4 sm:$0xff]  }
 0x174   :  { %3259 = vmatprep.subr.bf16.mxu0 %v6531_v49  ;;  %3300 = vmatprep.subr.bf16.mxu1 %v6534_v50  ;;  %v8060_v49 = vmax.f32 %v2550_v0, 0.0  ;;  %v3460_v50 = vand.u32 127, %v3457_v35 }
 0x175   :  { %v7978_v5 = vpop.f32.mrb[12].mxu0  ;;  %v7980_v6 = vpop.f32.mrb[12].mxu1 }
 0x176   :  { %v7982_v7 = vpop.f32.mrb[13].mxu0  ;;  %v7984_v8 = vpop.f32.mrb[13].mxu1  ;;  %vm3463_vm4 = vcmp.le.s32.totalorder %v3460_v50, %v3458_v44 }
 0x177   :  { %v2799_v9 = vpop.f32.mrb[14].mxu0  ;;  %3260 = vmatpush1.bf16.msra.mxu0 %v6529_v51  ;;  %3301 = vmatpush1.bf16.msra.mxu1 %v6532_v52  ;;  %v2840_v12 = vpop.f32.mrb[14].mxu1  ;;  %v5911_v51 = vadd.s32 4294967295, %v3458_v44  ;;  %v8064_v52 = vmax.f32 %v2593_v46, 0.0  ;;  %v2798_v39 = vadd.f32 %v7982_v7, %v8028_v27  ;;  %v2796_v7 = vadd.f32 %v7978_v5, %v8028_v27  ;;  %v6575_v46 = vld [vmem:[%s8493_s0 + $0x850] ss:$164 sps:$4 sm:$0xff]  }
 0x178   :  { %v2800_v13 = vpop.f32.mrb[15].mxu0  ;;  %3261 = vmatprep.subr.bf16.mxu0 %v6537_v3  ;;  %3302 = vmatprep.subr.bf16.mxu1 %v6540_v4  ;;  %v2841_v16 = vpop.f32.mrb[15].mxu1  ;;  %v2591_v3 = vadd.f32 %v7584_v63, %v8028_v27  ;;  %v3416_v4 = vmul.f32 %v8060_v49, %v8060_v49  ;;  %v6570_v63 = vld [vmem:[%s8493_s0 + $0x1e8] ss:$164 sps:$4 sm:$0xff]   ;;  %v2632_v12 = vadd.f32 %v7714_v56, %v8028_v27  ;;  %v6571_v56 = vld [vmem:[%s8493_s0 + $0x330] ss:$164 sps:$4 sm:$0xff]  }
 0x179   :  { %vm3462_vm3 = vcmp.ge.s32.totalorder %v3460_v50, %v5911_v51  ;;  %v3419_v9 = vmul.f32 %v8064_v52, %v8064_v52  ;;  %v8169_v0 = vmax.f32 %v2798_v39, 0.0  ;;  %v2839_v44 = vadd.f32 %v7984_v8, %v8028_v27 }
 0x17a   :  { %vm3464_vm5 = vmand %vm3462_vm3, %vm3463_vm4  ;;  %v2837_v8 = vadd.f32 %v7980_v6, %v8028_v27 }
 0x17b   :  { %3262 = vmatpush1.bf16.msra.mxu0 %v6535_v10  ;;  %3303 = vmatpush1.bf16.msra.mxu1 %v6538_v11  ;;  %v2634_v10 = vadd.f32 %v7718_v58, %v8028_v27  ;;  %v8084_v11 = vmax.f32 %v2591_v3, 0.0  ;;  %v6745_v58 = vmov 0.0   ;;  %v8188_v50 = vmax.f32 %v2839_v44, 0.0 }
 0x17c   :  { %3263 = vmatprep.subr.bf16.mxu0 %v6543_v14  ;;  %3304 = vmatprep.subr.bf16.mxu1 %v6546_v15  ;;  %v2675_v14 = vadd.f32 %v7720_v59, %v8028_v27  ;;  %v8096_v15 = vsel %vm3464_vm5, 1.0, %v6745_v58  ;;  %v8200_v3 = vmax.f32 %v2837_v8, 0.0 }
 0x17d   :  { %v8091_v13 = vmax.f32 %v2634_v10, 0.0  ;;  %v3418_v16 = vmul.f32 %v8084_v11, %v8084_v11 }
 0x17f   :  { %3264 = vmatpush1.bf16.msra.mxu0 %v6541_v17  ;;  %3305 = vmatpush1.bf16.msra.mxu1 %v6544_v18  ;;  %v2673_v17 = vadd.f32 %v7716_v57, %v8028_v27  ;;  %v3421_v59 = vmul.f32 %v8091_v13, %v8091_v13  ;;  %v8110_v18 = vmax.f32 %v2675_v14, 0.0  ;;  %v6578_v14 = vld [vmem:[%s8493_s0 + $0xc28] ss:$0 sps:$4 sm:$0x33]  }
 0x180   :  { %3265 = vmatprep.subr.bf16.mxu0 %v6549_v19  ;;  %3306 = vmatprep.subr.bf16.mxu1 %v6552_v20  ;;  %v2716_v19 = vadd.f32 %v7850_v60, %v8028_v27  ;;  %v6572_v20 = vld [vmem:[%s8493_s0 + $0x478] ss:$164 sps:$4 sm:$0xff]   ;;  %v2714_v60 = vadd.f32 %v7846_v53, %v8028_v27 }
 0x182   :  { %v8131_v25 = vmax.f32 %v2716_v19, 0.0  ;;  %v8143_v35 = vmax.f32 %v2714_v60, 0.0 }
 0x183   :  { %3266 = vmatpush1.bf16.msra.mxu0 %v6547_v21  ;;  %3307 = vmatpush1.bf16.msra.mxu1 %v6550_v22  ;;  %v8122_v21 = vmax.f32 %v2673_v17, 0.0 }
 0x184   :  { %3267 = vmatprep.subr.bf16.mxu0 %v6555_v23  ;;  %3308 = vmatprep.subr.bf16.mxu1 %v6558_v24  ;;  %v3423_v24 = vmul.f32 %v8110_v18, %v8110_v18  ;;  %v3424_v55 = vmul.f32 %v8143_v35, %v8143_v35 }
 0x185   :  { %v3422_v61 = vmul.f32 %v8122_v21, %v8122_v21 }
 0x187   :  { %3268 = vmatpush1.bf16.msra.mxu0 %v6553_v28  ;;  %3309 = vmatpush1.bf16.msra.mxu1 %v6556_v29 }
 0x188   :  { %3269 = vmatprep.subr.bf16.mxu0 %v6561_v30  ;;  %3310 = vmatprep.subr.bf16.mxu1 %v6564_v31  ;;  %v6573_v30 = vld [vmem:[%s8493_s0 + $0x5c0] ss:$164 sps:$4 sm:$0xff]  }
 0x18b   :  { %3270 = vmatpush1.bf16.msra.mxu0 %v6559_v37  ;;  %3311 = vmatpush1.bf16.msra.mxu1 %v6562_v38  ;;  %v3425_v37 = vmul.f32 %v8131_v25, %v8131_v25  ;;  %v8150_v38 = vmax.f32 %v2757_v26, 0.0 }
 0x18c   :  { %3271 = vmatprep.subr.bf16.mxu0 %v2504_v41  ;;  %3312 = vmatprep.subr.bf16.mxu1 %v2510_v42  ;;  %v8162_v41 = vmax.f32 %v2755_v36, 0.0 }
 0x18d   :  { %v3427_v42 = vmul.f32 %v8150_v38, %v8150_v38 }
 0x18e   :  { %v3426_v5 = vmul.f32 %v8162_v41, %v8162_v41 }
 0x18f   :  { %3272 = vmatpush1.bf16.msra.mxu0 %v2501_v47  ;;  %3313 = vmatpush1.bf16.msra.mxu1 %v2507_v48  ;;  %v8181_v47 = vmax.f32 %v2796_v7, 0.0  ;;  %v3429_v48 = vmul.f32 %v8169_v0, %v8169_v0 }
 0x190   :  { %3470 = vmatprep.subr.mxu1 %v3417_v62  ;;  %3335 = vmatprep.subr.bf16.mxu0 %v6743_v2  ;;  %v6576_v62 = vld [vmem:[%s8493_s0 + $0x998] ss:$164 sps:$4 sm:$0xff]  }
 0x192   :  { %3286 = vmatmul.mubr.bf16.vlgmr.msra.gmra.mrb[36].mxu0 %v6903_v54  ;;  %3327 = vmatmul.mubr.bf16.vlgmr.msra.gmra.mrb[36].mxu1 %v6903_v54 }
 0x193   :  { %3336 = vmatpush1.bf16.msra.mxu0 %v6569_v1  ;;  %3471 = vmatpush1.msra.mxu1 %v3416_v4  ;;  %v3428_v1 = vmul.f32 %v8181_v47, %v8181_v47 }
 0x194   :  { %3541 = vmatprep.subr.mxu1 %v3419_v9  ;;  %3337 = vmatprep.subr.bf16.mxu0 %v6743_v2  ;;  %v3431_v9 = vmul.f32 %v8188_v50, %v8188_v50 }
 0x195   :  { %3534 = vmatprep.mubr.f32.mxu1 %v6745_v58  ;;  %5910 = vmatprep.mubr.msk.bf16.mxu0 %vm2384_vm2, %v6867_v34  ;;  %v8104_v34 = vmax.f32 %v2632_v12, 0.0 }
 0x197   :  { %3338 = vmatpush1.bf16.msra.mxu0 %v6570_v63  ;;  %v3420_v57 = vmul.f32 %v8104_v34, %v8104_v34  ;;  %v6577_v63 = vld [vmem:[%s8493_s0 + $0xae0] ss:$164 sps:$4 sm:$0xff]  }
 0x198   :  { %3339 = vmatprep.subr.bf16.mxu0 %v6743_v2 }
 0x19a   :  { %5912 = vmatmul.mubr.msk.f32.vlgmr.msra.gmra.mrb[40].mxu1 %vm3466_vm6, %v8096_v15 }
 0x19b   :  { %3542 = vmatpush1.msra.mxu1 %v3418_v16  ;;  %3340 = vmatpush1.bf16.msra.mxu0 %v6571_v56  ;;  %v3430_v16 = vmul.f32 %v8200_v3, %v8200_v3 }
 0x19c   :  { %3612 = vmatprep.subr.mxu1 %v3421_v59  ;;  %3605 = vmatprep.mubr.f32.mxu1 %v6745_v58 }
 0x19d   :  { %v2877_v22 = vpop.f32.mrb[16].mxu0  ;;  %3341 = vmatprep.subr.bf16.mxu0 %v6743_v2  ;;  %v8127_v23 = vpop.f32.mrb[16].mxu1 }
 0x19e   :  { %v2879_v28 = vpop.f32.mrb[17].mxu0  ;;  %5913 = vmatmul.mubr.msk.f32.vlgmr.msra.gmra.mrb[42].mxu1 %vm3466_vm6, %v8096_v15  ;;  %v2920_v29 = vpop.f32.mrb[17].mxu1  ;;  %v2878_v4 = vadd.f32 %v2877_v22, %v8028_v27  ;;  %v2919_v12 = vadd.f32 %v8127_v23, %v8028_v27 }
 0x19f   :  { %3613 = vmatpush1.msra.mxu1 %v3420_v57  ;;  %v2881_v53 = vpop.f32.mrb[18].mxu0  ;;  %3342 = vmatpush1.bf16.msra.mxu0 %v6572_v20  ;;  %v2922_v31 = vpop.f32.mrb[18].mxu1  ;;  %v2880_v51 = vadd.f32 %v2879_v28, %v8028_v27  ;;  %v2921_v6 = vadd.f32 %v2920_v29, %v8028_v27  ;;  %v2513_v20 = vand.u32 %v6578_v14, %v6881_v43 }
 0x1a0   :  { %3683 = vmatprep.subr.mxu1 %v3423_v24  ;;  %v2882_v32 = vpop.f32.mrb[19].mxu0  ;;  %3676 = vmatprep.mubr.f32.mxu1 %v6745_v58  ;;  %v2923_v33 = vpop.f32.mrb[19].mxu1  ;;  %v8223_v17 = vmax.f32 %v2878_v4, 0.0  ;;  %v8230_v19 = vmax.f32 %v2919_v12, 0.0 }
 0x1a1   :  { %3343 = vmatprep.subr.bf16.mxu0 %v6743_v2  ;;  %v8206_v10 = vmax.f32 %v2880_v51, 0.0  ;;  %v8219_v56 = vmax.f32 %v2921_v6, 0.0 }
 0x1a2   :  { %5914 = vmatmul.mubr.msk.f32.vlgmr.msra.gmra.mrb[44].mxu1 %vm3466_vm6, %v8096_v15  ;;  %v3432_v60 = vmul.f32 %v8223_v17, %v8223_v17  ;;  %v3434_v22 = vmul.f32 %v8230_v19, %v8230_v19 }
 0x1a3   :  { %3684 = vmatpush1.msra.mxu1 %v3422_v61  ;;  %3344 = vmatpush1.bf16.msra.mxu0 %v6573_v30  ;;  %v3433_v59 = vmul.f32 %v8206_v10, %v8206_v10  ;;  %v3435_v57 = vmul.f32 %v8219_v56, %v8219_v56 }
 0x1a4   :  { %3754 = vmatprep.subr.mxu1 %v3425_v37  ;;  %3747 = vmatprep.mubr.f32.mxu1 %v6745_v58 }
 0x1a5   :  { %3345 = vmatprep.subr.bf16.mxu0 %v6743_v2 }
 0x1a6   :  { %5915 = vmatmul.mubr.msk.f32.vlgmr.msra.gmra.mrb[46].mxu1 %vm3466_vm6, %v8096_v15 }
 0x1a7   :  { %3755 = vmatpush1.msra.mxu1 %v3424_v55  ;;  %3346 = vmatpush1.bf16.msra.mxu0 %v6574_v40 }
 0x1a8   :  { %3825 = vmatprep.subr.mxu1 %v3427_v42  ;;  %3818 = vmatprep.mubr.f32.mxu1 %v6745_v58 }
 0x1a9   :  { %3347 = vmatprep.subr.bf16.mxu0 %v6743_v2 }
 0x1aa   :  { %5916 = vmatmul.mubr.msk.f32.vlgmr.msra.gmra.mrb[48].mxu1 %vm3466_vm6, %v8096_v15 }
 0x1ab   :  { %3826 = vmatpush1.msra.mxu1 %v3426_v5  ;;  %3348 = vmatpush1.bf16.msra.mxu0 %v6575_v46 }
 0x1ac   :  { %3896 = vmatprep.subr.mxu1 %v3429_v48  ;;  %3889 = vmatprep.mubr.f32.mxu1 %v6745_v58 }
 0x1ad   :  { %3349 = vmatprep.subr.bf16.mxu0 %v6743_v2 }
 0x1ae   :  { %5917 = vmatmul.mubr.msk.f32.vlgmr.msra.gmra.mrb[50].mxu1 %vm3466_vm6, %v8096_v15 }
 0x1af   :  { %3897 = vmatpush1.msra.mxu1 %v3428_v1  ;;  %3350 = vmatpush1.bf16.msra.mxu0 %v6576_v62 }
 0x1b0   :  { %3967 = vmatprep.subr.mxu1 %v3431_v9  ;;  %3960 = vmatprep.mubr.f32.mxu1 %v6745_v58 }
 0x1b1   :  { %3351 = vmatprep.subr.bf16.mxu0 %v6743_v2 }
 0x1b2   :  { %5918 = vmatmul.mubr.msk.f32.vlgmr.msra.gmra.mrb[52].mxu1 %vm3466_vm6, %v8096_v15 }
 0x1b3   :  { %3968 = vmatpush1.msra.mxu1 %v3430_v16  ;;  %3352 = vmatpush1.bf16.msra.mxu0 %v6577_v63 }
 0x1b4   :  { %4038 = vmatprep.subr.mxu1 %v3433_v59  ;;  %4031 = vmatprep.mubr.f32.mxu1 %v6745_v58 }
 0x1b5   :  { %3353 = vmatprep.subr.bf16.mxu0 %v6743_v2 }
 0x1b6   :  { %5919 = vmatmul.mubr.msk.f32.vlgmr.msra.gmra.mrb[54].mxu1 %vm3466_vm6, %v8096_v15 }
 0x1b7   :  { %4039 = vmatpush1.msra.mxu1 %v3432_v60  ;;  %3354 = vmatpush1.bf16.msra.mxu0 %v2513_v20 }
 0x1b8   :  { %4102 = vmatprep.mubr.f32.mxu1 %v6745_v58  ;;  %4109 = vmatprep.subr.mxu1 %v3435_v57 }
 0x1ba   :  { %3368 = vmatmul.mubr.bf16.vlgmr.msra.gmra.mrb[40].mxu0 %v6903_v54  ;;  %5920 = vmatmul.mubr.msk.f32.vlgmr.msra.gmra.mrb[56].mxu1 %vm3466_vm6, %v8096_v15 }
 0x1bb   :  { %4110 = vmatpush1.msra.mxu1 %v3434_v22  ;;  %4173 = vmatprep.mubr.f32.mxu1 %v6745_v58 }
 0x1bc   :  { %4244 = vmatprep.mubr.f32.mxu0 %v6745_v58 }
 0x1be   :  { %5921 = vmatmul.mubr.msk.f32.vlgmr.msra.gmra.mrb[58].mxu1 %vm3466_vm6, %v8096_v15 }
 0x1bf   :  { %4315 = vmatprep.mubr.f32.mxu1 %v6745_v58 }
 0x1c5   :  { %v2959_v2 = vpop.f32.mrb[20].mxu0  ;;  %v3000_v43 = vpop.f32.mrb[20].mxu1 }
 0x1c6   :  { %v2960_v23 = vadd.f32 %v2959_v2, %v8028_v27  ;;  %v3001_v24 = vadd.f32 %v3000_v43, %v8028_v27  ;;  %v2961_v54 = vpop.f32.mrb[21].mxu0  ;;  %v3002_v26 = vpop.f32.mrb[21].mxu1 }
 0x1c7   :  { %v2962_v28 = vadd.f32 %v2961_v54, %v8028_v27  ;;  %v3003_v29 = vadd.f32 %v3002_v26, %v8028_v27  ;;  %v2963_v53 = vpop.f32.mrb[22].mxu0  ;;  %v3004_v30 = vpop.f32.mrb[22].mxu1 }
 0x1c8   :  { %v8256_v31 = vmax.f32 %v2960_v23, 0.0  ;;  %v8258_v32 = vmax.f32 %v3001_v24, 0.0  ;;  %v2964_v33 = vpop.f32.mrb[23].mxu0  ;;  %v3005_v61 = vpop.f32.mrb[23].mxu1 }
 0x1c9   :  { %v8260_v36 = vmax.f32 %v2962_v28, 0.0  ;;  %v8262_v37 = vmax.f32 %v3003_v29, 0.0 }
 0x1ca   :  { %v3436_v39 = vmul.f32 %v8256_v31, %v8256_v31  ;;  %v3438_v40 = vmul.f32 %v8258_v32, %v8258_v32 }
 0x1cb   :  { %v3437_v55 = vmul.f32 %v8260_v36, %v8260_v36  ;;  %v3439_v7 = vmul.f32 %v8262_v37, %v8262_v37 }
 0x1cd   :  { %4180 = vmatprep.subr.mxu0 %v3437_v55  ;;  %4251 = vmatprep.subr.mxu1 %v3439_v7 }
 0x1ce   :  { %4181 = vmatpush1.msra.mxu0 %v3436_v39  ;;  %4252 = vmatpush1.msra.mxu1 %v3438_v40 }
 0x1cf   :  { %5922 = vmatmul.mubr.msk.f32.vlgmr.msra.gmra.mrb[44].mxu0 %vm3466_vm6, %v8096_v15  ;;  %5923 = vmatmul.mubr.msk.f32.vlgmr.msra.gmra.mrb[60].mxu1 %vm3466_vm6, %v8096_v15 }
 0x1d0   :  { %4386 = vmatprep.mubr.f32.mxu0 %v6745_v58  ;;  %4457 = vmatprep.mubr.f32.mxu1 %v6745_v58 }
 0x1ed   :  { %v3041_v42 = vpop.f32.mrb[24].mxu0  ;;  %v3082_v44 = vpop.f32.mrb[24].mxu1 }
 0x1ee   :  { %v3042_v46 = vadd.f32 %v3041_v42, %v8028_v27  ;;  %v3083_v5 = vadd.f32 %v3082_v44, %v8028_v27  ;;  %v3043_v8 = vpop.f32.mrb[25].mxu0  ;;  %v3084_v48 = vpop.f32.mrb[25].mxu1 }
 0x1ef   :  { %v3044_v51 = vadd.f32 %v3043_v8, %v8028_v27  ;;  %v3085_v62 = vadd.f32 %v3084_v48, %v8028_v27  ;;  %v3045_v6 = vpop.f32.mrb[26].mxu0  ;;  %v3086_v1 = vpop.f32.mrb[26].mxu1 }
 0x1f0   :  { %v8282_v4 = vmax.f32 %v3042_v46, 0.0  ;;  %v8284_v9 = vmax.f32 %v3083_v5, 0.0  ;;  %v3046_v63 = vpop.f32.mrb[27].mxu0  ;;  %v3087_v12 = vpop.f32.mrb[27].mxu1 }
 0x1f1   :  { %v8286_v14 = vmax.f32 %v3044_v51, 0.0  ;;  %v8288_v16 = vmax.f32 %v3085_v62, 0.0 }
 0x1f2   :  { %v3440_v59 = vmul.f32 %v8282_v4, %v8282_v4  ;;  %v3442_v20 = vmul.f32 %v8284_v9, %v8284_v9 }
 0x1f3   :  { %v3441_v57 = vmul.f32 %v8286_v14, %v8286_v14  ;;  %v3443_v60 = vmul.f32 %v8288_v16, %v8288_v16 }
 0x1f5   :  { %4322 = vmatprep.subr.mxu0 %v3441_v57  ;;  %4393 = vmatprep.subr.mxu1 %v3443_v60 }
 0x1f6   :  { %4323 = vmatpush1.msra.mxu0 %v3440_v59  ;;  %4394 = vmatpush1.msra.mxu1 %v3442_v20 }
 0x1f7   :  { %5924 = vmatmul.mubr.msk.f32.vlgmr.msra.gmra.mrb[46].mxu0 %vm3466_vm6, %v8096_v15  ;;  %5925 = vmatmul.mubr.msk.f32.vlgmr.msra.gmra.mrb[62].mxu1 %vm3466_vm6, %v8096_v15 }
 0x1f8   :  { %4528 = vmatprep.mubr.f32.mxu0 %v6745_v58  ;;  %4599 = vmatprep.mubr.f32.mxu1 %v6745_v58 }
 0x215   :  { %v3123_v22 = vpop.f32.mrb[28].mxu0  ;;  %v3164_v2 = vpop.f32.mrb[28].mxu1 }
 0x216   :  { %v3124_v43 = vadd.f32 %v3123_v22, %v8028_v27  ;;  %v3165_v23 = vadd.f32 %v3164_v2, %v8028_v27  ;;  %v3125_v24 = vpop.f32.mrb[29].mxu0  ;;  %v3166_v54 = vpop.f32.mrb[29].mxu1 }
 0x217   :  { %v3126_v26 = vadd.f32 %v3125_v24, %v8028_v27  ;;  %v3167_v28 = vadd.f32 %v3166_v54, %v8028_v27  ;;  %v3127_v29 = vpop.f32.mrb[30].mxu0  ;;  %v3168_v53 = vpop.f32.mrb[30].mxu1 }
 0x218   :  { %v8308_v30 = vmax.f32 %v3124_v43, 0.0  ;;  %v8310_v33 = vmax.f32 %v3165_v23, 0.0  ;;  %v3128_v61 = vpop.f32.mrb[31].mxu0  ;;  %v3169_v39 = vpop.f32.mrb[31].mxu1 }
 0x219   :  { %v8312_v40 = vmax.f32 %v3126_v26, 0.0  ;;  %v8314_v55 = vmax.f32 %v3167_v28, 0.0 }
 0x21a   :  { %v3444_v7 = vmul.f32 %v8308_v30, %v8308_v30  ;;  %v3446_v42 = vmul.f32 %v8310_v33, %v8310_v33 }
 0x21b   :  { %v3445_v44 = vmul.f32 %v8312_v40, %v8312_v40  ;;  %v3447_v46 = vmul.f32 %v8314_v55, %v8314_v55 }
 0x21d   :  { %4464 = vmatprep.subr.mxu0 %v3445_v44  ;;  %4535 = vmatprep.subr.mxu1 %v3447_v46 }
 0x21e   :  { %4465 = vmatpush1.msra.mxu0 %v3444_v7  ;;  %4536 = vmatpush1.msra.mxu1 %v3446_v42 }
 0x21f   :  { %5926 = vmatmul.mubr.msk.f32.vlgmr.msra.gmra.mrb[48].mxu0 %vm3466_vm6, %v8096_v15  ;;  %5927 = vmatmul.mubr.msk.f32.vlgmr.msra.gmra.mrb[64].mxu1 %vm3466_vm6, %v8096_v15 }
 0x220   :  { %4670 = vmatprep.mubr.f32.mxu0 %v6745_v58  ;;  %4741 = vmatprep.mubr.f32.mxu1 %v6745_v58 }
 0x23d   :  { %v3205_v5 = vpop.f32.mrb[32].mxu0  ;;  %v3246_v8 = vpop.f32.mrb[32].mxu1 }
 0x23e   :  { %v3206_v48 = vadd.f32 %v3205_v5, %v8028_v27  ;;  %v3247_v51 = vadd.f32 %v3246_v8, %v8028_v27  ;;  %v3207_v62 = vpop.f32.mrb[33].mxu0  ;;  %v3248_v6 = vpop.f32.mrb[33].mxu1 }
 0x23f   :  { %v3208_v1 = vadd.f32 %v3207_v62, %v8028_v27  ;;  %v3249_v63 = vadd.f32 %v3248_v6, %v8028_v27  ;;  %v3209_v12 = vpop.f32.mrb[34].mxu0  ;;  %v3250_v59 = vpop.f32.mrb[34].mxu1 }
 0x240   :  { %v8334_v20 = vmax.f32 %v3206_v48, 0.0  ;;  %v8336_v57 = vmax.f32 %v3247_v51, 0.0  ;;  %v3210_v60 = vpop.f32.mrb[35].mxu0  ;;  %v3251_v22 = vpop.f32.mrb[35].mxu1 }
 0x241   :  { %v8338_v2 = vmax.f32 %v3208_v1, 0.0  ;;  %v8340_v43 = vmax.f32 %v3249_v63, 0.0 }
 0x242   :  { %v3448_v23 = vmul.f32 %v8334_v20, %v8334_v20  ;;  %v3450_v24 = vmul.f32 %v8336_v57, %v8336_v57 }
 0x243   :  { %v3449_v54 = vmul.f32 %v8338_v2, %v8338_v2  ;;  %v3451_v26 = vmul.f32 %v8340_v43, %v8340_v43 }
 0x245   :  { %4606 = vmatprep.subr.mxu0 %v3449_v54  ;;  %4677 = vmatprep.subr.mxu1 %v3451_v26 }
 0x246   :  { %4607 = vmatpush1.msra.mxu0 %v3448_v23  ;;  %4678 = vmatpush1.msra.mxu1 %v3450_v24 }
 0x247   :  { %5928 = vmatmul.mubr.msk.f32.vlgmr.msra.gmra.mrb[50].mxu0 %vm3466_vm6, %v8096_v15  ;;  %5929 = vmatmul.mubr.msk.f32.vlgmr.msra.gmra.mrb[66].mxu1 %vm3466_vm6, %v8096_v15 }
 0x248   :  { %4812 = vmatprep.mubr.f32.mxu0 %v6745_v58  ;;  %4883 = vmatprep.mubr.f32.mxu1 %v6745_v58 }
 0x265   :  { %v3287_v28 = vpop.f32.mrb[36].mxu0  ;;  %v3328_v29 = vpop.f32.mrb[36].mxu1 }
 0x266   :  { %v3288_v53 = vadd.f32 %v3287_v28, %v8028_v27  ;;  %v3329_v61 = vadd.f32 %v3328_v29, %v8028_v27  ;;  %v3289_v39 = vpop.f32.mrb[37].mxu0  ;;  %v3330_v7 = vpop.f32.mrb[37].mxu1 }
 0x267   :  { %v3290_v42 = vadd.f32 %v3289_v39, %v8028_v27  ;;  %v3331_v44 = vadd.f32 %v3330_v7, %v8028_v27  ;;  %v3291_v46 = vpop.f32.mrb[38].mxu0  ;;  %v3332_v5 = vpop.f32.mrb[38].mxu1 }
 0x268   :  { %v8360_v8 = vmax.f32 %v3288_v53, 0.0  ;;  %v8362_v48 = vmax.f32 %v3329_v61, 0.0  ;;  %v3292_v51 = vpop.f32.mrb[39].mxu0  ;;  %v3333_v62 = vpop.f32.mrb[39].mxu1 }
 0x269   :  { %v8364_v6 = vmax.f32 %v3290_v42, 0.0  ;;  %v8366_v1 = vmax.f32 %v3331_v44, 0.0 }
 0x26a   :  { %8500 = vst [vmem:[#allocation2_spill] sm:$0xff] %v8362_v48  ;;  %v3452_v59 = vmul.f32 %v8360_v8, %v8360_v8  ;;  %v3454_v60 = vmul.f32 %v8362_v48, %v8362_v48 }
 0x26b   :  { %8501 = vst [vmem:[#allocation3_spill] sm:$0xff] %v8364_v6  ;;  %8502 = vst [vmem:[#allocation4_spill] sm:$0xff] %v8366_v1  ;;  %v3453_v63 = vmul.f32 %v8364_v6, %v8364_v6  ;;  %v3455_v12 = vmul.f32 %v8366_v1, %v8366_v1 }
 0x26d   :  { %v3536_v22 = vpop.f32.mrb[40].mxu1  ;;  %4748 = vmatprep.subr.mxu0 %v3453_v63  ;;  %4819 = vmatprep.subr.mxu1 %v3455_v12 }
 0x26e   :  { %v4960_v23 = vmul.f32 5e-05, %v3536_v22  ;;  %v3538_v24 = vpop.f32.mrb[41].mxu1  ;;  %4749 = vmatpush1.msra.mxu0 %v3452_v59  ;;  %4820 = vmatpush1.msra.mxu1 %v3454_v60 }
 0x26f   :  { %v4961_v54 = vmul.f32 5e-05, %v3538_v24  ;;  %5930 = vmatmul.mubr.msk.f32.vlgmr.msra.gmra.mrb[52].mxu0 %vm3466_vm6, %v8096_v15  ;;  %5931 = vmatmul.mubr.msk.f32.vlgmr.msra.gmra.mrb[68].mxu1 %vm3466_vm6, %v8096_v15 }
 0x270   :  { %v5001_v26 = vadd.f32 1.0, %v4960_v23  ;;  %5977 = vmatprep.subr.mxu0 %v6745_v58  ;;  %5979 = vmatprep.mubr.msk.f32.mxu0 %vm6746_vm7, %v6745_v58 }
 0x271   :  { %v5002_v28 = vadd.f32 1.0, %v4961_v54  ;;  %v3607_v29 = vpop.f32.mrb[42].mxu1 }
 0x272   :  { %6579 = vlog2.f32 %v5001_v26  ;;  %v4962_v53 = vmul.f32 5e-05, %v3607_v29  ;;  %v3609_v61 = vpop.f32.mrb[43].mxu1 }
 0x273   :  { %6581 = vlog2.f32 %v5002_v28  ;;  %v4963_v39 = vmul.f32 5e-05, %v3609_v61 }
 0x274   :  { %v5003_v7 = vadd.f32 1.0, %v4962_v53 }
 0x275   :  { %v5004_v42 = vadd.f32 1.0, %v4963_v39  ;;  %v3678_v44 = vpop.f32.mrb[44].mxu1 }
 0x276   :  { %6583 = vlog2.f32 %v5003_v7  ;;  %v4964_v46 = vmul.f32 5e-05, %v3678_v44  ;;  %v3680_v5 = vpop.f32.mrb[45].mxu1 }
 0x277   :  { %6585 = vlog2.f32 %v5004_v42  ;;  %v4965_v51 = vmul.f32 5e-05, %v3680_v5 }
 0x278   :  { %v5005_v62 = vadd.f32 1.0, %v4964_v46 }
 0x279   :  { %v5006_v63 = vadd.f32 1.0, %v4965_v51  ;;  %v3749_v12 = vpop.f32.mrb[46].mxu1 }
 0x27a   :  { %6587 = vlog2.f32 %v5005_v62  ;;  %v4966_v58 = vmul.f32 5e-05, %v3749_v12  ;;  %v3751_v59 = vpop.f32.mrb[47].mxu1 }
 0x27b   :  { %6589 = vlog2.f32 %v5006_v63  ;;  %v4967_v60 = vmul.f32 5e-05, %v3751_v59 }
 0x27c   :  { %v6580_v22 = vpop.eup %6579  ;;  %v5007_v23 = vadd.f32 1.0, %v4966_v58 }
 0x27d   :  { %v6582_v24 = vpop.eup %6581  ;;  %v5043_v54 = vmul.f32 0.6931472, %v6580_v22  ;;  %v5008_v26 = vadd.f32 1.0, %v4967_v60  ;;  %v3820_v28 = vpop.f32.mrb[48].mxu1 }
 0x27e   :  { %v5045_v29 = vmul.f32 0.6931472, %v6582_v24  ;;  %6591 = vlog2.f32 %v5007_v23  ;;  %v4968_v53 = vmul.f32 5e-05, %v3820_v28  ;;  %v3822_v61 = vpop.f32.mrb[49].mxu1 }
 0x27f   :  { %v5124_v39 = vmul.f32 -0.75, %v5043_v54  ;;  %6593 = vlog2.f32 %v5008_v26  ;;  %v4969_v7 = vmul.f32 5e-05, %v3822_v61 }
 0x280   :  { %v6584_v42 = vpop.eup %6583  ;;  %v5125_v44 = vmul.f32 -0.75, %v5045_v29  ;;  %v5009_v46 = vadd.f32 1.0, %v4968_v53 }
 0x281   :  { %v6586_v5 = vpop.eup %6585  ;;  %v5165_v51 = vmul.f32 1.442695, %v5124_v39  ;;  %v5047_v62 = vmul.f32 0.6931472, %v6584_v42  ;;  %v5010_v63 = vadd.f32 1.0, %v4969_v7  ;;  %v3891_v12 = vpop.f32.mrb[50].mxu1 }
 0x282   :  { %v5167_v58 = vmul.f32 1.442695, %v5125_v44  ;;  %v5049_v59 = vmul.f32 0.6931472, %v6586_v5  ;;  %6595 = vlog2.f32 %v5009_v46  ;;  %v4970_v60 = vmul.f32 5e-05, %v3891_v12 }
 0x283   :  { %6597 = vpow2.f32 %v5165_v51  ;;  %v5126_v22 = vmul.f32 -0.75, %v5047_v62  ;;  %v3893_v23 = vpop.f32.mrb[51].mxu1 }
 0x284   :  { %v6588_v24 = vpop.eup %6587  ;;  %6599 = vpow2.f32 %v5167_v58  ;;  %v5127_v54 = vmul.f32 -0.75, %v5049_v59  ;;  %v5011_v26 = vadd.f32 1.0, %v4970_v60  ;;  %v4971_v28 = vmul.f32 5e-05, %v3893_v23 }
 0x285   :  { %v6590_v61 = vpop.eup %6589  ;;  %v5169_v29 = vmul.f32 1.442695, %v5126_v22  ;;  %v5051_v53 = vmul.f32 0.6931472, %v6588_v24  ;;  %6601 = vlog2.f32 %v5010_v63  ;;  %v3962_v39 = vpop.f32.mrb[52].mxu1 }
 0x286   :  { %v5171_v42 = vmul.f32 1.442695, %v5127_v54  ;;  %v5053_v7 = vmul.f32 0.6931472, %v6590_v61  ;;  %6603 = vlog2.f32 %v5011_v26  ;;  %v5012_v44 = vadd.f32 1.0, %v4971_v28  ;;  %v3964_v5 = vpop.f32.mrb[53].mxu1 }
 0x287   :  { %6605 = vpow2.f32 %v5169_v29  ;;  %v5128_v46 = vmul.f32 -0.75, %v5051_v53  ;;  %v4972_v51 = vmul.f32 5e-05, %v3962_v39  ;;  %v4973_v62 = vmul.f32 5e-05, %v3964_v5 }
 0x288   :  { %v6592_v12 = vpop.eup %6591  ;;  %6607 = vpow2.f32 %v5171_v42  ;;  %v5129_v58 = vmul.f32 -0.75, %v5053_v7 }
 0x289   :  { %v6594_v59 = vpop.eup %6593  ;;  %v5173_v60 = vmul.f32 1.442695, %v5128_v46  ;;  %v5055_v23 = vmul.f32 0.6931472, %v6592_v12  ;;  %6609 = vlog2.f32 %v5012_v44  ;;  %v5013_v22 = vadd.f32 1.0, %v4972_v51  ;;  %v4033_v24 = vpop.f32.mrb[54].mxu1 }
 0x28a   :  { %v5175_v63 = vmul.f32 1.442695, %v5129_v58  ;;  %v5057_v1 = vmul.f32 0.6931472, %v6594_v59  ;;  %v5014_v54 = vadd.f32 1.0, %v4973_v62  ;;  %v4035_v61 = vpop.f32.mrb[55].mxu1 }
 0x28b   :  { %6611 = vpow2.f32 %v5173_v60  ;;  %v5130_v26 = vmul.f32 -0.75, %v5055_v23  ;;  %v4974_v28 = vmul.f32 5e-05, %v4033_v24  ;;  %v4975_v29 = vmul.f32 5e-05, %v4035_v61 }
 0x28c   :  { %v6596_v53 = vpop.eup %6595  ;;  %6613 = vpow2.f32 %v5175_v63  ;;  %v5131_v39 = vmul.f32 -0.75, %v5057_v1 }
 0x28d   :  { %v6598_v5 = vpop.eup %6597  ;;  %v5177_v42 = vmul.f32 1.442695, %v5130_v26  ;;  %v5059_v7 = vmul.f32 0.6931472, %v6596_v53  ;;  %6615 = vlog2.f32 %v5013_v22  ;;  %v5015_v46 = vadd.f32 1.0, %v4974_v28  ;;  %v3369_v12 = vpop.f32.mrb[40].mxu0 }
 0x28e   :  { %v6600_v44 = vpop.eup %6599  ;;  %v5247_v51 = vmul.f32 %v6598_v5, %v8060_v49  ;;  %v5179_v58 = vmul.f32 1.442695, %v5131_v39  ;;  %6617 = vlog2.f32 %v5014_v54  ;;  %v5016_v62 = vadd.f32 1.0, %v4975_v29  ;;  %v4104_v59 = vpop.f32.mrb[56].mxu1 }
 0x28f   :  { %v3371_v60 = vpop.f32.mrb[41].mxu0  ;;  %v6602_v23 = vpop.eup %6601  ;;  %v5248_v24 = vmul.f32 %v6600_v44, %v8054_v45  ;;  %6619 = vpow2.f32 %v5177_v42  ;;  %v5132_v63 = vmul.f32 -0.75, %v5059_v7  ;;  %v3370_v1 = vadd.f32 %v3369_v12, %v8028_v27 }
 0x290   :  { %v4106_v61 = vpop.f32.mrb[57].mxu1  ;;  %v3372_v26 = vpop.f32.mrb[42].mxu0  ;;  %6621 = vpow2.f32 %v5179_v58  ;;  %v5061_v28 = vmul.f32 0.6931472, %v6602_v23  ;;  %v4976_v53 = vmul.f32 5e-05, %v4104_v59 }
 0x291   :  { %v6604_v22 = vpop.eup %6603  ;;  %v4977_v6 = vmul.f32 5e-05, %v4106_v61  ;;  %v5954_v39 = vpack.c.bf16 %v5248_v24, %v5247_v51  ;;  %v5181_v54 = vmul.f32 1.442695, %v5132_v63  ;;  %6623 = vlog2.f32 %v5015_v46  ;;  %v3373_v5 = vpop.f32.mrb[43].mxu0 }
 0x292   :  { %v6606_v49 = vpop.eup %6605  ;;  %v5063_v29 = vmul.f32 0.6931472, %v6604_v22  ;;  %v4175_v60 = vpop.f32.mrb[58].mxu1  ;;  %v5133_v42 = vmul.f32 -0.75, %v5061_v28  ;;  %6625 = vlog2.f32 %v5016_v62  ;;  %v8386_v27 = vmax.f32 %v3370_v1, 0.0 }
 0x293   :  { %v6608_v48 = vpop.eup %6607  ;;  %v5249_v45 = vmul.f32 %v6606_v49, %v8084_v11  ;;  %v4177_v7 = vpop.f32.mrb[59].mxu1  ;;  %5453 = vst [vmem:[%s8496_s3] sm:$0xff] %v5954_v39  ;;  %6627 = vpow2.f32 %v5181_v54  ;;  %v5017_v46 = vadd.f32 1.0, %v4976_v53  ;;  %v5018_v23 = vadd.f32 1.0, %v4977_v6 }
 0x294   :  { %v6610_v12 = vpop.eup %6609  ;;  %v5250_v44 = vmul.f32 %v6608_v48, %v8064_v52  ;;  %v5134_v51 = vmul.f32 -0.75, %v5063_v29  ;;  %v5183_v58 = vmul.f32 1.442695, %v5133_v42  ;;  %v3456_v11 = vmul.f32 %v8386_v27, %v8386_v27 }
 0x295   :  { %v5065_v59 = vmul.f32 0.6931472, %v6610_v12  ;;  %v6612_v62 = vpop.eup %6611  ;;  %6629 = vlog2.f32 %v5017_v46  ;;  %v4978_v1 = vmul.f32 5e-05, %v4175_v60  ;;  %v4979_v52 = vmul.f32 5e-05, %v4177_v7 }
 0x296   :  { %v5955_v24 = vpack.c.bf16 %v5250_v44, %v5249_v45  ;;  %v5185_v63 = vmul.f32 1.442695, %v5134_v51  ;;  %v6614_v61 = vpop.eup %6613  ;;  %v5251_v26 = vmul.f32 %v6612_v62, %v8104_v34  ;;  %6631 = vpow2.f32 %v5183_v58  ;;  %5978 = vmatpush3.msra.mxu0 %v3456_v11 }
 0x297   :  { %v5135_v22 = vmul.f32 -0.75, %v5065_v59  ;;  %v6616_v48 = vpop.eup %6615  ;;  %v5252_v28 = vmul.f32 %v6614_v61, %v8091_v13  ;;  %v5019_v6 = vadd.f32 1.0, %v4978_v1  ;;  %5980 = vmatmul.mubr.msk.f32.vlgmr.msra.gmra.mrb[54].mxu0 %vm3466_vm6, %v8096_v15  ;;  %v5020_v34 = vadd.f32 1.0, %v4979_v52 }
 0x298   :  { %5454 = vst [vmem:[%s8496_s3 + $0x8] sm:$0xff] %v5955_v24  ;;  %6633 = vpow2.f32 %v5185_v63  ;;  %v6618_v53 = vpop.eup %6617  ;;  %v5067_v39 = vmul.f32 0.6931472, %v6616_v48 }
 0x299   :  { %v5187_v49 = vmul.f32 1.442695, %v5135_v22  ;;  %6635 = vlog2.f32 %v5018_v23  ;;  %v6620_v54 = vpop.eup %6619  ;;  %v5956_v29 = vpack.c.bf16 %v5252_v28, %v5251_v26  ;;  %v5069_v5 = vmul.f32 0.6931472, %v6618_v53 }
 0x29a   :  { %6637 = vlog2.f32 %v5019_v6  ;;  %v6622_v60 = vpop.eup %6621  ;;  %v5253_v45 = vmul.f32 %v6620_v54, %v8122_v21  ;;  %v5136_v42 = vmul.f32 -0.75, %v5067_v39 }
 0x29b   :  { %6639 = vpow2.f32 %v5187_v49  ;;  %v6624_v13 = vpop.eup %6623  ;;  %5455 = vst [vmem:[%s8496_s3 + $0x10] sm:$0xff] %v5956_v29  ;;  %v5254_v15 = vmul.f32 %v6622_v60, %v8110_v18  ;;  %v5137_v7 = vmul.f32 -0.75, %v5069_v5 }
 0x29c   :  { %6641 = vlog2.f32 %v5020_v34  ;;  %v6626_v12 = vpop.eup %6625  ;;  %v5189_v44 = vmul.f32 1.442695, %v5136_v42  ;;  %v5071_v51 = vmul.f32 0.6931472, %v6624_v13 }
 0x29d   :  { %v6628_v46 = vpop.eup %6627  ;;  %v5957_v58 = vpack.c.bf16 %v5254_v15, %v5253_v45  ;;  %v5191_v59 = vmul.f32 1.442695, %v5137_v7  ;;  %v5073_v11 = vmul.f32 0.6931472, %v6626_v12 }
 0x29e   :  { %6643 = vpow2.f32 %v5189_v44  ;;  %v5138_v21 = vmul.f32 -0.75, %v5071_v51  ;;  %v5255_v62 = vmul.f32 %v6628_v46, %v8143_v35 }
 0x29f   :  { %v6630_v23 = vpop.eup %6629  ;;  %5456 = vst [vmem:[%s8496_s3 + $0x18] sm:$0xff] %v5957_v58  ;;  %6645 = vpow2.f32 %v5191_v59  ;;  %v5139_v18 = vmul.f32 -0.75, %v5073_v11 }
 0x2a0   :  { %v6632_v24 = vpop.eup %6631  ;;  %v5193_v63 = vmul.f32 1.442695, %v5138_v21  ;;  %v5075_v1 = vmul.f32 0.6931472, %v6630_v23 }
 0x2a1   :  { %v5256_v26 = vmul.f32 %v6632_v24, %v8131_v25  ;;  %v5195_v22 = vmul.f32 1.442695, %v5139_v18 }
 0x2a2   :  { %v6634_v61 = vpop.eup %6633  ;;  %6647 = vpow2.f32 %v5193_v63  ;;  %v5140_v28 = vmul.f32 -0.75, %v5075_v1  ;;  %v4246_v6 = vpop.f32.mrb[44].mxu0 }
 0x2a3   :  { %v6636_v52 = vpop.eup %6635  ;;  %v5257_v48 = vmul.f32 %v6634_v61, %v8162_v41  ;;  %v4317_v53 = vpop.f32.mrb[60].mxu1  ;;  %v5958_v39 = vpack.c.bf16 %v5256_v26, %v5255_v62  ;;  %6649 = vpow2.f32 %v5195_v22  ;;  %v4980_v34 = vmul.f32 5e-05, %v4246_v6 }
 0x2a4   :  { %v6638_v49 = vpop.eup %6637  ;;  %v5077_v35 = vmul.f32 0.6931472, %v6636_v52  ;;  %v4248_v54 = vpop.f32.mrb[45].mxu0  ;;  %v5197_v60 = vmul.f32 1.442695, %v5140_v28 }
 0x2a5   :  { %v4319_v29 = vpop.f32.mrb[61].mxu1  ;;  %v6640_v5 = vpop.eup %6639  ;;  %v5079_v45 = vmul.f32 0.6931472, %v6638_v49  ;;  %v4982_v42 = vmul.f32 5e-05, %v4317_v53  ;;  %5457 = vst [vmem:[%s8496_s3 + $0x20] sm:$0xff] %v5958_v39 }
 0x2a6   :  { %v6642_v25 = vpop.eup %6641  ;;  %v5258_v41 = vmul.f32 %v6640_v5, %v8150_v38  ;;  %v5141_v13 = vmul.f32 -0.75, %v5077_v35  ;;  %v5021_v15 = vadd.f32 1.0, %v4980_v34  ;;  %v4981_v7 = vmul.f32 5e-05, %v4248_v54 }
 0x2a7   :  { %6651 = vpow2.f32 %v5197_v60  ;;  %v5142_v12 = vmul.f32 -0.75, %v5079_v45  ;;  %v5081_v44 = vmul.f32 0.6931472, %v6642_v25  ;;  %v5023_v51 = vadd.f32 1.0, %v4982_v42 }
 0x2a8   :  { %v5959_v46 = vpack.c.bf16 %v5258_v41, %v5257_v48  ;;  %v5199_v58 = vmul.f32 1.442695, %v5141_v13  ;;  %6653 = vlog2.f32 %v5021_v15  ;;  %v5022_v59 = vadd.f32 1.0, %v4981_v7  ;;  %v6644_v11 = vpop.eup %6643 }
 0x2a9   :  { %v5201_v21 = vmul.f32 1.442695, %v5142_v12  ;;  %v5143_v23 = vmul.f32 -0.75, %v5081_v44  ;;  %6655 = vlog2.f32 %v5023_v51  ;;  %v4983_v62 = vmul.f32 5e-05, %v4319_v29  ;;  %v6646_v18 = vpop.eup %6645 }
 0x2aa   :  { %5458 = vst [vmem:[%s8496_s3 + $0x28] sm:$0xff] %v5959_v46  ;;  %v5259_v38 = vmul.f32 %v6644_v11, %v8181_v47  ;;  %6657 = vpow2.f32 %v5199_v58  ;;  %v5260_v24 = vmul.f32 %v6646_v18, %v8169_v0 }
 0x2ab   :  { %6659 = vpow2.f32 %v5201_v21  ;;  %v5203_v63 = vmul.f32 1.442695, %v5143_v23  ;;  %v5024_v1 = vadd.f32 1.0, %v4983_v62 }
 0x2ac   :  { %6661 = vlog2.f32 %v5022_v59  ;;  %v6648_v61 = vpop.eup %6647  ;;  %v5960_v26 = vpack.c.bf16 %v5260_v24, %v5259_v38 }
 0x2ad   :  { %6663 = vpow2.f32 %v5203_v63  ;;  %v6650_v22 = vpop.eup %6649  ;;  %v5261_v52 = vmul.f32 %v6648_v61, %v8200_v3 }
 0x2ae   :  { %6665 = vlog2.f32 %v5024_v1  ;;  %5459 = vst [vmem:[%s8496_s3 + $0x30] sm:$0xff] %v5960_v26  ;;  %v5262_v47 = vmul.f32 %v6650_v22, %v8188_v50 }
 0x2b0   :  { %v5961_v28 = vpack.c.bf16 %v5262_v47, %v5261_v52 }
 0x2b1   :  { %v6652_v48 = vpop.eup %6651 }
 0x2b2   :  { %v6654_v0 = vpop.eup %6653  ;;  %5460 = vst [vmem:[%s8496_s3 + $0x38] sm:$0xff] %v5961_v28  ;;  %v5263_v53 = vmul.f32 %v6652_v48, %v8223_v17 }
 0x2b3   :  { %v6656_v6 = vpop.eup %6655  ;;  %v5083_v49 = vmul.f32 0.6931472, %v6654_v0 }
 0x2b4   :  { %v6658_v39 = vpop.eup %6657  ;;  %v5087_v3 = vmul.f32 0.6931472, %v6656_v6 }
 0x2b5   :  { %v6660_v35 = vpop.eup %6659  ;;  %v5264_v34 = vmul.f32 %v6658_v39, %v8206_v10  ;;  %v5144_v54 = vmul.f32 -0.75, %v5083_v49 }
 0x2b6   :  { %v6662_v29 = vpop.eup %6661  ;;  %v5265_v50 = vmul.f32 %v6660_v35, %v8230_v19  ;;  %v5146_v5 = vmul.f32 -0.75, %v5087_v3 }
 0x2b7   :  { %v6664_v60 = vpop.eup %6663  ;;  %v5962_v45 = vpack.c.bf16 %v5264_v34, %v5263_v53  ;;  %v5205_v42 = vmul.f32 1.442695, %v5144_v54  ;;  %v5085_v25 = vmul.f32 0.6931472, %v6662_v29 }
 0x2b8   :  { %v6666_v41 = vpop.eup %6665  ;;  %v5266_v13 = vmul.f32 %v6664_v60, %v8219_v56  ;;  %v5209_v15 = vmul.f32 1.442695, %v5146_v5 }
 0x2b9   :  { %5461 = vst [vmem:[%s8496_s3 + $0x40] sm:$0xff] %v5962_v45  ;;  %6667 = vpow2.f32 %v5205_v42  ;;  %v5145_v17 = vmul.f32 -0.75, %v5085_v25  ;;  %v5089_v10 = vmul.f32 0.6931472, %v6666_v41 }
 0x2ba   :  { %v5963_v7 = vpack.c.bf16 %v5266_v13, %v5265_v50  ;;  %6669 = vpow2.f32 %v5209_v15 }
 0x2bb   :  { %v5207_v12 = vmul.f32 1.442695, %v5145_v17  ;;  %v5147_v19 = vmul.f32 -0.75, %v5089_v10 }
 0x2bc   :  { %5462 = vst [vmem:[%s8496_s3 + $0x48] sm:$0xff] %v5963_v7 }
 0x2bd   :  { %6671 = vpow2.f32 %v5207_v12  ;;  %v5211_v44 = vmul.f32 1.442695, %v5147_v19 }
 0x2bf   :  { %6673 = vpow2.f32 %v5211_v44 }
 0x2c3   :  { %v6668_v56 = vpop.eup %6667 }
 0x2c4   :  { %v6670_v51 = vpop.eup %6669  ;;  %v5267_v46 = vmul.f32 %v6668_v56, %v8256_v31 }
 0x2c5   :  { %v5269_v59 = vmul.f32 %v6670_v51, %v8258_v32 }
 0x2c7   :  { %v6672_v58 = vpop.eup %6671 }
 0x2c8   :  { %v5268_v11 = vmul.f32 %v6672_v58, %v8260_v36 }
 0x2c9   :  { %v6674_v21 = vpop.eup %6673 }
 0x2ca   :  { %v5964_v23 = vpack.c.bf16 %v5268_v11, %v5267_v46  ;;  %v5270_v62 = vmul.f32 %v6674_v21, %v8262_v37  ;;  %v4388_v18 = vpop.f32.mrb[46].mxu0  ;;  %v4459_v38 = vpop.f32.mrb[62].mxu1 }
 0x2cb   :  { %v4984_v63 = vmul.f32 5e-05, %v4388_v18  ;;  %v4986_v1 = vmul.f32 5e-05, %v4459_v38  ;;  %v4390_v61 = vpop.f32.mrb[47].mxu0  ;;  %v4461_v31 = vpop.f32.mrb[63].mxu1 }
 0x2cc   :  { %5463 = vst [vmem:[%s8496_s3 + $0x50] sm:$0xff] %v5964_v23  ;;  %v5965_v24 = vpack.c.bf16 %v5270_v62, %v5269_v59  ;;  %v4985_v26 = vmul.f32 5e-05, %v4390_v61  ;;  %v4987_v22 = vmul.f32 5e-05, %v4461_v31 }
 0x2cd   :  { %v5025_v32 = vadd.f32 1.0, %v4984_v63  ;;  %v5027_v36 = vadd.f32 1.0, %v4986_v1 }
 0x2ce   :  { %5464 = vst [vmem:[%s8496_s3 + $0x58] sm:$0xff] %v5965_v24  ;;  %v5026_v37 = vadd.f32 1.0, %v4985_v26  ;;  %v5028_v52 = vadd.f32 1.0, %v4987_v22 }
 0x2cf   :  { %6675 = vlog2.f32 %v5025_v32 }
 0x2d0   :  { %6677 = vlog2.f32 %v5027_v36 }
 0x2d1   :  { %6679 = vlog2.f32 %v5026_v37 }
 0x2d2   :  { %6681 = vlog2.f32 %v5028_v52 }
 0x2d9   :  { %v6676_v47 = vpop.eup %6675 }
 0x2da   :  { %v6678_v48 = vpop.eup %6677  ;;  %v5091_v28 = vmul.f32 0.6931472, %v6676_v47 }
 0x2db   :  { %v6680_v0 = vpop.eup %6679  ;;  %v5095_v6 = vmul.f32 0.6931472, %v6678_v48 }
 0x2dc   :  { %v6682_v53 = vpop.eup %6681  ;;  %v5148_v49 = vmul.f32 -0.75, %v5091_v28  ;;  %v5093_v39 = vmul.f32 0.6931472, %v6680_v0 }
 0x2dd   :  { %v5150_v3 = vmul.f32 -0.75, %v5095_v6  ;;  %v5097_v35 = vmul.f32 0.6931472, %v6682_v53 }
 0x2de   :  { %v5213_v34 = vmul.f32 1.442695, %v5148_v49  ;;  %v5149_v54 = vmul.f32 -0.75, %v5093_v39 }
 0x2df   :  { %v5217_v29 = vmul.f32 1.442695, %v5150_v3  ;;  %v5151_v50 = vmul.f32 -0.75, %v5097_v35 }
 0x2e0   :  { %6683 = vpow2.f32 %v5213_v34  ;;  %v5215_v5 = vmul.f32 1.442695, %v5149_v54 }
 0x2e1   :  { %6685 = vpow2.f32 %v5217_v29  ;;  %v5219_v60 = vmul.f32 1.442695, %v5151_v50 }
 0x2e2   :  { %6687 = vpow2.f32 %v5215_v5 }
 0x2e3   :  { %6689 = vpow2.f32 %v5219_v60 }
 0x2ea   :  { %v6684_v45 = vpop.eup %6683 }
 0x2eb   :  { %v6686_v42 = vpop.eup %6685  ;;  %v5271_v25 = vmul.f32 %v6684_v45, %v8282_v4 }
 0x2ec   :  { %v6688_v41 = vpop.eup %6687  ;;  %v5273_v13 = vmul.f32 %v6686_v42, %v8284_v9 }
 0x2ed   :  { %v6690_v15 = vpop.eup %6689  ;;  %v5272_v17 = vmul.f32 %v6688_v41, %v8286_v14 }
 0x2ee   :  { %v5274_v10 = vmul.f32 %v6690_v15, %v8288_v16 }
 0x2ef   :  { %v5966_v7 = vpack.c.bf16 %v5272_v17, %v5271_v25 }
 0x2f0   :  { %v5967_v12 = vpack.c.bf16 %v5274_v10, %v5273_v13 }
 0x2f1   :  { %5465 = vst [vmem:[%s8496_s3 + $0x60] sm:$0xff] %v5966_v7 }
 0x2f2   :  { %5466 = vst [vmem:[%s8496_s3 + $0x68] sm:$0xff] %v5967_v12  ;;  %v4530_v19 = vpop.f32.mrb[48].mxu0  ;;  %v4601_v4 = vpop.f32.mrb[64].mxu1 }
 0x2f3   :  { %v4988_v44 = vmul.f32 5e-05, %v4530_v19  ;;  %v4990_v56 = vmul.f32 5e-05, %v4601_v4  ;;  %v4532_v9 = vpop.f32.mrb[49].mxu0  ;;  %v4603_v51 = vpop.f32.mrb[65].mxu1 }
 0x2f4   :  { %v4989_v46 = vmul.f32 5e-05, %v4532_v9  ;;  %v4991_v14 = vmul.f32 5e-05, %v4603_v51 }
 0x2f5   :  { %v5029_v58 = vadd.f32 1.0, %v4988_v44  ;;  %v5031_v16 = vadd.f32 1.0, %v4990_v56 }
 0x2f6   :  { %v5030_v59 = vadd.f32 1.0, %v4989_v46  ;;  %v5032_v11 = vadd.f32 1.0, %v4991_v14 }
 0x2f7   :  { %6691 = vlog2.f32 %v5029_v58 }
 0x2f8   :  { %6693 = vlog2.f32 %v5031_v16 }
 0x2f9   :  { %6695 = vlog2.f32 %v5030_v59 }
 0x2fa   :  { %6697 = vlog2.f32 %v5032_v11 }
 0x301   :  { %v6692_v21 = vpop.eup %6691 }
 0x302   :  { %v6694_v23 = vpop.eup %6693  ;;  %v5099_v62 = vmul.f32 0.6931472, %v6692_v21 }
 0x303   :  { %v6696_v18 = vpop.eup %6695  ;;  %v5103_v38 = vmul.f32 0.6931472, %v6694_v23 }
 0x304   :  { %v6698_v24 = vpop.eup %6697  ;;  %v5152_v63 = vmul.f32 -0.75, %v5099_v62  ;;  %v5101_v1 = vmul.f32 0.6931472, %v6696_v18 }
 0x305   :  { %v5154_v61 = vmul.f32 -0.75, %v5103_v38  ;;  %v5105_v31 = vmul.f32 0.6931472, %v6698_v24 }
 0x306   :  { %v5221_v26 = vmul.f32 1.442695, %v5152_v63  ;;  %v5153_v22 = vmul.f32 -0.75, %v5101_v1 }
 0x307   :  { %v5225_v32 = vmul.f32 1.442695, %v5154_v61  ;;  %v5155_v36 = vmul.f32 -0.75, %v5105_v31 }
 0x308   :  { %6699 = vpow2.f32 %v5221_v26  ;;  %v5223_v37 = vmul.f32 1.442695, %v5153_v22 }
 0x309   :  { %6701 = vpow2.f32 %v5225_v32  ;;  %v5227_v52 = vmul.f32 1.442695, %v5155_v36 }
 0x30a   :  { %6703 = vpow2.f32 %v5223_v37 }
 0x30b   :  { %6705 = vpow2.f32 %v5227_v52 }
 0x312   :  { %v6700_v47 = vpop.eup %6699 }
 0x313   :  { %v6702_v48 = vpop.eup %6701  ;;  %v5275_v28 = vmul.f32 %v6700_v47, %v8308_v30 }
 0x314   :  { %v6704_v0 = vpop.eup %6703  ;;  %v5277_v6 = vmul.f32 %v6702_v48, %v8310_v33 }
 0x315   :  { %v6706_v53 = vpop.eup %6705  ;;  %v5276_v49 = vmul.f32 %v6704_v0, %v8312_v40 }
 0x316   :  { %v5278_v39 = vmul.f32 %v6706_v53, %v8314_v55 }
 0x317   :  { %v5968_v3 = vpack.c.bf16 %v5276_v49, %v5275_v28 }
 0x318   :  { %v5969_v35 = vpack.c.bf16 %v5278_v39, %v5277_v6 }
 0x319   :  { %5467 = vst [vmem:[%s8496_s3 + $0x70] sm:$0xff] %v5968_v3 }
 0x31a   :  { %5468 = vst [vmem:[%s8496_s3 + $0x78] sm:$0xff] %v5969_v35  ;;  %v4672_v34 = vpop.f32.mrb[50].mxu0  ;;  %v4743_v30 = vpop.f32.mrb[66].mxu1 }
 0x31b   :  { %v4992_v54 = vmul.f32 5e-05, %v4672_v34  ;;  %v4994_v29 = vmul.f32 5e-05, %v4743_v30  ;;  %v4674_v33 = vpop.f32.mrb[51].mxu0  ;;  %v4745_v50 = vpop.f32.mrb[67].mxu1 }
 0x31c   :  { %v4993_v5 = vmul.f32 5e-05, %v4674_v33  ;;  %v4995_v40 = vmul.f32 5e-05, %v4745_v50 }
 0x31d   :  { %v5033_v60 = vadd.f32 1.0, %v4992_v54  ;;  %v5035_v55 = vadd.f32 1.0, %v4994_v29 }
 0x31e   :  { %v5034_v45 = vadd.f32 1.0, %v4993_v5  ;;  %v5036_v42 = vadd.f32 1.0, %v4995_v40 }
 0x31f   :  { %6707 = vlog2.f32 %v5033_v60  ;;  %v8503_v60 = vld [vmem:[#allocation2_spill] sm:$0xff] }
 0x320   :  { %6709 = vlog2.f32 %v5035_v55 }
 0x321   :  { %6711 = vlog2.f32 %v5034_v45 }
 0x322   :  { %6713 = vlog2.f32 %v5036_v42  ;;  %v8504_v42 = vld [vmem:[#allocation3_spill] sm:$0xff] }
 0x329   :  { %v6708_v25 = vpop.eup %6707 }
 0x32a   :  { %v6710_v41 = vpop.eup %6709  ;;  %v5107_v13 = vmul.f32 0.6931472, %v6708_v25 }
 0x32b   :  { %v6712_v15 = vpop.eup %6711  ;;  %v5111_v17 = vmul.f32 0.6931472, %v6710_v41  ;;  %v8505_v41 = vld [vmem:[#allocation4_spill] sm:$0xff] }
 0x32c   :  { %v6714_v10 = vpop.eup %6713  ;;  %v5156_v7 = vmul.f32 -0.75, %v5107_v13  ;;  %v5109_v12 = vmul.f32 0.6931472, %v6712_v15 }
 0x32d   :  { %v5158_v19 = vmul.f32 -0.75, %v5111_v17  ;;  %v5113_v4 = vmul.f32 0.6931472, %v6714_v10 }
 0x32e   :  { %v5229_v44 = vmul.f32 1.442695, %v5156_v7  ;;  %v5157_v56 = vmul.f32 -0.75, %v5109_v12 }
 0x32f   :  { %v5233_v9 = vmul.f32 1.442695, %v5158_v19  ;;  %v5159_v51 = vmul.f32 -0.75, %v5113_v4 }
 0x330   :  { %6715 = vpow2.f32 %v5229_v44  ;;  %v5231_v46 = vmul.f32 1.442695, %v5157_v56 }
 0x331   :  { %6717 = vpow2.f32 %v5233_v9  ;;  %v5235_v14 = vmul.f32 1.442695, %v5159_v51 }
 0x332   :  { %6719 = vpow2.f32 %v5231_v46 }
 0x333   :  { %6721 = vpow2.f32 %v5235_v14 }
 0x33a   :  { %v6716_v58 = vpop.eup %6715 }
 0x33b   :  { %v6718_v16 = vpop.eup %6717  ;;  %v5279_v59 = vmul.f32 %v6716_v58, %v8334_v20 }
 0x33c   :  { %v6720_v11 = vpop.eup %6719  ;;  %v5281_v21 = vmul.f32 %v6718_v16, %v8336_v57 }
 0x33d   :  { %v6722_v23 = vpop.eup %6721  ;;  %v5280_v62 = vmul.f32 %v6720_v11, %v8338_v2 }
 0x33e   :  { %v5282_v18 = vmul.f32 %v6722_v23, %v8340_v43 }
 0x33f   :  { %v5970_v38 = vpack.c.bf16 %v5280_v62, %v5279_v59 }
 0x340   :  { %v5971_v24 = vpack.c.bf16 %v5282_v18, %v5281_v21 }
 0x341   :  { %5469 = vst [vmem:[%s8496_s3 + $0x80] sm:$0xff] %v5970_v38 }
 0x342   :  { %5470 = vst [vmem:[%s8496_s3 + $0x88] sm:$0xff] %v5971_v24  ;;  %v4814_v63 = vpop.f32.mrb[52].mxu0  ;;  %v4885_v20 = vpop.f32.mrb[68].mxu1 }
 0x343   :  { %v4996_v1 = vmul.f32 5e-05, %v4814_v63  ;;  %v4998_v61 = vmul.f32 5e-05, %v4885_v20  ;;  %v4816_v57 = vpop.f32.mrb[53].mxu0  ;;  %v4887_v31 = vpop.f32.mrb[69].mxu1 }
 0x344   :  { %v4997_v26 = vmul.f32 5e-05, %v4816_v57  ;;  %v4999_v2 = vmul.f32 5e-05, %v4887_v31 }
 0x345   :  { %v5037_v22 = vadd.f32 1.0, %v4996_v1  ;;  %v5039_v43 = vadd.f32 1.0, %v4998_v61 }
 0x346   :  { %v5038_v32 = vadd.f32 1.0, %v4997_v26  ;;  %v5040_v36 = vadd.f32 1.0, %v4999_v2 }
 0x347   :  { %6723 = vlog2.f32 %v5037_v22 }
 0x348   :  { %6725 = vlog2.f32 %v5039_v43 }
 0x349   :  { %6727 = vlog2.f32 %v5038_v32 }
 0x34a   :  { %6729 = vlog2.f32 %v5040_v36 }
 0x351   :  { %v6724_v37 = vpop.eup %6723 }
 0x352   :  { %v6726_v52 = vpop.eup %6725  ;;  %v5115_v47 = vmul.f32 0.6931472, %v6724_v37 }
 0x353   :  { %v6728_v48 = vpop.eup %6727  ;;  %v5119_v28 = vmul.f32 0.6931472, %v6726_v52 }
 0x354   :  { %v6730_v0 = vpop.eup %6729  ;;  %v5160_v6 = vmul.f32 -0.75, %v5115_v47  ;;  %v5117_v53 = vmul.f32 0.6931472, %v6728_v48 }
 0x355   :  { %v5162_v49 = vmul.f32 -0.75, %v5119_v28  ;;  %v5121_v39 = vmul.f32 0.6931472, %v6730_v0 }
 0x356   :  { %v5237_v3 = vmul.f32 1.442695, %v5160_v6  ;;  %v5161_v35 = vmul.f32 -0.75, %v5117_v53 }
 0x357   :  { %v5241_v34 = vmul.f32 1.442695, %v5162_v49  ;;  %v5163_v30 = vmul.f32 -0.75, %v5121_v39 }
 0x358   :  { %6731 = vpow2.f32 %v5237_v3  ;;  %v5239_v54 = vmul.f32 1.442695, %v5161_v35 }
 0x359   :  { %6733 = vpow2.f32 %v5241_v34  ;;  %v5243_v29 = vmul.f32 1.442695, %v5163_v30 }
 0x35a   :  { %6735 = vpow2.f32 %v5239_v54 }
 0x35b   :  { %6737 = vpow2.f32 %v5243_v29 }
 0x362   :  { %v6732_v33 = vpop.eup %6731 }
 0x363   :  { %v6734_v50 = vpop.eup %6733  ;;  %v5283_v5 = vmul.f32 %v6732_v33, %v8360_v8 }
 0x364   :  { %v6736_v40 = vpop.eup %6735  ;;  %v5285_v55 = vmul.f32 %v6734_v50, %v8503_v60 }
 0x365   :  { %v6738_v45 = vpop.eup %6737  ;;  %v5284_v25 = vmul.f32 %v6736_v40, %v8504_v42 }
 0x366   :  { %v5286_v13 = vmul.f32 %v6738_v45, %v8505_v41 }
 0x367   :  { %v5972_v15 = vpack.c.bf16 %v5284_v25, %v5283_v5 }
 0x368   :  { %v5973_v17 = vpack.c.bf16 %v5286_v13, %v5285_v55 }
 0x369   :  { %5471 = vst [vmem:[%s8496_s3 + $0x90] sm:$0xff] %v5972_v15 }
 0x36a   :  { %5472 = vst [vmem:[%s8496_s3 + $0x98] sm:$0xff] %v5973_v17  ;;  %v4956_v10 = vpop.f32.mrb[54].mxu0 }
 0x36b   :  { %v5000_v8 = vmul.f32 5e-05, %v4956_v10  ;;  %v5981_v7 = vpop.f32.mrb[55].mxu0 }
 0x36d   :  { %v5041_v12 = vadd.f32 1.0, %v5000_v8 }
 0x36f   :  { %6739 = vlog2.f32 %v5041_v12 }
 0x379   :  { %v6740_v19 = vpop.eup %6739 }
 0x37a   :  { %v5123_v4 = vmul.f32 0.6931472, %v6740_v19 }
 0x37c   :  { %v5164_v44 = vmul.f32 -0.75, %v5123_v4 }
 0x37e   :  { %v5245_v56 = vmul.f32 1.442695, %v5164_v44 }
 0x380   :  { %6741 = vpow2.f32 %v5245_v56 }
 0x38a   :  { %v6742_v9 = vpop.eup %6741 }
 0x38b   :  { %v5287_v51 = vmul.f32 %v6742_v9, %v8386_v27 }
 0x38d   :  { %v5974_v46 = vpack.c.bf16 %v5287_v51, %v5287_v51 }
 0x38f   :  { %5473 = vst [vmem:[%s8496_s3 + $0xa0] sm:$0xf] %v5974_v46 }

// kernel: mdnet_forward.4
= control target key start
LH: loop header
LB: loop body
LE: loop exit
PB: predicated region body
PF: predicated region fallthrough
CT: control target
= control target key end

     0   :  { %v501_v1 = vmov 0   ;;  %vm188_vm0 = vcmask 588800   ;;  %vm192_vm1 = vcmask 1043456   ;;  %v502_v33 = vmov 0.0   ;;  %s631_s0 = inlined_call_operand.vmem [shape: bf16[200,256], index: 0, kind: input, shape index: {}]   ;;  %s632_s1 = inlined_call_operand.vmem [shape: bf16[16,200], index: 1, kind: input, shape index: {}]   ;;  %s633_s2 = inlined_call_operand.vmem [shape: f32[16,1], index: 2, kind: input, shape index: {}]   ;;  %s634_s3 = inlined_call_operand.vmem [shape: bf16[16,256], index: 3, kind: output, shape index: {}]  }
   0x1   :  { %v444_v0 = vld [vmem:[%s631_s0 + $0x4] ss:$8 sps:$4 sm:$0xff]   ;;  %443 = vset.pattern.permute.xlu0 %v501_v1  ;;  %v446_v2 = vld [vmem:[%s631_s0] ss:$8 sps:$4 sm:$0xff]   ;;  %v447_v3 = vld [vmem:[%s631_s0 + $0x14] ss:$8 sps:$4 sm:$0xff]   ;;  %336 = vmatprep.mubr.f32.mxu1 %v502_v33  ;;  %v250_v34 = vlaneseq }
   0x2   :  { %199 = vmatprep.subr.bf16.mxu0 %v444_v0  ;;  %v449_v4 = vld [vmem:[%s631_s0 + $0x10] ss:$8 sps:$4 sm:$0xff]   ;;  %v450_v5 = vld [vmem:[%s631_s0 + $0x24] ss:$8 sps:$4 sm:$0xff]   ;;  %v452_v6 = vld [vmem:[%s631_s0 + $0x20] ss:$8 sps:$4 sm:$0xff]  }
   0x3   :  { %200 = vmatpush1.bf16.msra.mxu0 %v446_v2  ;;  %v453_v7 = vld [vmem:[%s631_s0 + $0x34] ss:$8 sps:$4 sm:$0xff]   ;;  %v455_v8 = vld [vmem:[%s631_s0 + $0x30] ss:$8 sps:$4 sm:$0xff]   ;;  %v456_v9 = vld [vmem:[%s631_s0 + $0x44] ss:$8 sps:$4 sm:$0xff]  }
   0x4   :  { %201 = vmatprep.subr.bf16.mxu0 %v447_v3  ;;  %v458_v10 = vld [vmem:[%s631_s0 + $0x40] ss:$8 sps:$4 sm:$0xff]   ;;  %v459_v11 = vld [vmem:[%s631_s0 + $0x54] ss:$8 sps:$4 sm:$0xff]   ;;  %v484_v12 = vld [vmem:[%s632_s1 + $0x4] ss:$8 sps:$4 sm:$0xff]  }
   0x5   :  { %v42_v13 = vld [vmem:[%s633_s2] sm:$0xff]  ;;  %v461_v14 = vld [vmem:[%s631_s0 + $0x50] ss:$8 sps:$4 sm:$0xff]   ;;  %428 = vmatprep.mubr.msk.bf16.mxu0 %vm188_vm0, %v484_v12  ;;  %v43_v15 = vld [vmem:[%s633_s2 + $0x8] sm:$0xff]  ;;  %v251_v36 = vshrl.u32 %v250_v34, 7  ;;  %v254_v45 = vand.u32 127, %v250_v34 }
   0x6   :  { %46 = vperm.xlu0 %443, %v42_v13   ;;  %v462_v16 = vld [vmem:[%s631_s0 + $0x64] ss:$8 sps:$4 sm:$0xff]   ;;  %v464_v17 = vld [vmem:[%s631_s0 + $0x60] ss:$8 sps:$4 sm:$0xff]   ;;  %v465_v18 = vld [vmem:[%s631_s0 + $0x74] ss:$8 sps:$4 sm:$0xff]  }
   0x7   :  { %202 = vmatpush1.bf16.msra.mxu0 %v449_v4  ;;  %v467_v19 = vld [vmem:[%s631_s0 + $0x70] ss:$8 sps:$4 sm:$0xff]   ;;  %v468_v20 = vld [vmem:[%s631_s0 + $0x84] ss:$8 sps:$4 sm:$0xff]   ;;  %v470_v21 = vld [vmem:[%s631_s0 + $0x80] ss:$8 sps:$4 sm:$0xff]   ;;  %vm259_vm3 = vcmp.le.s32.totalorder %v254_v45, %v251_v36 }
   0x8   :  { %203 = vmatprep.subr.bf16.mxu0 %v450_v5  ;;  %v471_v22 = vld [vmem:[%s631_s0 + $0x94] ss:$8 sps:$4 sm:$0xff]   ;;  %v473_v23 = vld [vmem:[%s631_s0 + $0x90] ss:$8 sps:$4 sm:$0xff]   ;;  %v474_v24 = vld [vmem:[%s631_s0 + $0xa4] ss:$8 sps:$4 sm:$0xff]  }
   0x9   :  { %v476_v25 = vld [vmem:[%s631_s0 + $0xa0] ss:$8 sps:$4 sm:$0xff]   ;;  %v477_v26 = vld [vmem:[%s631_s0 + $0xb4] ss:$8 sps:$4 sm:$0xff]   ;;  %v479_v28 = vld [vmem:[%s631_s0 + $0xb0] ss:$8 sps:$4 sm:$0xff]  }
   0xa   :  { %51 = vperm.xlu0 %443, %v43_v15   ;;  %v41_v27 = vld [vmem:[%s631_s0 + $0xc0] sm:$0xff]  ;;  %v429_v46 = vadd.s32 4294967295, %v251_v36  ;;  %v252_v47 = vadd.s32 8, %v251_v36  ;;  %vm265_vm7 = vcmask 130048  }
   0xb   :  { %204 = vmatpush1.bf16.msra.mxu0 %v452_v6  ;;  %v426_v29 = vcombine.high %v41_v27, %v41_v27  ;;  %v425_v30 = vcombine.low %v41_v27, %v41_v27  ;;  %v482_v32 = vld [vmem:[%s632_s1] ss:$8 sps:$4 sm:$0xff]  }
   0xc   :  { %205 = vmatprep.subr.bf16.mxu0 %v453_v7  ;;  %vm257_vm2 = vcmp.ge.s32.totalorder %v254_v45, %v429_v46  ;;  %v430_v54 = vadd.s32 4294967295, %v252_v47  ;;  %vm260_vm6 = vcmp.le.s32.totalorder %v254_v45, %v252_v47 }
   0xd   :  { %v194_v31 = vsel %vm192_vm1, %v425_v30, 0  ;;  %vm261_vm4 = vmand %vm257_vm2, %vm259_vm3 }
   0xe   :  { %vm258_vm5 = vcmp.ge.s32.totalorder %v254_v45, %v430_v54  ;;  %v263_v60 = vsel %vm261_vm4, 1.0, %v502_v33 }
   0xf   :  { %206 = vmatpush1.bf16.msra.mxu0 %v455_v8  ;;  %vm262_vm8 = vmand %vm258_vm5, %vm260_vm6 }
  0x10   :  { %207 = vmatprep.subr.bf16.mxu0 %v456_v9  ;;  %v264_v61 = vsel %vm262_vm8, 1.0, %v502_v33 }
  0x13   :  { %208 = vmatpush1.bf16.msra.mxu0 %v458_v10 }
  0x14   :  { %209 = vmatprep.subr.bf16.mxu0 %v459_v11 }
  0x17   :  { %210 = vmatpush1.bf16.msra.mxu0 %v461_v14 }
  0x18   :  { %211 = vmatprep.subr.bf16.mxu0 %v462_v16 }
  0x1b   :  { %212 = vmatpush1.bf16.msra.mxu0 %v464_v17 }
  0x1c   :  { %213 = vmatprep.subr.bf16.mxu0 %v465_v18 }
  0x1f   :  { %214 = vmatpush1.bf16.msra.mxu0 %v467_v19 }
  0x20   :  { %215 = vmatprep.subr.bf16.mxu0 %v468_v20 }
  0x23   :  { %216 = vmatpush1.bf16.msra.mxu0 %v470_v21 }
  0x24   :  { %217 = vmatprep.subr.bf16.mxu0 %v471_v22 }
  0x27   :  { %218 = vmatpush1.bf16.msra.mxu0 %v473_v23 }
  0x28   :  { %219 = vmatprep.subr.bf16.mxu0 %v474_v24 }
  0x2b   :  { %220 = vmatpush1.bf16.msra.mxu0 %v476_v25 }
  0x2c   :  { %221 = vmatprep.subr.bf16.mxu0 %v477_v26 }
  0x2f   :  { %222 = vmatpush1.bf16.msra.mxu0 %v479_v28 }
  0x30   :  { %427 = vmatprep.subr.msk.bf16.mxu0 %vm192_vm1, %v426_v29 }
  0x33   :  { %224 = vmatpush1.bf16.msra.mxu0 %v194_v31 }
  0x36   :  { %232 = vmatmul.mubr.bf16.vlgmr.msra.gmra.mrb[0].mxu0 %v482_v32 }
  0x85   :  { %v47_v35 = vpop.permute.xlu0 %46 }
  0x89   :  { %v52_v40 = vpop.permute.xlu0 %51 }
 0x109   :  { %v233_v37 = vpop.f32.mrb[0].mxu0 }
 0x10a   :  { %v234_v38 = vadd.f32 %v233_v37, %v47_v35  ;;  %v235_v39 = vpop.f32.mrb[1].mxu0 }
 0x10b   :  { %v236_v41 = vadd.f32 %v235_v39, %v47_v35  ;;  %v237_v42 = vpop.f32.mrb[2].mxu0 }
 0x10c   :  { %v238_v43 = vadd.f32 %v237_v42, %v52_v40  ;;  %v239_v44 = vpop.f32.mrb[3].mxu0  ;;  %v242_v50 = vmax.f32 %v234_v38, 0.0 }
 0x10d   :  { %v610_v48 = vmax.f32 %v236_v41, 0.0  ;;  %v240_v49 = vadd.f32 %v239_v44, %v52_v40 }
 0x10e   :  { %v612_v51 = vmax.f32 %v238_v43, 0.0  ;;  %v246_v57 = vmul.f32 %v242_v50, %v242_v50 }
 0x10f   :  { %v614_v52 = vmax.f32 %v240_v49, 0.0  ;;  %v247_v55 = vmul.f32 %v610_v48, %v610_v48 }
 0x110   :  { %v248_v53 = vmul.f32 %v612_v51, %v612_v51 }
 0x111   :  { %v249_v56 = vmul.f32 %v614_v52, %v614_v52 }
 0x112   :  { %v439_v59 = vpack.c.bf16 %v248_v53, %v246_v57 }
 0x113   :  { %v437_v58 = vpack.c.bf16 %v249_v56, %v247_v55 }
 0x115   :  { %438 = vmatprep.subr.bf16.mxu1 %v437_v58 }
 0x116   :  { %440 = vmatpush1.bf16.msra.mxu1 %v439_v59 }
 0x119   :  { %431 = vmatmul.mubr.msk.f32.vlgmr.msra.gmra.mrb[0].mxu1 %vm265_vm7, %v263_v60 }
 0x11a   :  { %342 = vmatprep.mubr.f32.mxu1 %v502_v33 }
 0x11d   :  { %432 = vmatmul.mubr.msk.f32.gmra.mrb[2].mxu1 %vm265_vm7, %v264_v61 }
 0x1ec   :  { %v338_v62 = vpop.f32.mrb[0].mxu1 }
 0x1ed   :  { %v349_v63 = vmul.f32 5e-05, %v338_v62  ;;  %v340_v0 = vpop.f32.mrb[1].mxu1 }
 0x1ee   :  { %v350_v1 = vmul.f32 5e-05, %v340_v0 }
 0x1ef   :  { %v353_v2 = vadd.f32 1.0, %v349_v63 }
 0x1f0   :  { %v354_v3 = vadd.f32 1.0, %v350_v1  ;;  %v344_v4 = vpop.f32.mrb[2].mxu1 }
 0x1f1   :  { %485 = vlog2.f32 %v353_v2  ;;  %v351_v5 = vmul.f32 5e-05, %v344_v4  ;;  %v346_v6 = vpop.f32.mrb[3].mxu1 }
 0x1f2   :  { %487 = vlog2.f32 %v354_v3  ;;  %v352_v7 = vmul.f32 5e-05, %v346_v6 }
 0x1f3   :  { %v355_v8 = vadd.f32 1.0, %v351_v5 }
 0x1f4   :  { %v356_v9 = vadd.f32 1.0, %v352_v7 }
 0x1f5   :  { %489 = vlog2.f32 %v355_v8 }
 0x1f6   :  { %491 = vlog2.f32 %v356_v9 }
 0x1fb   :  { %v486_v10 = vpop.eup %485 }
 0x1fc   :  { %v488_v11 = vpop.eup %487  ;;  %v358_v12 = vmul.f32 0.6931472, %v486_v10 }
 0x1fd   :  { %v360_v13 = vmul.f32 0.6931472, %v488_v11 }
 0x1fe   :  { %v365_v14 = vmul.f32 -0.75, %v358_v12 }
 0x1ff   :  { %v490_v15 = vpop.eup %489  ;;  %v366_v16 = vmul.f32 -0.75, %v360_v13 }
 0x200   :  { %v492_v17 = vpop.eup %491  ;;  %v369_v18 = vmul.f32 1.442695, %v365_v14  ;;  %v362_v19 = vmul.f32 0.6931472, %v490_v15 }
 0x201   :  { %v371_v20 = vmul.f32 1.442695, %v366_v16  ;;  %v364_v21 = vmul.f32 0.6931472, %v492_v17 }
 0x202   :  { %493 = vpow2.f32 %v369_v18  ;;  %v367_v22 = vmul.f32 -0.75, %v362_v19 }
 0x203   :  { %495 = vpow2.f32 %v371_v20  ;;  %v368_v23 = vmul.f32 -0.75, %v364_v21 }
 0x204   :  { %v373_v24 = vmul.f32 1.442695, %v367_v22 }
 0x205   :  { %v375_v25 = vmul.f32 1.442695, %v368_v23 }
 0x206   :  { %497 = vpow2.f32 %v373_v24 }
 0x207   :  { %499 = vpow2.f32 %v375_v25 }
 0x20c   :  { %v494_v26 = vpop.eup %493 }
 0x20d   :  { %v496_v27 = vpop.eup %495  ;;  %v377_v28 = vmul.f32 %v494_v26, %v242_v50 }
 0x20e   :  { %v378_v29 = vmul.f32 %v496_v27, %v610_v48 }
 0x210   :  { %v498_v30 = vpop.eup %497  ;;  %v435_v31 = vpack.c.bf16 %v378_v29, %v377_v28 }
 0x211   :  { %v500_v32 = vpop.eup %499  ;;  %v379_v33 = vmul.f32 %v498_v30, %v612_v51 }
 0x212   :  { %393 = vst [vmem:[%s634_s3] sm:$0xff] %v435_v31  ;;  %v380_v34 = vmul.f32 %v500_v32, %v614_v52 }
 0x214   :  { %v436_v35 = vpack.c.bf16 %v380_v34, %v379_v33 }
 0x216   :  { %394 = vst [vmem:[%s634_s3 + $0x8] sm:$0xff] %v436_v35 }

// kernel: mdnet_forward.5
= control target key start
LH: loop header
LB: loop body
LE: loop exit
PB: predicated region body
PF: predicated region fallthrough
CT: control target
= control target key end

     0   :  { %vm3478_vm0 = vmmov 0   ;;  %vm1714_vm1 = vcmask 130048   ;;  %vm2361_vm2 = vcmask 261120   ;;  %vm2486_vm3 = vcmask 523264   ;;  %s4441_s1 = inlined_call_operand.vmem [shape: bf16[1296,288], index: 1, kind: input, shape index: {}]   ;;  %s4442_s0 = inlined_call_operand.vmem [shape: bf16[8,1296], index: 0, kind: input, shape index: {}]   ;;  %s4443_s3 = inlined_call_operand.vmem [shape: bf16[288,64], index: 3, kind: input, shape index: {}]   ;;  %s4444_s2 = inlined_call_operand.vmem [shape: f32[1,288], index: 2, kind: input, shape index: {}]   ;;  %s4445_s5 = inlined_call_operand.vmem [shape: bf16[64,64], index: 5, kind: input, shape index: {}]   ;;  %s4446_s7 = inlined_call_operand.vmem [shape: bf16[64,2], index: 7, kind: input, shape index: {}]   ;;  %s4447_s4 = inlined_call_operand.vmem [shape: f32[1,64], index: 4, kind: input, shape index: {}]   ;;  %s4448_s6 = inlined_call_operand.vmem [shape: f32[1,64], index: 6, kind: input, shape index: {}]   ;;  %s4449_s8 = inlined_call_operand.vmem [shape: f32[1,2], index: 8, kind: input, shape index: {}]   ;;  %s4450_s9 = inlined_call_operand.vmem [shape: f32[8,2], index: 9, kind: output, shape index: {}]  }
   0x1   :  { %v3116_v0 = vld [vmem:[%s4441_s1 + $0x4] ss:$12 sps:$4 sm:$0xff]   ;;  %v3120_v2 = vld [vmem:[%s4441_s1] ss:$12 sps:$4 sm:$0xff]   ;;  %v3122_v4 = vld [vmem:[%s4441_s1 + $0x1c] ss:$12 sps:$4 sm:$0xff]  }
   0x2   :  { %v3118_v1 = vld [vmem:[%s4441_s1 + $0x184] ss:$12 sps:$4 sm:$0xff]   ;;  %1718 = vmatprep.subr.bf16.mxu1 %v3116_v0  ;;  %v3121_v3 = vld [vmem:[%s4441_s1 + $0x180] ss:$12 sps:$4 sm:$0xff]   ;;  %v3124_v5 = vld [vmem:[%s4441_s1 + $0x19c] ss:$12 sps:$4 sm:$0xff]  }
   0x3   :  { %1759 = vmatprep.subr.bf16.mxu0 %v3118_v1  ;;  %1719 = vmatpush1.bf16.msra.mxu1 %v3120_v2  ;;  %v3126_v6 = vld [vmem:[%s4441_s1 + $0x18] ss:$12 sps:$4 sm:$0xff]   ;;  %v3128_v8 = vld [vmem:[%s4441_s1 + $0x34] ss:$12 sps:$4 sm:$0xff]   ;;  %v3132_v10 = vld [vmem:[%s4441_s1 + $0x30] ss:$12 sps:$4 sm:$0xff]  }
   0x4   :  { %1760 = vmatpush1.bf16.msra.mxu0 %v3121_v3  ;;  %1720 = vmatprep.subr.bf16.mxu1 %v3122_v4  ;;  %v3127_v7 = vld [vmem:[%s4441_s1 + $0x198] ss:$12 sps:$4 sm:$0xff]   ;;  %v3130_v9 = vld [vmem:[%s4441_s1 + $0x1b4] ss:$12 sps:$4 sm:$0xff]   ;;  %v3133_v11 = vld [vmem:[%s4441_s1 + $0x1b0] ss:$12 sps:$4 sm:$0xff]  }
   0x5   :  { %1761 = vmatprep.subr.bf16.mxu0 %v3124_v5  ;;  %v3134_v12 = vld [vmem:[%s4441_s1 + $0x4c] ss:$12 sps:$4 sm:$0xff]   ;;  %v3138_v14 = vld [vmem:[%s4441_s1 + $0x48] ss:$12 sps:$4 sm:$0xff]   ;;  %v3140_v16 = vld [vmem:[%s4441_s1 + $0x64] ss:$12 sps:$4 sm:$0xff]  }
   0x6   :  { %v3136_v13 = vld [vmem:[%s4441_s1 + $0x1cc] ss:$12 sps:$4 sm:$0xff]   ;;  %v3139_v15 = vld [vmem:[%s4441_s1 + $0x1c8] ss:$12 sps:$4 sm:$0xff]   ;;  %v3142_v17 = vld [vmem:[%s4441_s1 + $0x1e4] ss:$12 sps:$4 sm:$0xff]  }
   0x7   :  { %1721 = vmatpush1.bf16.msra.mxu1 %v3126_v6  ;;  %v3144_v18 = vld [vmem:[%s4441_s1 + $0x60] ss:$12 sps:$4 sm:$0xff]   ;;  %v3146_v20 = vld [vmem:[%s4441_s1 + $0x7c] ss:$12 sps:$4 sm:$0xff]   ;;  %v3150_v22 = vld [vmem:[%s4441_s1 + $0x78] ss:$12 sps:$4 sm:$0xff]  }
   0x8   :  { %1762 = vmatpush1.bf16.msra.mxu0 %v3127_v7  ;;  %1722 = vmatprep.subr.bf16.mxu1 %v3128_v8  ;;  %v3145_v19 = vld [vmem:[%s4441_s1 + $0x1e0] ss:$12 sps:$4 sm:$0xff]   ;;  %v3148_v21 = vld [vmem:[%s4441_s1 + $0x1fc] ss:$12 sps:$4 sm:$0xff]   ;;  %v3151_v23 = vld [vmem:[%s4441_s1 + $0x1f8] ss:$12 sps:$4 sm:$0xff]  }
   0x9   :  { %1763 = vmatprep.subr.bf16.mxu0 %v3130_v9  ;;  %v3152_v24 = vld [vmem:[%s4441_s1 + $0x94] ss:$12 sps:$4 sm:$0xff]   ;;  %v3156_v26 = vld [vmem:[%s4441_s1 + $0x90] ss:$12 sps:$4 sm:$0xff]   ;;  %v3158_v28 = vld [vmem:[%s4441_s1 + $0xac] ss:$12 sps:$4 sm:$0xff]  }
   0xa   :  { %v3154_v25 = vld [vmem:[%s4441_s1 + $0x214] ss:$12 sps:$4 sm:$0xff]   ;;  %v3157_v27 = vld [vmem:[%s4441_s1 + $0x210] ss:$12 sps:$4 sm:$0xff]   ;;  %v3160_v29 = vld [vmem:[%s4441_s1 + $0x22c] ss:$12 sps:$4 sm:$0xff]  }
   0xb   :  { %1723 = vmatpush1.bf16.msra.mxu1 %v3132_v10  ;;  %v3162_v30 = vld [vmem:[%s4441_s1 + $0xa8] ss:$12 sps:$4 sm:$0xff]   ;;  %v3164_v32 = vld [vmem:[%s4441_s1 + $0xc4] ss:$12 sps:$4 sm:$0xff]   ;;  %v3168_v34 = vld [vmem:[%s4441_s1 + $0xc0] ss:$12 sps:$4 sm:$0xff]  }
   0xc   :  { %1764 = vmatpush1.bf16.msra.mxu0 %v3133_v11  ;;  %1724 = vmatprep.subr.bf16.mxu1 %v3134_v12  ;;  %v3163_v31 = vld [vmem:[%s4441_s1 + $0x228] ss:$12 sps:$4 sm:$0xff]   ;;  %v3166_v33 = vld [vmem:[%s4441_s1 + $0x244] ss:$12 sps:$4 sm:$0xff]   ;;  %v3169_v35 = vld [vmem:[%s4441_s1 + $0x240] ss:$12 sps:$4 sm:$0xff]  }
   0xd   :  { %1765 = vmatprep.subr.bf16.mxu0 %v3136_v13  ;;  %v3170_v36 = vld [vmem:[%s4441_s1 + $0xdc] ss:$12 sps:$4 sm:$0xff]   ;;  %v3174_v38 = vld [vmem:[%s4441_s1 + $0xd8] ss:$12 sps:$4 sm:$0xff]   ;;  %v3176_v40 = vld [vmem:[%s4441_s1 + $0xf4] ss:$12 sps:$4 sm:$0xff]  }
   0xe   :  { %v3172_v37 = vld [vmem:[%s4441_s1 + $0x25c] ss:$12 sps:$4 sm:$0xff]   ;;  %v3175_v39 = vld [vmem:[%s4441_s1 + $0x258] ss:$12 sps:$4 sm:$0xff]   ;;  %v3178_v41 = vld [vmem:[%s4441_s1 + $0x274] ss:$12 sps:$4 sm:$0xff]  }
   0xf   :  { %1725 = vmatpush1.bf16.msra.mxu1 %v3138_v14  ;;  %v3180_v42 = vld [vmem:[%s4441_s1 + $0xf0] ss:$12 sps:$4 sm:$0xff]   ;;  %v3182_v44 = vld [vmem:[%s4441_s1 + $0x10c] ss:$12 sps:$4 sm:$0xff]   ;;  %v3186_v46 = vld [vmem:[%s4441_s1 + $0x108] ss:$12 sps:$4 sm:$0xff]  }
  0x10   :  { %1766 = vmatpush1.bf16.msra.mxu0 %v3139_v15  ;;  %1726 = vmatprep.subr.bf16.mxu1 %v3140_v16  ;;  %v3181_v43 = vld [vmem:[%s4441_s1 + $0x270] ss:$12 sps:$4 sm:$0xff]   ;;  %v3184_v45 = vld [vmem:[%s4441_s1 + $0x28c] ss:$12 sps:$4 sm:$0xff]   ;;  %v33_v47 = vld [vmem:[%s4442_s0] sm:$0xff]  ;;  %vm2614_vm4 = vcmask 15360  }
  0x11   :  { %1767 = vmatprep.subr.bf16.mxu0 %v3142_v17  ;;  %v3674_v48 = vcombine.high %v33_v47, %v33_v47  ;;  %v34_v49 = vld [vmem:[%s4442_s0 + $0x8] sm:$0xff]  ;;  %v3188_v51 = vld [vmem:[%s4441_s1 + $0x124] ss:$12 sps:$4 sm:$0xff]   ;;  %v3200_v60 = vld [vmem:[%s4441_s1 + $0x154] ss:$12 sps:$4 sm:$0xff]   ;;  %v3740_v6 = vcombine.low %v33_v47, %v33_v47 }
  0x12   :  { %v3187_v50 = vld [vmem:[%s4441_s1 + $0x288] ss:$12 sps:$4 sm:$0xff]   ;;  %v3685_v52 = vcombine.high %v34_v49, %v34_v49  ;;  %v3190_v53 = vld [vmem:[%s4441_s1 + $0x2a4] ss:$12 sps:$4 sm:$0xff]   ;;  %v3192_v54 = vld [vmem:[%s4441_s1 + $0x120] ss:$12 sps:$4 sm:$0xff]   ;;  %v3742_v7 = vcombine.low %v34_v49, %v34_v49 }
  0x13   :  { %1727 = vmatpush1.bf16.msra.mxu1 %v3144_v18  ;;  %1750 = vmatprep.mubr.bf16.mxu1 %v3674_v48  ;;  %v3193_v55 = vld [vmem:[%s4441_s1 + $0x2a0] ss:$12 sps:$4 sm:$0xff]   ;;  %v3194_v56 = vld [vmem:[%s4441_s1 + $0x13c] ss:$12 sps:$4 sm:$0xff]   ;;  %v3198_v58 = vld [vmem:[%s4441_s1 + $0x138] ss:$12 sps:$4 sm:$0xff]  }
  0x14   :  { %1768 = vmatpush1.bf16.msra.mxu0 %v3145_v19  ;;  %1728 = vmatprep.subr.bf16.mxu1 %v3146_v20  ;;  %v3196_v57 = vld [vmem:[%s4441_s1 + $0x2bc] ss:$12 sps:$4 sm:$0xff]   ;;  %v3199_v59 = vld [vmem:[%s4441_s1 + $0x2b8] ss:$12 sps:$4 sm:$0xff]   ;;  %v3202_v61 = vld [vmem:[%s4441_s1 + $0x2d4] ss:$12 sps:$4 sm:$0xff]  }
  0x15   :  { %1769 = vmatprep.subr.bf16.mxu0 %v3148_v21  ;;  %1791 = vmatprep.mubr.bf16.mxu0 %v3685_v52  ;;  %v3204_v62 = vld [vmem:[%s4441_s1 + $0x150] ss:$12 sps:$4 sm:$0xff]   ;;  %v3206_v0 = vld [vmem:[%s4441_s1 + $0x16c] ss:$12 sps:$4 sm:$0xff]   ;;  %v3210_v2 = vld [vmem:[%s4441_s1 + $0x168] ss:$12 sps:$4 sm:$0xff]  }
  0x16   :  { %v3205_v63 = vld [vmem:[%s4441_s1 + $0x2d0] ss:$12 sps:$4 sm:$0xff]   ;;  %v3208_v1 = vld [vmem:[%s4441_s1 + $0x2ec] ss:$12 sps:$4 sm:$0xff]   ;;  %v3211_v3 = vld [vmem:[%s4441_s1 + $0x2e8] ss:$12 sps:$4 sm:$0xff]  }
  0x17   :  { %1729 = vmatpush1.bf16.msra.mxu1 %v3150_v22  ;;  %v3218_v4 = vld [vmem:[%s4441_s1 + $0x304] ss:$12 sps:$4 sm:$0xff]   ;;  %v3219_v5 = vld [vmem:[%s4441_s1 + $0xc8] ss:$12 sps:$4 sm:$0xff]   ;;  %v3216_v8 = vld [vmem:[%s4441_s1 + $0x300] ss:$12 sps:$4 sm:$0xff]  }
  0x18   :  { %1770 = vmatpush1.bf16.msra.mxu0 %v3151_v23  ;;  %1730 = vmatprep.subr.bf16.mxu1 %v3152_v24  ;;  %v3220_v9 = vld [vmem:[%s4441_s1 + $0x8] ss:$12 sps:$4 sm:$0xff]   ;;  %v3224_v11 = vld [vmem:[%s4441_s1 + $0xe0] ss:$12 sps:$4 sm:$0xff]   ;;  %v3221_v12 = vld [vmem:[%s4441_s1 + $0x318] ss:$12 sps:$4 sm:$0xff]  }
  0x19   :  { %1771 = vmatprep.subr.bf16.mxu0 %v3154_v25  ;;  %v3223_v10 = vld [vmem:[%s4441_s1 + $0x31c] ss:$12 sps:$4 sm:$0xff]   ;;  %v3225_v13 = vld [vmem:[%s4441_s1 + $0x20] ss:$12 sps:$4 sm:$0xff]   ;;  %v3229_v15 = vld [vmem:[%s4441_s1 + $0xf8] ss:$12 sps:$4 sm:$0xff]  }
  0x1a   :  { %v3228_v14 = vld [vmem:[%s4441_s1 + $0x334] ss:$12 sps:$4 sm:$0xff]   ;;  %v3226_v16 = vld [vmem:[%s4441_s1 + $0x330] ss:$12 sps:$4 sm:$0xff]   ;;  %v3230_v17 = vld [vmem:[%s4441_s1 + $0x38] ss:$12 sps:$4 sm:$0xff]  }
  0x1b   :  { %1731 = vmatpush1.bf16.msra.mxu1 %v3156_v26  ;;  %v3233_v18 = vld [vmem:[%s4441_s1 + $0x34c] ss:$12 sps:$4 sm:$0xff]   ;;  %v3234_v19 = vld [vmem:[%s4441_s1 + $0x110] ss:$12 sps:$4 sm:$0xff]   ;;  %v3231_v20 = vld [vmem:[%s4441_s1 + $0x348] ss:$12 sps:$4 sm:$0xff]  }
  0x1c   :  { %1772 = vmatpush1.bf16.msra.mxu0 %v3157_v27  ;;  %1732 = vmatprep.subr.bf16.mxu1 %v3158_v28  ;;  %v3235_v21 = vld [vmem:[%s4441_s1 + $0x50] ss:$12 sps:$4 sm:$0xff]   ;;  %v3239_v23 = vld [vmem:[%s4441_s1 + $0x128] ss:$12 sps:$4 sm:$0xff]   ;;  %v3236_v24 = vld [vmem:[%s4441_s1 + $0x360] ss:$12 sps:$4 sm:$0xff]  }
  0x1d   :  { %1773 = vmatprep.subr.bf16.mxu0 %v3160_v29  ;;  %v3238_v22 = vld [vmem:[%s4441_s1 + $0x364] ss:$12 sps:$4 sm:$0xff]   ;;  %v3240_v25 = vld [vmem:[%s4441_s1 + $0x68] ss:$12 sps:$4 sm:$0xff]   ;;  %v3244_v27 = vld [vmem:[%s4441_s1 + $0x140] ss:$12 sps:$4 sm:$0xff]  }
  0x1e   :  { %v3243_v26 = vld [vmem:[%s4441_s1 + $0x37c] ss:$12 sps:$4 sm:$0xff]   ;;  %v3241_v28 = vld [vmem:[%s4441_s1 + $0x378] ss:$12 sps:$4 sm:$0xff]   ;;  %v3245_v29 = vld [vmem:[%s4441_s1 + $0x80] ss:$12 sps:$4 sm:$0xff]  }
  0x1f   :  { %1733 = vmatpush1.bf16.msra.mxu1 %v3162_v30  ;;  %v3248_v30 = vld [vmem:[%s4441_s1 + $0x394] ss:$12 sps:$4 sm:$0xff]   ;;  %v3269_v49 = vld [vmem:[%s4441_s1 + $0x278] ss:$12 sps:$4 sm:$0xff]  }
  0x20   :  { %1774 = vmatpush1.bf16.msra.mxu0 %v3163_v31  ;;  %1734 = vmatprep.subr.bf16.mxu1 %v3164_v32  ;;  %v3249_v31 = vld [vmem:[%s4441_s1 + $0x158] ss:$12 sps:$4 sm:$0xff]   ;;  %v3246_v32 = vld [vmem:[%s4441_s1 + $0x390] ss:$12 sps:$4 sm:$0xff]   ;;  %v3265_v47 = vld [vmem:[%s4441_s1 + $0x1a0] ss:$12 sps:$4 sm:$0xff]  }
  0x21   :  { %1775 = vmatprep.subr.bf16.mxu0 %v3166_v33  ;;  %v3250_v33 = vld [vmem:[%s4441_s1 + $0x98] ss:$12 sps:$4 sm:$0xff]  }
  0x23   :  { %1735 = vmatpush1.bf16.msra.mxu1 %v3168_v34  ;;  %v3253_v34 = vld [vmem:[%s4441_s1 + $0x3ac] ss:$12 sps:$4 sm:$0xff]  }
  0x24   :  { %1776 = vmatpush1.bf16.msra.mxu0 %v3169_v35  ;;  %1736 = vmatprep.subr.bf16.mxu1 %v3170_v36  ;;  %v3254_v35 = vld [vmem:[%s4441_s1 + $0x170] ss:$12 sps:$4 sm:$0xff]   ;;  %v3251_v36 = vld [vmem:[%s4441_s1 + $0x3a8] ss:$12 sps:$4 sm:$0xff]  }
  0x25   :  { %1777 = vmatprep.subr.bf16.mxu0 %v3172_v37  ;;  %v3255_v37 = vld [vmem:[%s4441_s1 + $0xb0] ss:$12 sps:$4 sm:$0xff]  }
  0x27   :  { %1737 = vmatpush1.bf16.msra.mxu1 %v3174_v38  ;;  %v3258_v38 = vld [vmem:[%s4441_s1 + $0x3c4] ss:$12 sps:$4 sm:$0xff]  }
  0x28   :  { %1778 = vmatpush1.bf16.msra.mxu0 %v3175_v39  ;;  %1738 = vmatprep.subr.bf16.mxu1 %v3176_v40  ;;  %v3259_v39 = vld [vmem:[%s4441_s1 + $0x248] ss:$12 sps:$4 sm:$0xff]   ;;  %v3256_v40 = vld [vmem:[%s4441_s1 + $0x3c0] ss:$12 sps:$4 sm:$0xff]  }
  0x29   :  { %1779 = vmatprep.subr.bf16.mxu0 %v3178_v41  ;;  %v3260_v41 = vld [vmem:[%s4441_s1 + $0x188] ss:$12 sps:$4 sm:$0xff]  }
  0x2b   :  { %1739 = vmatpush1.bf16.msra.mxu1 %v3180_v42  ;;  %v3263_v42 = vld [vmem:[%s4441_s1 + $0x3dc] ss:$12 sps:$4 sm:$0xff]  }
  0x2c   :  { %1780 = vmatpush1.bf16.msra.mxu0 %v3181_v43  ;;  %1740 = vmatprep.subr.bf16.mxu1 %v3182_v44  ;;  %v3855_v43 = vld [vmem:[%s4442_s0 + $0x10] sm:$0xff]  ;;  %v3264_v44 = vld [vmem:[%s4441_s1 + $0x260] ss:$12 sps:$4 sm:$0xff]  }
  0x2d   :  { %1781 = vmatprep.subr.bf16.mxu0 %v3184_v45  ;;  %v3862_v45 = vcombine.high %v3855_v43, %v3855_v43 }
  0x2f   :  { %1741 = vmatpush1.bf16.msra.mxu1 %v3186_v46  ;;  %v3261_v46 = vld [vmem:[%s4441_s1 + $0x3d8] ss:$12 sps:$4 sm:$0xff]  }
  0x30   :  { %1782 = vmatpush1.bf16.msra.mxu0 %v3187_v50  ;;  %1742 = vmatprep.subr.bf16.mxu1 %v3188_v51  ;;  %v3266_v50 = vld [vmem:[%s4441_s1 + $0x3f0] ss:$12 sps:$4 sm:$0xff]   ;;  %v3270_v51 = vld [vmem:[%s4441_s1 + $0x1b8] ss:$12 sps:$4 sm:$0xff]  }
  0x31   :  { %1783 = vmatprep.subr.bf16.mxu0 %v3190_v53  ;;  %v3273_v53 = vld [vmem:[%s4441_s1 + $0x40c] ss:$12 sps:$4 sm:$0xff]  }
  0x33   :  { %1743 = vmatpush1.bf16.msra.mxu1 %v3192_v54  ;;  %v3271_v54 = vld [vmem:[%s4441_s1 + $0x408] ss:$12 sps:$4 sm:$0xff]  }
  0x34   :  { %1784 = vmatpush1.bf16.msra.mxu0 %v3193_v55  ;;  %1744 = vmatprep.subr.bf16.mxu1 %v3194_v56  ;;  %v3275_v55 = vld [vmem:[%s4441_s1 + $0x1d0] ss:$12 sps:$4 sm:$0xff]  }
  0x35   :  { %1785 = vmatprep.subr.bf16.mxu0 %v3196_v57  ;;  %v3278_v56 = vld [vmem:[%s4441_s1 + $0x424] ss:$12 sps:$4 sm:$0xff]   ;;  %v3279_v57 = vld [vmem:[%s4441_s1 + $0x2a8] ss:$12 sps:$4 sm:$0xff]  }
  0x37   :  { %1745 = vmatpush1.bf16.msra.mxu1 %v3198_v58  ;;  %v3276_v58 = vld [vmem:[%s4441_s1 + $0x420] ss:$12 sps:$4 sm:$0xff]  }
  0x38   :  { %1786 = vmatpush1.bf16.msra.mxu0 %v3199_v59  ;;  %1746 = vmatprep.subr.bf16.mxu1 %v3200_v60  ;;  %v3280_v59 = vld [vmem:[%s4441_s1 + $0x1e8] ss:$12 sps:$4 sm:$0xff]  }
  0x39   :  { %1787 = vmatprep.subr.bf16.mxu0 %v3202_v61  ;;  %v3283_v60 = vld [vmem:[%s4441_s1 + $0x43c] ss:$12 sps:$4 sm:$0xff]   ;;  %v3284_v61 = vld [vmem:[%s4441_s1 + $0x2c0] ss:$12 sps:$4 sm:$0xff]  }
  0x3b   :  { %1747 = vmatpush1.bf16.msra.mxu1 %v3204_v62  ;;  %v3281_v62 = vld [vmem:[%s4441_s1 + $0x438] ss:$12 sps:$4 sm:$0xff]  }
  0x3c   :  { %1788 = vmatpush1.bf16.msra.mxu0 %v3205_v63  ;;  %1748 = vmatprep.subr.bf16.mxu1 %v3206_v0  ;;  %v3285_v63 = vld [vmem:[%s4441_s1 + $0x200] ss:$12 sps:$4 sm:$0xff]  }
  0x3d   :  { %1789 = vmatprep.subr.bf16.mxu0 %v3208_v1  ;;  %v3288_v0 = vld [vmem:[%s4441_s1 + $0x454] ss:$12 sps:$4 sm:$0xff]   ;;  %v3289_v1 = vld [vmem:[%s4441_s1 + $0x2d8] ss:$12 sps:$4 sm:$0xff]  }
  0x3f   :  { %1749 = vmatpush1.bf16.msra.mxu1 %v3210_v2  ;;  %v3286_v2 = vld [vmem:[%s4441_s1 + $0x450] ss:$12 sps:$4 sm:$0xff]  }
  0x40   :  { %1790 = vmatpush1.bf16.msra.mxu0 %v3211_v3  ;;  %2908 = vmatprep.subr.bf16.mxu1 %v3219_v5  ;;  %v3290_v3 = vld [vmem:[%s4441_s1 + $0x218] ss:$12 sps:$4 sm:$0xff]   ;;  %v3294_v5 = vld [vmem:[%s4441_s1 + $0x2f0] ss:$12 sps:$4 sm:$0xff]  }
  0x41   :  { %1800 = vmatprep.subr.bf16.mxu0 %v3218_v4  ;;  %v3293_v4 = vld [vmem:[%s4441_s1 + $0x46c] ss:$12 sps:$4 sm:$0xff]  }
  0x42   :  { %1751 = vmatmul.mubr.bf16.vlgmr.msra.gmra.mrb[0].mxu1 %v3740_v6 }
  0x43   :  { %1792 = vmatmul.mubr.bf16.vlgmr.msra.gmra.mrb[0].mxu0 %v3742_v7  ;;  %2909 = vmatpush3.bf16.msra.mxu1 %v3220_v9  ;;  %v3300_v9 = vld [vmem:[%s4441_s1 + $0x484] ss:$12 sps:$4 sm:$0xff]  }
  0x44   :  { %1801 = vmatpush1.bf16.msra.mxu0 %v3216_v8  ;;  %2910 = vmatprep.subr.bf16.mxu1 %v3224_v11  ;;  %v3295_v8 = vld [vmem:[%s4441_s1 + $0x230] ss:$12 sps:$4 sm:$0xff]   ;;  %v3298_v11 = vld [vmem:[%s4441_s1 + $0x480] ss:$12 sps:$4 sm:$0xff]  }
  0x45   :  { %1802 = vmatprep.subr.bf16.mxu0 %v3223_v10  ;;  %1996 = vmatprep.mubr.bf16.mxu1 %v3674_v48  ;;  %v3268_v48 = vld [vmem:[%s4441_s1 + $0x3f4] ss:$12 sps:$4 sm:$0xff]  }
  0x46   :  { %1832 = vmatprep.mubr.bf16.mxu0 %v3862_v45  ;;  %v3301_v10 = vld [vmem:[%s4441_s1 + $0x3c8] ss:$12 sps:$4 sm:$0xff]  }
  0x47   :  { %2911 = vmatpush3.bf16.msra.mxu1 %v3225_v13  ;;  %v3302_v13 = vld [vmem:[%s4441_s1 + $0x308] ss:$12 sps:$4 sm:$0xff]  }
  0x48   :  { %1803 = vmatpush1.bf16.msra.mxu0 %v3221_v12  ;;  %2912 = vmatprep.subr.bf16.mxu1 %v3229_v15  ;;  %v3956_v12 = vcombine.low %v3855_v43, %v3855_v43  ;;  %v3306_v15 = vld [vmem:[%s4441_s1 + $0x3e0] ss:$12 sps:$4 sm:$0xff]   ;;  %v3340_v43 = vld [vmem:[%s4441_s1 + $0x544] ss:$12 sps:$4 sm:$0xff]  }
  0x49   :  { %1804 = vmatprep.subr.bf16.mxu0 %v3228_v14  ;;  %v3305_v14 = vld [vmem:[%s4441_s1 + $0x49c] ss:$12 sps:$4 sm:$0xff]  }
  0x4b   :  { %2913 = vmatpush3.bf16.msra.mxu1 %v3230_v17  ;;  %v3307_v17 = vld [vmem:[%s4441_s1 + $0x320] ss:$12 sps:$4 sm:$0xff]  }
  0x4c   :  { %1805 = vmatpush1.bf16.msra.mxu0 %v3226_v16  ;;  %2914 = vmatprep.subr.bf16.mxu1 %v3234_v19  ;;  %v3303_v16 = vld [vmem:[%s4441_s1 + $0x498] ss:$12 sps:$4 sm:$0xff]   ;;  %v3308_v19 = vld [vmem:[%s4441_s1 + $0x4b0] ss:$12 sps:$4 sm:$0xff]  }
  0x4d   :  { %1806 = vmatprep.subr.bf16.mxu0 %v3233_v18  ;;  %v3310_v18 = vld [vmem:[%s4441_s1 + $0x4b4] ss:$12 sps:$4 sm:$0xff]  }
  0x4f   :  { %2915 = vmatpush3.bf16.msra.mxu1 %v3235_v21  ;;  %v3315_v21 = vld [vmem:[%s4441_s1 + $0x4cc] ss:$12 sps:$4 sm:$0xff]  }
  0x50   :  { %1807 = vmatpush1.bf16.msra.mxu0 %v3231_v20  ;;  %2916 = vmatprep.subr.bf16.mxu1 %v3239_v23  ;;  %v3312_v20 = vld [vmem:[%s4441_s1 + $0x338] ss:$12 sps:$4 sm:$0xff]   ;;  %v3313_v23 = vld [vmem:[%s4441_s1 + $0x4c8] ss:$12 sps:$4 sm:$0xff]  }
  0x51   :  { %1808 = vmatprep.subr.bf16.mxu0 %v3238_v22  ;;  %v3316_v22 = vld [vmem:[%s4441_s1 + $0x410] ss:$12 sps:$4 sm:$0xff]  }
  0x53   :  { %2917 = vmatpush3.bf16.msra.mxu1 %v3240_v25  ;;  %v3320_v25 = vld [vmem:[%s4441_s1 + $0x4e4] ss:$12 sps:$4 sm:$0xff]  }
  0x54   :  { %1809 = vmatpush1.bf16.msra.mxu0 %v3236_v24  ;;  %2918 = vmatprep.subr.bf16.mxu1 %v3244_v27  ;;  %v3317_v24 = vld [vmem:[%s4441_s1 + $0x350] ss:$12 sps:$4 sm:$0xff]   ;;  %v3318_v27 = vld [vmem:[%s4441_s1 + $0x4e0] ss:$12 sps:$4 sm:$0xff]  }
  0x55   :  { %1810 = vmatprep.subr.bf16.mxu0 %v3243_v26  ;;  %v3321_v26 = vld [vmem:[%s4441_s1 + $0x428] ss:$12 sps:$4 sm:$0xff]  }
  0x57   :  { %2919 = vmatpush3.bf16.msra.mxu1 %v3245_v29  ;;  %v3325_v29 = vld [vmem:[%s4441_s1 + $0x4fc] ss:$12 sps:$4 sm:$0xff]  }
  0x58   :  { %1811 = vmatpush1.bf16.msra.mxu0 %v3241_v28  ;;  %2920 = vmatprep.subr.bf16.mxu1 %v3249_v31  ;;  %v3322_v28 = vld [vmem:[%s4441_s1 + $0x368] ss:$12 sps:$4 sm:$0xff]   ;;  %v3323_v31 = vld [vmem:[%s4441_s1 + $0x4f8] ss:$12 sps:$4 sm:$0xff]  }
  0x59   :  { %1812 = vmatprep.subr.bf16.mxu0 %v3248_v30  ;;  %v3326_v30 = vld [vmem:[%s4441_s1 + $0x440] ss:$12 sps:$4 sm:$0xff]  }
  0x5b   :  { %2921 = vmatpush3.bf16.msra.mxu1 %v3250_v33  ;;  %v3330_v33 = vld [vmem:[%s4441_s1 + $0x514] ss:$12 sps:$4 sm:$0xff]  }
  0x5c   :  { %1813 = vmatpush1.bf16.msra.mxu0 %v3246_v32  ;;  %2922 = vmatprep.subr.bf16.mxu1 %v3254_v35  ;;  %v3327_v32 = vld [vmem:[%s4441_s1 + $0x380] ss:$12 sps:$4 sm:$0xff]   ;;  %v4033_v35 = vld [vmem:[%s4442_s0 + $0x18] sm:$0xff] }
  0x5d   :  { %1814 = vmatprep.subr.bf16.mxu0 %v3253_v34  ;;  %v3331_v34 = vld [vmem:[%s4441_s1 + $0x458] ss:$12 sps:$4 sm:$0xff]  }
  0x5f   :  { %2923 = vmatpush3.bf16.msra.mxu1 %v3255_v37  ;;  %v3332_v37 = vld [vmem:[%s4441_s1 + $0x398] ss:$12 sps:$4 sm:$0xff]  }
  0x60   :  { %1815 = vmatpush1.bf16.msra.mxu0 %v3251_v36  ;;  %2930 = vmatprep.subr.bf16.mxu1 %v3259_v39  ;;  %v3328_v36 = vld [vmem:[%s4441_s1 + $0x510] ss:$12 sps:$4 sm:$0xff]   ;;  %v3335_v39 = vld [vmem:[%s4441_s1 + $0x52c] ss:$12 sps:$4 sm:$0xff]  }
  0x61   :  { %1816 = vmatprep.subr.bf16.mxu0 %v3258_v38  ;;  %v2627_v38 = vcombine.high %v4033_v35, %v4033_v35 }
  0x62   :  { %1997 = vmatmul.mubr.bf16.vlgmr.msra.gmra.mrb[4].mxu1 %v3740_v6  ;;  %v3291_v6 = vld [vmem:[%s4441_s1 + $0x468] ss:$12 sps:$4 sm:$0xff]  }
  0x63   :  { %2931 = vmatpush3.bf16.msra.mxu1 %v3260_v41  ;;  %2036 = vmatprep.mubr.bf16.mxu1 %v3685_v52  ;;  %v3274_v52 = vld [vmem:[%s4441_s1 + $0x290] ss:$12 sps:$4 sm:$0xff]   ;;  %v3333_v41 = vld [vmem:[%s4441_s1 + $0x528] ss:$12 sps:$4 sm:$0xff]  }
  0x64   :  { %1817 = vmatpush1.bf16.msra.mxu0 %v3256_v40  ;;  %2932 = vmatprep.subr.bf16.mxu1 %v3264_v44  ;;  %v3336_v40 = vld [vmem:[%s4441_s1 + $0x470] ss:$12 sps:$4 sm:$0xff]   ;;  %v3341_v44 = vld [vmem:[%s4441_s1 + $0x548] ss:$12 sps:$4 sm:$0xff]  }
  0x65   :  { %1818 = vmatprep.subr.bf16.mxu0 %v3263_v42  ;;  %v3337_v42 = vld [vmem:[%s4441_s1 + $0x3b0] ss:$12 sps:$4 sm:$0xff]  }
  0x67   :  { %2933 = vmatpush3.bf16.msra.mxu1 %v3265_v47  ;;  %v3345_v47 = vld [vmem:[%s4441_s1 + $0x55c] ss:$12 sps:$4 sm:$0xff]  }
  0x68   :  { %1819 = vmatpush1.bf16.msra.mxu0 %v3261_v46  ;;  %2934 = vmatprep.subr.bf16.mxu1 %v3269_v49  ;;  %v3342_v46 = vld [vmem:[%s4441_s1 + $0x488] ss:$12 sps:$4 sm:$0xff]   ;;  %v3343_v49 = vld [vmem:[%s4441_s1 + $0x558] ss:$12 sps:$4 sm:$0xff]  }
  0x69   :  { %1820 = vmatprep.subr.bf16.mxu0 %v3268_v48  ;;  %v3346_v48 = vld [vmem:[%s4441_s1 + $0x560] ss:$12 sps:$4 sm:$0xff]  }
  0x6b   :  { %2935 = vmatpush3.bf16.msra.mxu1 %v3270_v51  ;;  %v3350_v51 = vld [vmem:[%s4441_s1 + $0x574] ss:$12 sps:$4 sm:$0xff]  }
  0x6c   :  { %1821 = vmatpush1.bf16.msra.mxu0 %v3266_v50  ;;  %2936 = vmatprep.subr.bf16.mxu1 %v3274_v52  ;;  %v3347_v50 = vld [vmem:[%s4441_s1 + $0x4a0] ss:$12 sps:$4 sm:$0xff]   ;;  %v3348_v52 = vld [vmem:[%s4441_s1 + $0x570] ss:$12 sps:$4 sm:$0xff]  }
  0x6d   :  { %1822 = vmatprep.subr.bf16.mxu0 %v3273_v53  ;;  %v3351_v53 = vld [vmem:[%s4441_s1 + $0x578] ss:$12 sps:$4 sm:$0xff]  }
  0x6f   :  { %2937 = vmatpush3.bf16.msra.mxu1 %v3275_v55  ;;  %v3355_v55 = vld [vmem:[%s4441_s1 + $0x58c] ss:$12 sps:$4 sm:$0xff]  }
  0x70   :  { %1823 = vmatpush1.bf16.msra.mxu0 %v3271_v54  ;;  %2938 = vmatprep.subr.bf16.mxu1 %v3279_v57  ;;  %v3352_v54 = vld [vmem:[%s4441_s1 + $0x4b8] ss:$12 sps:$4 sm:$0xff]   ;;  %v3353_v57 = vld [vmem:[%s4441_s1 + $0x588] ss:$12 sps:$4 sm:$0xff]  }
  0x71   :  { %1824 = vmatprep.subr.bf16.mxu0 %v3278_v56  ;;  %v3356_v56 = vld [vmem:[%s4441_s1 + $0x590] ss:$12 sps:$4 sm:$0xff]  }
  0x73   :  { %2939 = vmatpush3.bf16.msra.mxu1 %v3280_v59  ;;  %v3360_v59 = vld [vmem:[%s4441_s1 + $0x5a4] ss:$12 sps:$4 sm:$0xff]  }
  0x74   :  { %1825 = vmatpush1.bf16.msra.mxu0 %v3276_v58  ;;  %2940 = vmatprep.subr.bf16.mxu1 %v3284_v61  ;;  %v3357_v58 = vld [vmem:[%s4441_s1 + $0x4d0] ss:$12 sps:$4 sm:$0xff]   ;;  %v3358_v61 = vld [vmem:[%s4441_s1 + $0x5a0] ss:$12 sps:$4 sm:$0xff]  }
  0x75   :  { %1826 = vmatprep.subr.bf16.mxu0 %v3283_v60  ;;  %v3361_v60 = vld [vmem:[%s4441_s1 + $0x5a8] ss:$12 sps:$4 sm:$0xff]  }
  0x77   :  { %2941 = vmatpush3.bf16.msra.mxu1 %v3285_v63  ;;  %v3365_v63 = vld [vmem:[%s4441_s1 + $0x5bc] ss:$12 sps:$4 sm:$0xff]  }
  0x78   :  { %1827 = vmatpush1.bf16.msra.mxu0 %v3281_v62  ;;  %2942 = vmatprep.subr.bf16.mxu1 %v3289_v1  ;;  %v3362_v62 = vld [vmem:[%s4441_s1 + $0x4e8] ss:$12 sps:$4 sm:$0xff]   ;;  %v3363_v1 = vld [vmem:[%s4441_s1 + $0x5b8] ss:$12 sps:$4 sm:$0xff]  }
  0x79   :  { %1828 = vmatprep.subr.bf16.mxu0 %v3288_v0  ;;  %v3366_v0 = vld [vmem:[%s4441_s1 + $0x5c0] ss:$12 sps:$4 sm:$0xff]  }
  0x7b   :  { %2943 = vmatpush3.bf16.msra.mxu1 %v3290_v3  ;;  %v3370_v3 = vld [vmem:[%s4441_s1 + $0x5d4] ss:$12 sps:$4 sm:$0xff]  }
  0x7c   :  { %1829 = vmatpush1.bf16.msra.mxu0 %v3286_v2  ;;  %2944 = vmatprep.subr.bf16.mxu1 %v3294_v5  ;;  %v3367_v2 = vld [vmem:[%s4441_s1 + $0x500] ss:$12 sps:$4 sm:$0xff]   ;;  %v3368_v5 = vld [vmem:[%s4441_s1 + $0x5d0] ss:$12 sps:$4 sm:$0xff]  }
  0x7d   :  { %1830 = vmatprep.subr.bf16.mxu0 %v3293_v4  ;;  %v3371_v4 = vld [vmem:[%s4441_s1 + $0x5d8] ss:$12 sps:$4 sm:$0xff]  }
  0x7f   :  { %2945 = vmatpush3.bf16.msra.mxu1 %v3295_v8  ;;  %v3375_v8 = vld [vmem:[%s4441_s1 + $0x5ec] ss:$12 sps:$4 sm:$0xff]  }
  0x80   :  { %1831 = vmatpush1.bf16.msra.mxu0 %v3291_v6  ;;  %2952 = vmatprep.subr.bf16.mxu1 %v3301_v10  ;;  %v3372_v6 = vld [vmem:[%s4441_s1 + $0x518] ss:$12 sps:$4 sm:$0xff]   ;;  %v3373_v10 = vld [vmem:[%s4441_s1 + $0x5e8] ss:$12 sps:$4 sm:$0xff]  }
  0x81   :  { %1841 = vmatprep.subr.bf16.mxu0 %v3300_v9  ;;  %v3376_v9 = vld [vmem:[%s4441_s1 + $0x5f0] ss:$12 sps:$4 sm:$0xff]  }
  0x82   :  { %2037 = vmatmul.mubr.bf16.vlgmr.msra.gmra.mrb[8].mxu1 %v3742_v7  ;;  %v3311_v7 = vld [vmem:[%s4441_s1 + $0x3f8] ss:$12 sps:$4 sm:$0xff]  }
  0x83   :  { %1833 = vmatmul.mubr.bf16.vlgmr.msra.gmra.mrb[0].mxu0 %v3956_v12  ;;  %2953 = vmatpush3.bf16.msra.mxu1 %v3302_v13  ;;  %v3383_v13 = vld [vmem:[%s4441_s1 + $0x6c8] ss:$12 sps:$4 sm:$0xff]  }
  0x84   :  { %1842 = vmatpush1.bf16.msra.mxu0 %v3298_v11  ;;  %2954 = vmatprep.subr.bf16.mxu1 %v3306_v15  ;;  %v3377_v11 = vld [vmem:[%s4441_s1 + $0x530] ss:$12 sps:$4 sm:$0xff]   ;;  %v4163_v15 = vld [vmem:[%s4442_s0 + $0x20] sm:$0xff] }
  0x85   :  { %1843 = vmatprep.subr.bf16.mxu0 %v3305_v14  ;;  %2076 = vmatprep.mubr.bf16.mxu1 %v3862_v45  ;;  %v3338_v45 = vld [vmem:[%s4441_s1 + $0x540] ss:$12 sps:$4 sm:$0xff]   ;;  %v2626_v14 = vcombine.low %v4033_v35, %v4033_v35 }
  0x86   :  { %1873 = vmatprep.mubr.bf16.mxu0 %v2627_v38  ;;  %v3408_v35 = vld [vmem:[%s4441_s1 + $0x740] ss:$12 sps:$4 sm:$0xff]  }
  0x87   :  { %2955 = vmatpush3.bf16.msra.mxu1 %v3307_v17  ;;  %v3384_v17 = vld [vmem:[%s4441_s1 + $0x608] ss:$12 sps:$4 sm:$0xff]  }
  0x88   :  { %1844 = vmatpush1.bf16.msra.mxu0 %v3303_v16  ;;  %2956 = vmatprep.subr.bf16.mxu1 %v3311_v7  ;;  %v3380_v16 = vld [vmem:[%s4441_s1 + $0x600] ss:$12 sps:$4 sm:$0xff]  }
  0x89   :  { %1845 = vmatprep.subr.bf16.mxu0 %v3310_v18  ;;  %v3387_v18 = vld [vmem:[%s4441_s1 + $0x61c] ss:$12 sps:$4 sm:$0xff]   ;;  %v3388_v7 = vld [vmem:[%s4441_s1 + $0x6e0] ss:$12 sps:$4 sm:$0xff]  }
  0x8b   :  { %2957 = vmatpush3.bf16.msra.mxu1 %v3312_v20  ;;  %v3385_v20 = vld [vmem:[%s4441_s1 + $0x618] ss:$12 sps:$4 sm:$0xff]  }
  0x8c   :  { %1846 = vmatpush1.bf16.msra.mxu0 %v3308_v19  ;;  %2958 = vmatprep.subr.bf16.mxu1 %v3316_v22  ;;  %v2629_v19 = vcombine.high %v4163_v15, %v4163_v15  ;;  %v3392_v22 = vld [vmem:[%s4441_s1 + $0x634] ss:$12 sps:$4 sm:$0xff]  }
  0x8d   :  { %1847 = vmatprep.subr.bf16.mxu0 %v3315_v21  ;;  %v3389_v21 = vld [vmem:[%s4441_s1 + $0x620] ss:$12 sps:$4 sm:$0xff]  }
  0x8f   :  { %2959 = vmatpush3.bf16.msra.mxu1 %v3317_v24  ;;  %v3390_v24 = vld [vmem:[%s4441_s1 + $0x630] ss:$12 sps:$4 sm:$0xff]  }
  0x90   :  { %1848 = vmatpush1.bf16.msra.mxu0 %v3313_v23  ;;  %2960 = vmatprep.subr.bf16.mxu1 %v3321_v26  ;;  %v3393_v23 = vld [vmem:[%s4441_s1 + $0x6f8] ss:$12 sps:$4 sm:$0xff]  }
  0x91   :  { %1849 = vmatprep.subr.bf16.mxu0 %v3320_v25  ;;  %v3394_v25 = vld [vmem:[%s4441_s1 + $0x638] ss:$12 sps:$4 sm:$0xff]  }
  0x92   :  { %v3397_v26 = vld [vmem:[%s4441_s1 + $0x64c] ss:$12 sps:$4 sm:$0xff]  }
  0x93   :  { %2961 = vmatpush3.bf16.msra.mxu1 %v3322_v28  ;;  %v3395_v28 = vld [vmem:[%s4441_s1 + $0x648] ss:$12 sps:$4 sm:$0xff]  }
  0x94   :  { %1850 = vmatpush1.bf16.msra.mxu0 %v3318_v27  ;;  %2962 = vmatprep.subr.bf16.mxu1 %v3326_v30  ;;  %v3398_v27 = vld [vmem:[%s4441_s1 + $0x710] ss:$12 sps:$4 sm:$0xff]  }
  0x95   :  { %1851 = vmatprep.subr.bf16.mxu0 %v3325_v29  ;;  %v3399_v29 = vld [vmem:[%s4441_s1 + $0x650] ss:$12 sps:$4 sm:$0xff]  }
  0x96   :  { %v3402_v30 = vld [vmem:[%s4441_s1 + $0x664] ss:$12 sps:$4 sm:$0xff]  }
  0x97   :  { %2963 = vmatpush3.bf16.msra.mxu1 %v3327_v32  ;;  %v3400_v32 = vld [vmem:[%s4441_s1 + $0x660] ss:$12 sps:$4 sm:$0xff]  }
  0x98   :  { %1852 = vmatpush1.bf16.msra.mxu0 %v3323_v31  ;;  %2964 = vmatprep.subr.bf16.mxu1 %v3331_v34  ;;  %v3403_v31 = vld [vmem:[%s4441_s1 + $0x728] ss:$12 sps:$4 sm:$0xff]  }
  0x99   :  { %1853 = vmatprep.subr.bf16.mxu0 %v3330_v33  ;;  %v3404_v33 = vld [vmem:[%s4441_s1 + $0x668] ss:$12 sps:$4 sm:$0xff]  }
  0x9a   :  { %v3407_v34 = vld [vmem:[%s4441_s1 + $0x67c] ss:$12 sps:$4 sm:$0xff]  }
  0x9b   :  { %2965 = vmatpush3.bf16.msra.mxu1 %v3332_v37  ;;  %v3409_v37 = vld [vmem:[%s4441_s1 + $0x680] ss:$12 sps:$4 sm:$0xff]  }
  0x9c   :  { %1854 = vmatpush1.bf16.msra.mxu0 %v3328_v36  ;;  %2966 = vmatprep.subr.bf16.mxu1 %v3336_v40  ;;  %v3405_v36 = vld [vmem:[%s4441_s1 + $0x678] ss:$12 sps:$4 sm:$0xff]   ;;  %v3410_v40 = vld [vmem:[%s4441_s1 + $0x690] ss:$12 sps:$4 sm:$0xff]  }
  0x9d   :  { %1855 = vmatprep.subr.bf16.mxu0 %v3335_v39  ;;  %v3413_v39 = vld [vmem:[%s4441_s1 + $0x758] ss:$12 sps:$4 sm:$0xff]  }
  0x9f   :  { %2967 = vmatpush3.bf16.msra.mxu1 %v3337_v42  ;;  %v3417_v42 = vld [vmem:[%s4441_s1 + $0x6ac] ss:$12 sps:$4 sm:$0xff]  }
  0xa0   :  { %1856 = vmatpush1.bf16.msra.mxu0 %v3333_v41  ;;  %2974 = vmatprep.subr.bf16.mxu1 %v3341_v44  ;;  %v3414_v41 = vld [vmem:[%s4441_s1 + $0x698] ss:$12 sps:$4 sm:$0xff]   ;;  %v3415_v44 = vld [vmem:[%s4441_s1 + $0x6a8] ss:$12 sps:$4 sm:$0xff]  }
  0xa1   :  { %1857 = vmatprep.subr.bf16.mxu0 %v3340_v43  ;;  %v3418_v43 = vld [vmem:[%s4441_s1 + $0x770] ss:$12 sps:$4 sm:$0xff]  }
  0xa2   :  { %2077 = vmatmul.mubr.bf16.vlgmr.msra.gmra.mrb[12].mxu1 %v3956_v12  ;;  %v3382_v12 = vld [vmem:[%s4441_s1 + $0x604] ss:$12 sps:$4 sm:$0xff]  }
  0xa3   :  { %2975 = vmatpush3.bf16.msra.mxu1 %v3342_v46  ;;  %2116 = vmatprep.mubr.bf16.mxu1 %v2627_v38  ;;  %v3412_v38 = vld [vmem:[%s4441_s1 + $0x694] ss:$12 sps:$4 sm:$0xff]   ;;  %v3424_v46 = vld [vmem:[%s4441_s1 + $0x6c4] ss:$12 sps:$4 sm:$0xff]  }
  0xa4   :  { %1858 = vmatpush1.bf16.msra.mxu0 %v3338_v45  ;;  %2976 = vmatprep.subr.bf16.mxu1 %v3346_v48  ;;  %v3419_v45 = vld [vmem:[%s4441_s1 + $0x6b0] ss:$12 sps:$4 sm:$0xff]   ;;  %v3422_v48 = vld [vmem:[%s4441_s1 + $0x6c0] ss:$12 sps:$4 sm:$0xff]  }
  0xa5   :  { %1859 = vmatprep.subr.bf16.mxu0 %v3345_v47  ;;  %v2628_v47 = vcombine.low %v4163_v15, %v4163_v15  ;;  %v3451_v15 = vld [vmem:[%s4443_s3 + $0x40] sm:$0xff]  }
  0xa7   :  { %2977 = vmatpush3.bf16.msra.mxu1 %v3347_v50  ;;  %v3427_v50 = vld [vmem:[%s4441_s1 + $0x6dc] ss:$12 sps:$4 sm:$0xff]  }
  0xa8   :  { %1860 = vmatpush1.bf16.msra.mxu0 %v3343_v49  ;;  %2978 = vmatprep.subr.bf16.mxu1 %v3351_v53  ;;  %v3428_v49 = vld [vmem:[%s4441_s1 + $0x788] ss:$12 sps:$4 sm:$0xff]   ;;  %v3425_v53 = vld [vmem:[%s4441_s1 + $0x6d8] ss:$12 sps:$4 sm:$0xff]  }
  0xa9   :  { %1861 = vmatprep.subr.bf16.mxu0 %v3350_v51  ;;  %v3477_v51 = vmov 0.0  }
  0xab   :  { %2979 = vmatpush3.bf16.msra.mxu1 %v3352_v54  ;;  %v3432_v54 = vld [vmem:[%s4442_s0 + $0x28] ss:$0 sps:$4 sm:$0xff]  }
  0xac   :  { %1862 = vmatpush1.bf16.msra.mxu0 %v3348_v52  ;;  %2980 = vmatprep.subr.bf16.mxu1 %v3356_v56  ;;  %v3431_v52 = vld [vmem:[%s4441_s1 + $0x6f4] ss:$12 sps:$4 sm:$0xff]   ;;  %v3435_v56 = vld [vmem:[%s4441_s1 + $0x70c] ss:$12 sps:$4 sm:$0xff]  }
  0xad   :  { %1863 = vmatprep.subr.bf16.mxu0 %v3355_v55  ;;  %v3429_v55 = vld [vmem:[%s4441_s1 + $0x6f0] ss:$12 sps:$4 sm:$0xff]  }
  0xaf   :  { %2981 = vmatpush3.bf16.msra.mxu1 %v3357_v58  ;;  %v3438_v58 = vld [vmem:[%s4441_s1 + $0x724] ss:$12 sps:$4 sm:$0xff]  }
  0xb0   :  { %1864 = vmatpush1.bf16.msra.mxu0 %v3353_v57  ;;  %2982 = vmatprep.subr.bf16.mxu1 %v3361_v60  ;;  %v3433_v57 = vld [vmem:[%s4441_s1 + $0x708] ss:$12 sps:$4 sm:$0xff]  }
  0xb1   :  { %1865 = vmatprep.subr.bf16.mxu0 %v3360_v59  ;;  %v3436_v59 = vld [vmem:[%s4441_s1 + $0x720] ss:$12 sps:$4 sm:$0xff]   ;;  %v3441_v60 = vld [vmem:[%s4441_s1 + $0x73c] ss:$12 sps:$4 sm:$0xff]  }
  0xb3   :  { %2983 = vmatpush3.bf16.msra.mxu1 %v3362_v62  ;;  %v3444_v62 = vld [vmem:[%s4441_s1 + $0x754] ss:$12 sps:$4 sm:$0xff]  }
  0xb4   :  { %1866 = vmatpush1.bf16.msra.mxu0 %v3358_v61  ;;  %2984 = vmatprep.subr.bf16.mxu1 %v3366_v0  ;;  %v3439_v61 = vld [vmem:[%s4441_s1 + $0x738] ss:$12 sps:$4 sm:$0xff]  }
  0xb5   :  { %1867 = vmatprep.subr.bf16.mxu0 %v3365_v63  ;;  %v3442_v63 = vld [vmem:[%s4441_s1 + $0x750] ss:$12 sps:$4 sm:$0xff]   ;;  %v3447_v0 = vld [vmem:[%s4441_s1 + $0x76c] ss:$12 sps:$4 sm:$0xff]  }
  0xb7   :  { %2985 = vmatpush3.bf16.msra.mxu1 %v3367_v2  ;;  %v3450_v2 = vld [vmem:[%s4441_s1 + $0x784] ss:$12 sps:$4 sm:$0xff]  }
  0xb8   :  { %1868 = vmatpush1.bf16.msra.mxu0 %v3363_v1  ;;  %2986 = vmatprep.subr.bf16.mxu1 %v3371_v4  ;;  %v3445_v1 = vld [vmem:[%s4441_s1 + $0x768] ss:$12 sps:$4 sm:$0xff]   ;;  %v3479_v4 = vmov 0  }
  0xb9   :  { %1869 = vmatprep.subr.bf16.mxu0 %v3370_v3  ;;  %v3448_v3 = vld [vmem:[%s4441_s1 + $0x780] ss:$12 sps:$4 sm:$0xff]  }
  0xbb   :  { %2987 = vmatpush3.bf16.msra.mxu1 %v3372_v6 }
  0xbc   :  { %1870 = vmatpush1.bf16.msra.mxu0 %v3368_v5  ;;  %2988 = vmatprep.subr.bf16.mxu1 %v3376_v9 }
  0xbd   :  { %1871 = vmatprep.subr.bf16.mxu0 %v3375_v8 }
  0xbf   :  { %2989 = vmatpush3.bf16.msra.mxu1 %v3377_v11 }
  0xc0   :  { %1872 = vmatpush1.bf16.msra.mxu0 %v3373_v10  ;;  %2996 = vmatprep.subr.bf16.mxu1 %v3383_v13 }
  0xc1   :  { %1882 = vmatprep.subr.bf16.mxu0 %v3382_v12 }
  0xc2   :  { %2117 = vmatmul.mubr.bf16.vlgmr.msra.gmra.mrb[16].mxu1 %v2626_v14 }
  0xc3   :  { %1874 = vmatmul.mubr.bf16.vlgmr.msra.gmra.mrb[0].mxu0 %v2626_v14  ;;  %2997 = vmatpush3.bf16.msra.mxu1 %v3384_v17  ;;  %v3453_v17 = vld [vmem:[%s4443_s3 + $0x48] sm:$0xff]  }
  0xc4   :  { %1883 = vmatpush1.bf16.msra.mxu0 %v3380_v16  ;;  %2998 = vmatprep.subr.bf16.mxu1 %v3388_v7  ;;  %v3452_v16 = vld [vmem:[%s4443_s3] sm:$0xff]   ;;  %v365_v7 = vlaneseq }
  0xc5   :  { %1884 = vmatprep.subr.bf16.mxu0 %v3387_v18  ;;  %2156 = vmatprep.mubr.bf16.mxu1 %v2629_v19  ;;  %v3454_v18 = vld [vmem:[%s4443_s3 + $0x8] sm:$0xff]  }
  0xc6   :  { %1914 = vmatprep.mubr.bf16.mxu0 %v2629_v19  ;;  %v3455_v19 = vld [vmem:[%s4443_s3 + $0x50] sm:$0xff]  }
  0xc7   :  { %2999 = vmatpush3.bf16.msra.mxu1 %v3389_v21  ;;  %v366_v21 = vshrl.u32 %v365_v7, 7 }
  0xc8   :  { %1885 = vmatpush1.bf16.msra.mxu0 %v3385_v20  ;;  %3000 = vmatprep.subr.bf16.mxu1 %v3393_v23  ;;  %v3456_v20 = vld [vmem:[%s4443_s3 + $0x10] sm:$0xff]  }
  0xc9   :  { %1886 = vmatprep.subr.bf16.mxu0 %v3392_v22  ;;  %v3457_v22 = vld [vmem:[%s4443_s3 + $0x58] sm:$0xff]   ;;  %v375_v23 = vsub.s32 2, %v366_v21 }
  0xcb   :  { %3001 = vmatpush3.bf16.msra.mxu1 %v3394_v25  ;;  %v363_v25 = vld [vmem:[%s4444_s2] sm:$0x7] }
  0xcc   :  { %1887 = vmatpush1.bf16.msra.mxu0 %v3390_v24  ;;  %3002 = vmatprep.subr.bf16.mxu1 %v3398_v27  ;;  %v3458_v24 = vld [vmem:[%s4443_s3 + $0x18] sm:$0xff]   ;;  %v3460_v27 = vld [vmem:[%s4443_s3 + $0x20] sm:$0xff]  }
  0xcd   :  { %1888 = vmatprep.subr.bf16.mxu0 %v3397_v26  ;;  %v3459_v26 = vld [vmem:[%s4443_s3 + $0x60] sm:$0xff]  }
  0xcf   :  { %3003 = vmatpush3.bf16.msra.mxu1 %v3399_v29  ;;  %v3461_v29 = vld [vmem:[%s4443_s3 + $0x68] sm:$0xff]  }
  0xd0   :  { %1889 = vmatpush1.bf16.msra.mxu0 %v3395_v28  ;;  %3004 = vmatprep.subr.bf16.mxu1 %v3403_v31  ;;  %v376_v28 = vrot.slane %v363_v25, %v375_v23  ;;  %v3470_v23 = vld [vmem:[%s4445_s5 + $0x8] sm:$0xff]  }
  0xd1   :  { %1890 = vmatprep.subr.bf16.mxu0 %v3402_v30 }
  0xd3   :  { %3005 = vmatpush3.bf16.msra.mxu1 %v3404_v33  ;;  %v3462_v33 = vld [vmem:[%s4443_s3 + $0x28] sm:$0xff]  }
  0xd4   :  { %1891 = vmatpush1.bf16.msra.mxu0 %v3400_v32  ;;  %3006 = vmatprep.subr.bf16.mxu1 %v3408_v35 }
  0xd5   :  { %1892 = vmatprep.subr.bf16.mxu0 %v3407_v34 }
  0xd7   :  { %3007 = vmatpush3.bf16.msra.mxu1 %v3409_v37 }
  0xd8   :  { %1893 = vmatpush1.bf16.msra.mxu0 %v3405_v36  ;;  %3008 = vmatprep.subr.bf16.mxu1 %v3413_v39  ;;  %v3464_v39 = vld [vmem:[%s4443_s3 + $0x30] sm:$0xff]  }
  0xd9   :  { %1894 = vmatprep.subr.bf16.mxu0 %v3412_v38  ;;  %v3463_v38 = vld [vmem:[%s4443_s3 + $0x70] sm:$0xff]  }
  0xdb   :  { %3009 = vmatpush3.bf16.msra.mxu1 %v3414_v41  ;;  %v3466_v41 = vld [vmem:[%s4443_s3 + $0x38] sm:$0xff]  }
  0xdc   :  { %1895 = vmatpush1.bf16.msra.mxu0 %v3410_v40  ;;  %3010 = vmatprep.subr.bf16.mxu1 %v3418_v43  ;;  %v3465_v40 = vld [vmem:[%s4443_s3 + $0x78] sm:$0xff]  }
  0xdd   :  { %1896 = vmatprep.subr.bf16.mxu0 %v3417_v42 }
  0xdf   :  { %3011 = vmatpush3.bf16.msra.mxu1 %v3419_v45 }
  0xe0   :  { %1897 = vmatpush1.bf16.msra.mxu0 %v3415_v44  ;;  %3055 = vmatprep.subr.bf16.mxu1 %v3477_v51 }
  0xe1   :  { %1898 = vmatprep.subr.bf16.mxu0 %v3424_v46 }
  0xe2   :  { %2157 = vmatmul.mubr.bf16.vlgmr.msra.gmra.mrb[20].mxu1 %v2628_v47 }
  0xe3   :  { %3056 = vmatpush3.bf16.msra.mxu1 %v3428_v49  ;;  %3057 = vmatprep.mubr.msk.bf16.mxu1 %vm3478_vm0, %v3477_v51 }
  0xe4   :  { %1899 = vmatpush1.bf16.msra.mxu0 %v3422_v48  ;;  %3020 = vmatprep.subr.bf16.mxu1 %v3451_v15 }
  0xe5   :  { %1900 = vmatprep.subr.bf16.mxu0 %v3427_v50 }
  0xe8   :  { %1901 = vmatpush1.bf16.msra.mxu0 %v3425_v53 }
  0xe9   :  { %1902 = vmatprep.subr.bf16.mxu0 %v3431_v52 }
  0xea   :  { %3058 = vmatmul.mubr.msk.bf16.vlgmr.msra.gmra.mrb[24].mxu1 %vm1714_vm1, %v3432_v54 }
  0xeb   :  { %3021 = vmatpush3.bf16.msra.mxu1 %v3452_v16 }
  0xec   :  { %1903 = vmatpush1.bf16.msra.mxu0 %v3429_v55  ;;  %3022 = vmatprep.subr.bf16.mxu1 %v3453_v17 }
  0xed   :  { %1904 = vmatprep.subr.bf16.mxu0 %v3435_v56 }
  0xef   :  { %3023 = vmatpush3.bf16.msra.mxu1 %v3454_v18 }
  0xf0   :  { %1905 = vmatpush1.bf16.msra.mxu0 %v3433_v57  ;;  %3024 = vmatprep.subr.bf16.mxu1 %v3455_v19  ;;  %v3467_v19 = vld [vmem:[%s4443_s3 + $0x80] sm:$0xff]  }
  0xf1   :  { %1906 = vmatprep.subr.bf16.mxu0 %v3438_v58 }
  0xf3   :  { %3025 = vmatpush3.bf16.msra.mxu1 %v3456_v20 }
  0xf4   :  { %1907 = vmatpush1.bf16.msra.mxu0 %v3436_v59  ;;  %3026 = vmatprep.subr.bf16.mxu1 %v3457_v22  ;;  %v3469_v22 = vld [vmem:[%s4445_s5] sm:$0xff]  }
  0xf5   :  { %1908 = vmatprep.subr.bf16.mxu0 %v3441_v60 }
  0xf7   :  { %3027 = vmatpush3.bf16.msra.mxu1 %v3458_v24  ;;  %v3471_v24 = vld [vmem:[%s4445_s5 + $0x10] sm:$0xff]  }
  0xf8   :  { %1909 = vmatpush1.bf16.msra.mxu0 %v3439_v61  ;;  %3028 = vmatprep.subr.bf16.mxu1 %v3459_v26  ;;  %v3473_v26 = vld [vmem:[%s4446_s7] sm:$0xff]  }
  0xf9   :  { %1910 = vmatprep.subr.bf16.mxu0 %v3444_v62 }
  0xfb   :  { %3029 = vmatpush3.bf16.msra.mxu1 %v3460_v27  ;;  %v3474_v27 = vld [vmem:[%s4446_s7 + $0x8] sm:$0xff]  }
  0xfc   :  { %1911 = vmatpush1.bf16.msra.mxu0 %v3442_v63  ;;  %3030 = vmatprep.subr.bf16.mxu1 %v3461_v29 }
  0xfd   :  { %1912 = vmatprep.subr.bf16.mxu0 %v3447_v0 }
  0xff   :  { %3031 = vmatpush3.bf16.msra.mxu1 %v3462_v33  ;;  %v2876_v33 = vld [vmem:[%s4447_s4] ss:$0 sm:$0xff] }
 0x100   :  { %1913 = vmatpush1.bf16.msra.mxu0 %v3445_v1  ;;  %3032 = vmatprep.subr.bf16.mxu1 %v3463_v38 }
 0x101   :  { %1923 = vmatprep.subr.bf16.mxu0 %v3450_v2  ;;  %v367_v2 = vsub.s32 0, %v366_v21 }
 0x103   :  { %1915 = vmatmul.mubr.bf16.vlgmr.msra.gmra.mrb[0].mxu0 %v2628_v47  ;;  %3033 = vmatpush3.bf16.msra.mxu1 %v3464_v39 }
 0x104   :  { %1924 = vmatpush1.bf16.msra.mxu0 %v3448_v3  ;;  %1955 = vmatprep.mubr.bf16.mxu0 %v3479_v4  ;;  %v371_v3 = vsub.s32 1, %v366_v21  ;;  %v368_v4 = vrot.slane %v363_v25, %v367_v2 }
 0x105   :  { %3069 = vmatprep.subr.bf16.mxu0 %v3477_v51  ;;  %3034 = vmatprep.subr.bf16.mxu1 %v3465_v40 }
 0x107   :  { %3035 = vmatpush3.bf16.msra.mxu1 %v3466_v41 }
 0x108   :  { %3061 = vmatprep.subr.bf16.mxu1 %v3477_v51 }
 0x10f   :  { %2874 = vmatmul.mubr.msk.bf16.vlgmr.msra.gmra.mrb[0].mxu0 %vm1714_vm1, %v3432_v54 }
 0x110   :  { %3077 = vmatprep.mubr.msk.bf16.mxu0 %vm3478_vm0, %v3477_v51  ;;  %3070 = vmatpush3.bf16.msra.mxu0 %v3469_v22 }
 0x111   :  { %3071 = vmatprep.subr.bf16.mxu0 %v3477_v51 }
 0x114   :  { %3072 = vmatpush3.bf16.msra.mxu0 %v3470_v23 }
 0x115   :  { %v4327_v5 = vpop.f32.mrb[0].mxu1  ;;  %3073 = vmatprep.subr.bf16.mxu0 %v3477_v51 }
 0x116   :  { %v4329_v6 = vpop.f32.mrb[1].mxu1 }
 0x117   :  { %v1756_v8 = vpop.f32.mrb[2].mxu1 }
 0x118   :  { %v1757_v9 = vpop.f32.mrb[3].mxu1  ;;  %v372_v8 = vrot.slane %v363_v25, %v371_v3  ;;  %3074 = vmatpush3.bf16.msra.mxu0 %v3471_v24  ;;  %v3472_v25 = vld [vmem:[%s4445_s5 + $0x18] sm:$0xff]  }
 0x119   :  { %v1753_v9 = vadd.f32 %v4327_v5, %v368_v4  ;;  %v3468_v5 = vld [vmem:[%s4443_s3 + $0x88] sm:$0xff]   ;;  %3075 = vmatprep.subr.bf16.mxu0 %v3477_v51 }
 0x11c   :  { %3076 = vmatpush3.bf16.msra.mxu0 %v3472_v25 }
 0x135   :  { %v2924_v10 = vpop.f32.mrb[4].mxu1 }
 0x136   :  { %v2925_v11 = vpop.f32.mrb[5].mxu1 }
 0x137   :  { %v2926_v12 = vadd.f32 %v2925_v11, %v2924_v10  ;;  %v2927_v13 = vpop.f32.mrb[6].mxu1  ;;  %v1755_v10 = vadd.f32 %v4329_v6, %v372_v8 }
 0x138   :  { %v2928_v14 = vpop.f32.mrb[7].mxu1 }
 0x139   :  { %v1999_v30 = vadd.f32 %v2926_v12, %v376_v28 }
 0x155   :  { %v2946_v31 = vpop.f32.mrb[8].mxu1 }
 0x156   :  { %v2947_v32 = vpop.f32.mrb[9].mxu1 }
 0x157   :  { %v2948_v34 = vadd.f32 %v2947_v32, %v2946_v31  ;;  %v2949_v35 = vpop.f32.mrb[10].mxu1 }
 0x158   :  { %v2950_v36 = vpop.f32.mrb[11].mxu1 }
 0x159   :  { %v2039_v37 = vadd.f32 %v2948_v34, %v1999_v30 }
 0x175   :  { %v2968_v42 = vpop.f32.mrb[12].mxu1 }
 0x176   :  { %v2969_v43 = vpop.f32.mrb[13].mxu1 }
 0x177   :  { %v2970_v44 = vadd.f32 %v2969_v43, %v2968_v42  ;;  %v2971_v45 = vpop.f32.mrb[14].mxu1  ;;  %v3475_v42 = vld [vmem:[%s4446_s7 + $0x10] sm:$0xff]   ;;  %v3476_v43 = vld [vmem:[%s4446_s7 + $0x18] sm:$0xff]  }
 0x178   :  { %v2972_v46 = vpop.f32.mrb[15].mxu1 }
 0x179   :  { %v2079_v47 = vadd.f32 %v2970_v44, %v2039_v37  ;;  %v2896_v44 = vld [vmem:[%s4448_s6] ss:$0 sm:$0xff] }
 0x195   :  { %v2990_v48 = vpop.f32.mrb[16].mxu1 }
 0x196   :  { %v2991_v49 = vpop.f32.mrb[17].mxu1 }
 0x197   :  { %v2992_v50 = vadd.f32 %v2991_v49, %v2990_v48  ;;  %v2993_v53 = vpop.f32.mrb[18].mxu1 }
 0x198   :  { %v2994_v52 = vpop.f32.mrb[19].mxu1 }
 0x199   :  { %v2119_v54 = vadd.f32 %v2992_v50, %v2079_v47 }
 0x1b5   :  { %v3012_v55 = vpop.f32.mrb[20].mxu1 }
 0x1b6   :  { %v3013_v56 = vpop.f32.mrb[21].mxu1 }
 0x1b7   :  { %v3014_v57 = vadd.f32 %v3013_v56, %v3012_v55  ;;  %v3015_v58 = vpop.f32.mrb[22].mxu1 }
 0x1b8   :  { %v3016_v59 = vpop.f32.mrb[23].mxu1 }
 0x1b9   :  { %v2159_v60 = vadd.f32 %v3014_v57, %v2119_v54 }
 0x1bd   :  { %v2198_v61 = vpop.f32.mrb[24].mxu1 }
 0x1be   :  { %v2199_v62 = vadd.f32 %v2198_v61, %v2159_v60  ;;  %v3059_v63 = vpop.f32.mrb[25].mxu1 }
 0x1bf   :  { %v2201_v0 = vpop.f32.mrb[26].mxu1 }
 0x1c0   :  { %v3060_v1 = vpop.f32.mrb[27].mxu1  ;;  %v2206_v6 = vmax.f32 %v2199_v62, 0.0 }
 0x1c2   :  { %v2209_v21 = vpack.c.bf16 %v2206_v6, %v2206_v6 }
 0x1e2   :  { %v1957_v11 = vpop.f32.mrb[0].mxu0 }
 0x1e3   :  { %v3094_v12 = vadd.f32 %v1957_v11, %v1753_v9  ;;  %v1959_v13 = vpop.f32.mrb[1].mxu0 }
 0x1e4   :  { %v3096_v14 = vadd.f32 %v1959_v13, %v1755_v10  ;;  %v1961_v15 = vpop.f32.mrb[2].mxu0 }
 0x1e5   :  { %v2204_v16 = vmax.f32 %v3094_v12, 0.0  ;;  %v1962_v17 = vpop.f32.mrb[3].mxu0 }
 0x1e6   :  { %v2205_v18 = vmax.f32 %v3096_v14, 0.0 }
 0x1e7   :  { %v2207_v20 = vpack.c.bf16 %v2204_v16, %v2204_v16 }
 0x1e8   :  { %v2208_v7 = vpack.c.bf16 %v2205_v18, %v2205_v18 }
 0x1ea   :  { %2397 = vmatprep.mubr.bf16.mxu1 %v2208_v7 }
 0x1eb   :  { %2398 = vmatmul.mubr.bf16.vlgmr.msra.gmra.mrb[28].mxu1 %v2207_v20 }
 0x1ec   :  { %3062 = vmatpush3.bf16.msra.mxu1 %v3467_v19  ;;  %3065 = vmatprep.mubr.msk.bf16.mxu1 %vm3478_vm0, %v3477_v51 }
 0x1ed   :  { %3063 = vmatprep.subr.bf16.mxu1 %v3477_v51 }
 0x1f0   :  { %3064 = vmatpush3.bf16.msra.mxu1 %v3468_v5 }
 0x1f1   :  { %3081 = vmatprep.subr.bf16.mxu1 %v3477_v51 }
 0x1f3   :  { %3066 = vmatmul.mubr.msk.bf16.vlgmr.msra.gmra.mrb[32].mxu1 %vm2361_vm2, %v2209_v21 }
 0x1f4   :  { %3089 = vmatprep.mubr.msk.bf16.mxu1 %vm3478_vm0, %v3477_v51  ;;  %3082 = vmatpush3.bf16.msra.mxu1 %v3473_v26 }
 0x1f5   :  { %3083 = vmatprep.subr.bf16.mxu1 %v3477_v51 }
 0x1f8   :  { %3084 = vmatpush3.bf16.msra.mxu1 %v3474_v27 }
 0x1f9   :  { %3085 = vmatprep.subr.bf16.mxu1 %v3477_v51 }
 0x1fc   :  { %3086 = vmatpush3.bf16.msra.mxu1 %v3475_v42 }
 0x1fd   :  { %3087 = vmatprep.subr.bf16.mxu1 %v3477_v51  ;;  %v2902_v51 = vld [vmem:[%s4449_s8] ss:$0 sm:$0xff] }
 0x200   :  { %3088 = vmatpush3.bf16.msra.mxu1 %v3476_v43 }
 0x2be   :  { %v3036_v28 = vpop.f32.mrb[28].mxu1 }
 0x2bf   :  { %v3037_v29 = vpop.f32.mrb[29].mxu1 }
 0x2c0   :  { %v3038_v30 = vadd.f32 %v3037_v29, %v3036_v28  ;;  %v3039_v31 = vpop.f32.mrb[30].mxu1 }
 0x2c1   :  { %v3040_v32 = vpop.f32.mrb[31].mxu1 }
 0x2c2   :  { %v2400_v34 = vadd.f32 %v3038_v30, %v2876_v33 }
 0x2c6   :  { %v2439_v35 = vpop.f32.mrb[32].mxu1 }
 0x2c7   :  { %v2440_v36 = vadd.f32 %v2439_v35, %v2400_v34  ;;  %v3067_v37 = vpop.f32.mrb[33].mxu1 }
 0x2c8   :  { %v2442_v38 = vpop.f32.mrb[34].mxu1 }
 0x2c9   :  { %v2445_v39 = vmax.f32 %v2440_v36, 0.0  ;;  %v3068_v40 = vpop.f32.mrb[35].mxu1 }
 0x2cb   :  { %v2446_v41 = vpack.c.bf16 %v2445_v39, %v2445_v39 }
 0x2cd   :  { %3078 = vmatmul.mubr.msk.bf16.vlgmr.msra.gmra.mrb[4].mxu0 %vm2486_vm3, %v2446_v41 }
 0x3a0   :  { %v2524_v45 = vpop.f32.mrb[4].mxu0 }
 0x3a1   :  { %v2525_v46 = vadd.f32 %v2896_v44, %v2524_v45  ;;  %v3079_v47 = vpop.f32.mrb[5].mxu0 }
 0x3a2   :  { %v2527_v48 = vpop.f32.mrb[6].mxu0 }
 0x3a3   :  { %v2530_v49 = vmax.f32 %v2525_v46, 0.0  ;;  %v3080_v50 = vpop.f32.mrb[7].mxu0 }
 0x3a5   :  { %v2531_v53 = vpack.c.bf16 %v2530_v49, %v2530_v49 }
 0x3a7   :  { %3090 = vmatmul.mubr.msk.bf16.vlgmr.msra.gmra.mrb[36].mxu1 %vm2486_vm3, %v2531_v53 }
 0x47a   :  { %v2608_v52 = vpop.f32.mrb[36].mxu1 }
 0x47b   :  { %v2609_v54 = vadd.f32 %v2902_v51, %v2608_v52  ;;  %v3091_v55 = vpop.f32.mrb[37].mxu1 }
 0x47c   :  { %v2611_v56 = vpop.f32.mrb[38].mxu1 }
 0x47d   :  { %2615 = vst.msk [vmem:[%s4450_s9] sm:$0xff] %vm2614_vm4, %v2609_v54  ;;  %v3092_v57 = vpop.f32.mrb[39].mxu1 }

</bundles_post_ra>
